<compile_context>
chip_gen: v5e
topology: v5e:2x2
jax: 0.10.0
libtpu: 0.0.40
codegen_flags: <defaults>
</compile_context>

<pallas_src>
import math
import numpy as np
import jax
import jax.numpy as jnp
from jax.experimental import pallas as pl
from jax.experimental.pallas import tpu as pltpu


def _leaky(v, slope=0.2):
    # LeakyReLU(0.2): max(v, 0.2*v) is exact for 0 < slope < 1
    return jnp.maximum(v, slope * v)


def _ppm_kernel(x_ref, ws_ref, wbp_ref, wbf_ref, b_ref, mask_ref, d_ref, u_ref,
                o_ref):
    # x_ref   : (1, C, M)      f32   feats row-tile, spatial flattened into lanes
    # ws_ref  : (S*CT, C)      bf16  stacked per-stage 1x1 conv weights (row k*CT+t = stage k, out-ch t)
    # wbp_ref : (O, S*CT)      bf16  bottleneck weight, prior-channel columns
    # wbf_ref : (O, C)         bf16  bottleneck weight, feats columns
    # b_ref   : (O, 1)         f32   bottleneck bias
    # mask_ref: (S*CT, m_tot)  f32   1 where pooled column j belongs to the row's stage
    # d_ref   : (M, m_tot)     bf16  stacked avg-pool matrix (entries 1/s^2)
    # u_ref   : (m_tot, M)     bf16  stacked nearest-upsample matrix (entries 1)
    # o_ref   : (1, O, M)      f32
    x = x_ref[0]                                   # (C, M) f32
    xb = x.astype(jnp.bfloat16)                    # bf16 MXU operands, f32 accumulation

    # feats' direct bottleneck contribution + bias (bias broadcast happens once)
    acc = jnp.dot(wbf_ref[...], xb, preferred_element_type=jnp.float32)       # (O, M)
    acc = acc + b_ref[...]

    # all-stage average pooling in one matmul: (C, M) @ (M, m_tot)
    pooled = jnp.dot(xb, d_ref[...], preferred_element_type=jnp.float32)      # (C, m_tot)

    # all stage 1x1 convs in one matmul + LeakyReLU; the mask zeroes the
    # cross-stage (stage-k' weights on stage-k pooled columns) junk entries.
    q = jnp.dot(ws_ref[...], pooled.astype(jnp.bfloat16),
                preferred_element_type=jnp.float32)                           # (S*CT, m_tot)
    q = _leaky(q) * mask_ref[...]

    # bottleneck prior part, then all-stage nearest upsample + sum in one matmul
    r = jnp.dot(wbp_ref[...], q.astype(jnp.bfloat16),
                preferred_element_type=jnp.float32)                           # (O, m_tot)
    acc = acc + jnp.dot(r.astype(jnp.bfloat16), u_ref[...],
                        preferred_element_type=jnp.float32)                   # (O, M)

    o_ref[0] = _leaky(acc).astype(o_ref.dtype)


def _lcm_all(vals):
    l = 1
    for v in vals:
        l = l * v // math.gcd(l, v)
    return l


def _pool_upsample_matrices(tile_h, w, scales):
    """Stacked (over stages) pool / nearest-upsample matrices for one row tile.

    D_all[m, off_k + j] = 1/s_k^2 if pixel m lies in window j of stage k, else 0.
    U_all[off_k + j, m] = 1       if pixel m lies in window j of stage k, else 0.
    mask[k, j]          = 1       if pooled column j belongs to stage k.
    """
    M = tile_h * w
    m_sizes = [(tile_h // s) * (w // s) for s in scales]
    m_tot = int(sum(m_sizes))
    offs = np.cumsum([0] + m_sizes)
    D = np.zeros((M, m_tot), np.float32)
    U = np.zeros((m_tot, M), np.float32)
    mask = np.zeros((len(scales), m_tot), np.float32)
    m_idx = np.arange(M)
    y, x = np.divmod(m_idx, w)
    for k, s in enumerate(scales):
        wp = w // s
        j = offs[k] + (y // s) * wp + (x // s)
        D[m_idx, j] = 1.0 / float(s * s)
        U[j, m_idx] = 1.0
        mask[k, offs[k]:offs[k + 1]] = 1.0
    return D, U, mask, m_tot


def _padded_bytes(shape, itemsize):
    """Rough VMEM footprint of one buffer (pads last dim to 128, 2nd-last to 8/16)."""
    s = [int(d) for d in shape]
    s[-1] = -(-s[-1] // 128) * 128
    if len(s) >= 2:
        sub = 8 if itemsize >= 4 else (32 // itemsize)
        s[-2] = -(-s[-2] // sub) * sub
    n = 1
    for d in s:
        n *= d
    return n * itemsize


def pyramid_pooling(feats_nchw, stage_w, bott_w, bott_b,
                    scales=(4, 8, 16, 32), tile_h=None):
    """Fused PyramidPooling forward.

    feats_nchw: (N, C, H, W) float32
    stage_w   : (S, C, CT)        per-stage 1x1 conv weights (no bias)
    bott_w    : (O, S*CT + C)     bottleneck 1x1 conv weight (prior channels first, then feats)
    bott_b    : (O,)              bottleneck bias
    returns   : (N, O, H, W) float32
    """
    N, C, H, W = feats_nchw.shape
    S, c_chk, CT = stage_w.shape
    O = bott_w.shape[0]
    assert c_chk == C and bott_w.shape[1] == S * CT + C

    for s in scales:
        if H % s != 0 or W % s != 0:
            raise ValueError("H and W must be divisible by every scale (PyTorch "
                             "floor-pool + nearest-resample path not implemented).")

    # Row tile: a multiple of every scale (windows never straddle tiles), small
    # enough to keep VMEM low on v7x (64 MiB) and give the grid several steps,
    # and with a lane-dense flattened width (tile_h*W multiple of 128).
    if tile_h is None:
        base = _lcm_all(scales)
        tile_h = H
        t = base
        while t <= H:
            if H % t == 0 and (t * W) % 128 == 0:
                tile_h = t
                break
            t += base
    assert H % tile_h == 0
    for s in scales:
        assert tile_h % s == 0, "row tile must be a multiple of every scale"
    M = tile_h * W
    if H // tile_h > 1 and M % 128 != 0:
        tile_h = H          # block == full array dims is always legal
        M = tile_h * W

    # ---- host-side (trace-time) preprocessing of the small resident operands ----
    # Stage convs stacked: row k*CT + t acts on channel dim C.
    ws_all = jnp.transpose(stage_w, (0, 2, 1)).reshape(S * CT, C).astype(jnp.bfloat16)
    # Bottleneck split along the concat order [stage_0..stage_{S-1} priors, feats].
    wbp = bott_w[:, : S * CT].astype(jnp.bfloat16)        # (O, S*CT)
    wbf = bott_w[:, S * CT:].astype(jnp.bfloat16)         # (O, C)
    bias = bott_b.reshape(O, 1).astype(jnp.float32)       # (O, 1)

    D_np, U_np, mask_np, m_tot = _pool_upsample_matrices(tile_h, W, scales)
    D = jnp.asarray(D_np, jnp.bfloat16)                              # (M, m_tot)
    U = jnp.asarray(U_np, jnp.bfloat16)                              # (m_tot, M)
    mask = jnp.asarray(np.repeat(mask_np, CT, axis=0), jnp.float32)  # (S*CT, m_tot)

    # NCHW with spatial flattened (free reshape, no transpose needed).
    x = feats_nchw.reshape(N, C, H * W)

    grid = (N, H // tile_h)

    # Advisory cost estimate for XLA's scheduler.
    tiles = int(N * (H // tile_h))
    flops_per_tile = 2 * (O * C * M + C * M * m_tot + (S * CT) * C * m_tot
                          + O * (S * CT) * m_tot + O * m_tot * M)
    bytes_accessed = int(N * C * H * W * 4 + N * O * H * W * 4
                         + (D.size + U.size + ws_all.size + wbp.size + wbf.size) * 2
                         + (bias.size + mask.size) * 4)
    cost = pl.CostEstimate(flops=int(tiles * flops_per_tile), transcendentals=0,
                           bytes_accessed=bytes_accessed)

    # Explicit VMEM budget (blocks + residents are all double-buffered today).
    resident_bytes = (_padded_bytes((S * CT, C), 2) + _padded_bytes((O, S * CT), 2)
                      + _padded_bytes((O, C), 2) + _padded_bytes((O, 1), 4)
                      + _padded_bytes((S * CT, m_tot), 4)
                      + _padded_bytes((M, m_tot), 2) + _padded_bytes((m_tot, M), 2))
    block_bytes = _padded_bytes((C, M), 4) + _padded_bytes((O, M), 4)
    vmem_need = 2 * block_bytes + 2 * resident_bytes + (4 << 20)
    vmem_limit = int(min(max(vmem_need, 32 << 20), 56 << 20))

    out_flat = pl.pallas_call(
        _ppm_kernel,
        out_shape=jax.ShapeDtypeStruct((N, O, H * W), jnp.float32),
        grid_spec=pltpu.PrefetchScalarGridSpec(
            num_scalar_prefetch=0,
            grid=grid,
            in_specs=[
                pl.BlockSpec((1, C, M), lambda n, t: (n, 0, t)),        # feats row tile
                pl.BlockSpec((S * CT, C), lambda n, t: (0, 0)),          # resident
                pl.BlockSpec((O, S * CT), lambda n, t: (0, 0)),          # resident
                pl.BlockSpec((O, C), lambda n, t: (0, 0)),               # resident
                pl.BlockSpec((O, 1), lambda n, t: (0, 0)),               # resident
                pl.BlockSpec((S * CT, m_tot), lambda n, t: (0, 0)),      # resident
                pl.BlockSpec((M, m_tot), lambda n, t: (0, 0)),           # resident
                pl.BlockSpec((m_tot, M), lambda n, t: (0, 0)),           # resident
            ],
            out_specs=pl.BlockSpec((1, O, M), lambda n, t: (n, 0, t)),
        ),
        compiler_params=pltpu.CompilerParams(
            dimension_semantics=("parallel", "parallel"),
            vmem_limit_bytes=vmem_limit,
        ),
        cost_estimate=cost,
    )(x, ws_all, wbp, wbf, bias, mask, D, U)

    return out_flat.reshape(N, O, H, W)


def pyramid_pooling_ref(feats_nchw, stage_w, bott_w, bott_b, scales=(4, 8, 16, 32)):
    """Pure-JAX reference mirroring the PyTorch forward exactly (f32, HIGHEST)."""
    N, C, H, W = feats_nchw.shape
    S, _, CT = stage_w.shape
    hp = jax.lax.Precision.HIGHEST
    priors = []
    for k, s in enumerate(scales):
        p = feats_nchw.reshape(N, C, H // s, s, W // s, s).mean(axis=(3, 5))   # AvgPool2d(s)
        p = jnp.einsum('nchw,ct->nthw', p, stage_w[k], precision=hp)           # 1x1 conv, no bias
        p = jnp.maximum(p, 0.2 * p)                                            # LeakyReLU(0.2)
        p = jnp.repeat(jnp.repeat(p, s, axis=2), s, axis=3)                    # nearest upsample
        priors.append(p)
    cat = jnp.concatenate(priors + [feats_nchw], axis=1)
    out = jnp.einsum('nchw,oc->nohw', cat, bott_w, precision=hp)
    out = out + bott_b[None, :, None, None]
    return jnp.maximum(out, 0.2 * out)


if __name__ == "__main__":
    key = jax.random.PRNGKey(0)
    scales = (4, 8, 16, 32)                 # module defaults -> spatial divisible by 32
    N, C, H, W, O, CT = 2, 4, 64, 64, 8, 1  # grid = (2, 2): 4 steps for megacore
    S = len(scales)

    kx, k1, k2, k3 = jax.random.split(key, 4)
    feats = jax.random.normal(kx, (N, C, H, W), jnp.float32)
    stage_w = jax.random.normal(k1, (S, C, CT), jnp.float32) / np.sqrt(C)
    bott_w = jax.random.normal(k2, (O, S * CT + C), jnp.float32) / np.sqrt(S * CT + C)
    bott_b = 0.1 * jax.random.normal(k3, (O,), jnp.float32)

    out = jax.jit(pyramid_pooling)(feats, stage_w, bott_w, bott_b)
    out = jax.block_until_ready(out)

    ref = pyramid_pooling_ref(feats, stage_w, bott_w, bott_b, scales)
    assert out.shape == (N, O, H, W), out.shape
    # bf16 MXU operands (per perf review) vs the f32 HIGHEST reference -> 5e-2 tol.
    np.testing.assert_allclose(np.asarray(out), np.asarray(ref), rtol=5e-2, atol=5e-2)

    print("KERNEL_OK")
</pallas_src>

<mosaic_0001>
module attributes {stable_mosaic.version = 11 : i64} {
  func.func @_ppm_kernel(%arg0: i32, %arg1: i32, %arg2: memref<1x4x2048xf32, #tpu.memory_space<vmem>>, %arg3: memref<4x4xbf16, #tpu.memory_space<vmem>>, %arg4: memref<8x4xbf16, #tpu.memory_space<vmem>>, %arg5: memref<8x4xbf16, #tpu.memory_space<vmem>>, %arg6: memref<8x1xf32, #tpu.memory_space<vmem>>, %arg7: memref<4x170xf32, #tpu.memory_space<vmem>>, %arg8: memref<2048x170xbf16, #tpu.memory_space<vmem>>, %arg9: memref<170x2048xbf16, #tpu.memory_space<vmem>>, %arg10: memref<1x8x2048xf32, #tpu.memory_space<vmem>>) attributes {dimension_semantics = [#tpu.dimension_semantics<parallel>, #tpu.dimension_semantics<parallel>], iteration_bounds = array<i64: 2, 2>, scalar_prefetch = 0 : i64, scratch_operands = 0 : i64, tpu.core_type = #tpu.core_type<tc>, window_params = [{transform_indices = @transform_0, window_bounds = array<i64: 1, 4, 2048>}, {pipeline_mode = #tpu.pipeline_mode<synchronous>, transform_indices = @transform_1, window_bounds = array<i64: 4, 4>}, {pipeline_mode = #tpu.pipeline_mode<synchronous>, transform_indices = @transform_2, window_bounds = array<i64: 8, 4>}, {pipeline_mode = #tpu.pipeline_mode<synchronous>, transform_indices = @transform_3, window_bounds = array<i64: 8, 4>}, {pipeline_mode = #tpu.pipeline_mode<synchronous>, transform_indices = @transform_4, window_bounds = array<i64: 8, 1>}, {pipeline_mode = #tpu.pipeline_mode<synchronous>, transform_indices = @transform_5, window_bounds = array<i64: 4, 170>}, {pipeline_mode = #tpu.pipeline_mode<synchronous>, transform_indices = @transform_6, window_bounds = array<i64: 2048, 170>}, {pipeline_mode = #tpu.pipeline_mode<synchronous>, transform_indices = @transform_7, window_bounds = array<i64: 170, 2048>}, {transform_indices = @transform_8, window_bounds = array<i64: 1, 8, 2048>}]} {
    %c0 = arith.constant 0 : index
    %c0_0 = arith.constant 0 : index
    %c0_1 = arith.constant 0 : index
    %0 = vector.load %arg2[%c0, %c0_0, %c0_1] : memref<1x4x2048xf32, #tpu.memory_space<vmem>>, vector<1x4x2048xf32>
    %1 = vector.shape_cast %0 : vector<1x4x2048xf32> to vector<4x2048xf32>
    %2 = arith.truncf %1 : vector<4x2048xf32> to vector<4x2048xbf16>
    %c0_2 = arith.constant 0 : index
    %c0_3 = arith.constant 0 : index
    %3 = vector.load %arg5[%c0_2, %c0_3] : memref<8x4xbf16, #tpu.memory_space<vmem>>, vector<8x4xbf16>
    %cst = arith.constant dense<0.000000e+00> : vector<8x2048xf32>
    %4 = tpu.matmul %3, %2, %cst {dimension_numbers = #tpu.dot_dimension_numbers<[1], [0], [0], [1], [0, 0, 1, 1], [], []>} : vector<8x4xbf16>, vector<4x2048xbf16>, vector<8x2048xf32> -> vector<8x2048xf32>
    %c0_4 = arith.constant 0 : index
    %c0_5 = arith.constant 0 : index
    %5 = vector.load %arg6[%c0_4, %c0_5] : memref<8x1xf32, #tpu.memory_space<vmem>>, vector<8x1xf32>
    %6 = vector.broadcast %5 : vector<8x1xf32> to vector<8x2048xf32>
    %7 = arith.addf %4, %6 : vector<8x2048xf32>
    %c0_6 = arith.constant 0 : index
    %c0_7 = arith.constant 0 : index
    %8 = vector.load %arg8[%c0_6, %c0_7] : memref<2048x170xbf16, #tpu.memory_space<vmem>>, vector<2048x170xbf16>
    %cst_8 = arith.constant dense<0.000000e+00> : vector<4x170xf32>
    %9 = tpu.matmul %2, %8, %cst_8 {dimension_numbers = #tpu.dot_dimension_numbers<[1], [0], [0], [1], [0, 0, 1, 1], [], []>} : vector<4x2048xbf16>, vector<2048x170xbf16>, vector<4x170xf32> -> vector<4x170xf32>
    %c0_9 = arith.constant 0 : index
    %c0_10 = arith.constant 0 : index
    %10 = vector.load %arg3[%c0_9, %c0_10] : memref<4x4xbf16, #tpu.memory_space<vmem>>, vector<4x4xbf16>
    %11 = arith.truncf %9 : vector<4x170xf32> to vector<4x170xbf16>
    %cst_11 = arith.constant dense<0.000000e+00> : vector<4x170xf32>
    %12 = tpu.matmul %10, %11, %cst_11 {dimension_numbers = #tpu.dot_dimension_numbers<[1], [0], [0], [1], [0, 0, 1, 1], [], []>} : vector<4x4xbf16>, vector<4x170xbf16>, vector<4x170xf32> -> vector<4x170xf32>
    %cst_12 = arith.constant 2.000000e-01 : f32
    %13 = vector.broadcast %cst_12 : f32 to vector<4x170xf32>
    %14 = arith.mulf %13, %12 : vector<4x170xf32>
    %15 = arith.maximumf %12, %14 : vector<4x170xf32>
    %c0_13 = arith.constant 0 : index
    %c0_14 = arith.constant 0 : index
    %16 = vector.load %arg7[%c0_13, %c0_14] : memref<4x170xf32, #tpu.memory_space<vmem>>, vector<4x170xf32>
    %17 = arith.mulf %15, %16 : vector<4x170xf32>
    %c0_15 = arith.constant 0 : index
    %c0_16 = arith.constant 0 : index
    %18 = vector.load %arg4[%c0_15, %c0_16] : memref<8x4xbf16, #tpu.memory_space<vmem>>, vector<8x4xbf16>
    %19 = arith.truncf %17 : vector<4x170xf32> to vector<4x170xbf16>
    %cst_17 = arith.constant dense<0.000000e+00> : vector<8x170xf32>
    %20 = tpu.matmul %18, %19, %cst_17 {dimension_numbers = #tpu.dot_dimension_numbers<[1], [0], [0], [1], [0, 0, 1, 1], [], []>} : vector<8x4xbf16>, vector<4x170xbf16>, vector<8x170xf32> -> vector<8x170xf32>
    %21 = arith.truncf %20 : vector<8x170xf32> to vector<8x170xbf16>
    %c0_18 = arith.constant 0 : index
    %c0_19 = arith.constant 0 : index
    %22 = vector.load %arg9[%c0_18, %c0_19] : memref<170x2048xbf16, #tpu.memory_space<vmem>>, vector<170x2048xbf16>
    %cst_20 = arith.constant dense<0.000000e+00> : vector<8x2048xf32>
    %23 = tpu.matmul %21, %22, %cst_20 {dimension_numbers = #tpu.dot_dimension_numbers<[1], [0], [0], [1], [0, 0, 1, 1], [], []>} : vector<8x170xbf16>, vector<170x2048xbf16>, vector<8x2048xf32> -> vector<8x2048xf32>
    %24 = arith.addf %7, %23 : vector<8x2048xf32>
    %cst_21 = arith.constant 2.000000e-01 : f32
    %25 = vector.broadcast %cst_21 : f32 to vector<8x2048xf32>
    %26 = arith.mulf %25, %24 : vector<8x2048xf32>
    %27 = arith.maximumf %24, %26 : vector<8x2048xf32>
    %c0_22 = arith.constant 0 : index
    %c0_23 = arith.constant 0 : index
    %c0_24 = arith.constant 0 : index
    %28 = vector.load %arg10[%c0_22, %c0_23, %c0_24] : memref<1x8x2048xf32, #tpu.memory_space<vmem>>, vector<1x8x2048xf32>
    %29 = vector.shape_cast %28 : vector<1x8x2048xf32> to vector<8x2048xf32>
    %30 = vector.shape_cast %27 : vector<8x2048xf32> to vector<1x8x2048xf32>
    tpu.vector_store %arg10[%c0_22, %c0_23, %c0_24], %30 {strides = array<i32>} : memref<1x8x2048xf32, #tpu.memory_space<vmem>>, vector<1x8x2048xf32>,
    return
  }
  func.func @transform_0(%arg0: i32, %arg1: i32) -> (i32, i32, i32) {
    %c0_i32 = arith.constant 0 : i32
    %c0_i32_0 = arith.constant 0 : i32
    return %arg0, %c0_i32, %arg1 : i32, i32, i32
  }
  func.func @transform_1(%arg0: i32, %arg1: i32) -> (i32, i32) {
    %c0_i32 = arith.constant 0 : i32
    %c0_i32_0 = arith.constant 0 : i32
    %c0_i32_1 = arith.constant 0 : i32
    return %c0_i32, %c0_i32_0 : i32, i32
  }
  func.func @transform_2(%arg0: i32, %arg1: i32) -> (i32, i32) {
    %c0_i32 = arith.constant 0 : i32
    %c0_i32_0 = arith.constant 0 : i32
    %c0_i32_1 = arith.constant 0 : i32
    return %c0_i32, %c0_i32_0 : i32, i32
  }
  func.func @transform_3(%arg0: i32, %arg1: i32) -> (i32, i32) {
    %c0_i32 = arith.constant 0 : i32
    %c0_i32_0 = arith.constant 0 : i32
    %c0_i32_1 = arith.constant 0 : i32
    return %c0_i32, %c0_i32_0 : i32, i32
  }
  func.func @transform_4(%arg0: i32, %arg1: i32) -> (i32, i32) {
    %c0_i32 = arith.constant 0 : i32
    %c0_i32_0 = arith.constant 0 : i32
    %c0_i32_1 = arith.constant 0 : i32
    return %c0_i32, %c0_i32_0 : i32, i32
  }
  func.func @transform_5(%arg0: i32, %arg1: i32) -> (i32, i32) {
    %c0_i32 = arith.constant 0 : i32
    %c0_i32_0 = arith.constant 0 : i32
    %c0_i32_1 = arith.constant 0 : i32
    return %c0_i32, %c0_i32_0 : i32, i32
  }
  func.func @transform_6(%arg0: i32, %arg1: i32) -> (i32, i32) {
    %c0_i32 = arith.constant 0 : i32
    %c0_i32_0 = arith.constant 0 : i32
    %c0_i32_1 = arith.constant 0 : i32
    return %c0_i32, %c0_i32_0 : i32, i32
  }
  func.func @transform_7(%arg0: i32, %arg1: i32) -> (i32, i32) {
    %c0_i32 = arith.constant 0 : i32
    %c0_i32_0 = arith.constant 0 : i32
    %c0_i32_1 = arith.constant 0 : i32
    return %c0_i32, %c0_i32_0 : i32, i32
  }
  func.func @transform_8(%arg0: i32, %arg1: i32) -> (i32, i32, i32) {
    %c0_i32 = arith.constant 0 : i32
    %c0_i32_0 = arith.constant 0 : i32
    return %arg0, %c0_i32, %arg1 : i32, i32, i32
  }
}

</mosaic_0001>

<bundles_post_ra>
// kernel: pyramid_pooling.1
= control target key start
LH: loop header
LB: loop body
LE: loop exit
PB: predicated region body
PF: predicated region fallthrough
CT: control target
= control target key end

     0   :  { %13 = vsyncpa [#allocation3], 0  ;;  %s7331_s0 = inlined_call_operand.vmem [shape: f32[2,4,4096], index: 0, kind: input, shape index: {}]   ;;  %s7332_s1 = inlined_call_operand.vmem [shape: bf16[4,4], index: 1, kind: input, shape index: {}]   ;;  %s7333_s2 = inlined_call_operand.vmem [shape: bf16[8,4], index: 2, kind: input, shape index: {}]   ;;  %s7334_s3 = inlined_call_operand.vmem [shape: bf16[8,4], index: 3, kind: input, shape index: {}]   ;;  %s7335_s4 = inlined_call_operand.vmem [shape: f32[8,1], index: 4, kind: input, shape index: {}]   ;;  %s7336_s5 = inlined_call_operand.vmem [shape: f32[4,170], index: 5, kind: input, shape index: {}]   ;;  %s7337_s6 = inlined_call_operand.hbm [shape: bf16[2048,170], index: 6, kind: input, shape index: {}]   ;;  %s7338_s7 = inlined_call_operand.hbm [shape: bf16[170,2048], index: 7, kind: input, shape index: {}]   ;;  %s7339_s8 = inlined_call_operand.vmem [shape: f32[2,8,4096], index: 8, kind: output, shape index: {}]  }
   0x1   :  { %14 = vsyncpa [#allocation5], 0  ;;  %s6891_s27 = smov 0   ;;  %s6893_s28 = smov 0  }
   0x2   :  { %s6895_s29 = smov 0   ;;  %s6897_s30 = smov 0  }
   0x3   :  { %s6899_s9 = smov 0  }
   0x4 LB: > { %s4451_s10 = sadd.s32 4294967295, %s6837_s9   ;;  %s29_s11 = sadd.s32 1, %s6829_s29  ;;  %s6837_s9 = sphi %s6899_s9, %s20_s9   ;;  %s6833_s30 = sphi %s6897_s30, %s7345_s30   ;;  %s6829_s29 = sphi %s6895_s29, %s7344_s29   ;;  %s6825_s28 = sphi %s6893_s28, %s7343_s28   ;;  %s6821_s27 = sphi %s6891_s27, %s7342_s27  }
   0x5   : > { %p30_p0 = scmp.ge.s32.totalorder %s29_s11, 2  ;;  %s32_s12 = sadd.s32 1, %s6833_s30 }
   0x6   : > { %p4453_p1 = scmp.ge.s32.totalorder %s6837_s9, 1  ;;  %p240_p2 = scmp.lt.s32.totalorder %s6837_s9, 5 }
   0x7   : > { %s7347_s11 = smov (%p30_p0, %s29_s11), 0  ;;  %s7349_s12 = smov (!%p30_p0, %s32_s12), %s6833_s30 }
   0x8   : > { %p6924_p3 = pnand %p4453_p1, %p240_p2  ;;  %p34_p4 = scmp.ge.s32.totalorder %s7349_s12, 2 }
   0x9   : > { %p6928_p5 = scmp.eq.s32.totalorder %s4451_s10, 0  ;;  %s266_s17 = sshll.u32 %s7337_s6, 4  ;;  %s267_s17 = int_to_ptr.hbm [resolvable:$true] %s266_s17 }
   0xa   : > { %p6672_p6 = pneg %p6924_p3  ;;  %s7351_s12 = smov (%p34_p4, %s7349_s12), 0 }
   0xb   : > { %s6839_s18 = smov [#allocation2]   ;;  %s6840_s20 = smov 128  }
   0xc   : > { %s268_s19 = sshll.u32 %s6839_s18, 4  ;;  %p6673_p7 = pnand %p6928_p5, %p6672_p6  ;;  %s269_s19 = int_to_ptr.vmem [resolvable:$true] %s268_s19 }
   0xd   : > { %s6841_s21 = smov 8   ;;  %s280_s24 = sshll.u32 %s7338_s7, 4  ;;  %s281_s24 = int_to_ptr.hbm [resolvable:$true] %s280_s24 }
   0xe   : > { %6675 = dma.hbm_to_vmem [thread:$0]  (!%p6673_p7), %s267_s17, 32768, %s269_s19, [#allocation3], %s6840_s20, %s6840_s20, %s6841_s21  }
   0xf   : > { %s6842_s25 = smov [#allocation4]   ;;  %s6843_s10 = smov 1024  }
  0x10   : > { %s282_s26 = sshll.u32 %s6842_s25, 4  ;;  %s6844_s15 = smov 64   ;;  %s283_s26 = int_to_ptr.vmem [resolvable:$true] %s282_s26 }
  0x11   : > { %6678 = dma.hbm_to_vmem [thread:$0]  (!%p6673_p7), %s281_s24, 22528, %s283_s26, [#allocation5], %s6843_s10, %s6843_s10, %s6844_s15  }
  0x12   : > { %311 = sbr.rel (%p6924_p3) target bundleno = 1042 (0x412), region = 52 }
  0x17   : > { %6812 = dma.done.wait (%p6928_p5), [#allocation3], 32768  }
  0x18   : > { %6814 = vsyncadd (%p6928_p5), [#allocation3], 4294934528 }
  0x19   : > { %6816 = dma.done.wait (%p6928_p5), [#allocation5], 22528  }
  0x1a   : > { %6818 = vsyncadd (%p6928_p5), [#allocation5], 4294944768  ;;  %s4460_s16 = sshll.u32 %s6821_s27, 4  ;;  %p360_p8 = scmp.lt.s32.totalorder %s6825_s28, 1  ;;  %v6845_v0 = vmov 0   ;;  %v456_v5 = vld [vmem:[%s7335_s4] sm:$0xff] }
  0x1b   : > { %p362_p9 = scmp.lt.s32.totalorder %s4460_s16, 31  ;;  %6730 = vset.pattern.permute.xlu0 %v6845_v0  ;;  %vm466_vm0 = vcmask 1041408   ;;  %v6988_v19 = vld [vmem:[%s7334_s3] sm:$0xf]  ;;  %vm462_vm1 = vcmask 31744   ;;  %vm3810_vm2 = vcmask 1044480  }
  0x1c   : > { %s7353_s28 = smov (!%p360_p8, %s6825_s28), 1  ;;  %459 = vperm.xlu0 %6730, %v456_v5   ;;  %v2717_v28 = vld [vmem:[%s7336_s5] sm:$0xff]  ;;  %v4540_v51 = vld [vmem:[#allocation2 + $0x70] sm:$0xf]  ;;  %v4532_v59 = vld [vmem:[#allocation2 + $0x60] sm:$0xf] }
  0x1d   : > { %s7355_s16 = smov (!%p362_p9, %s4460_s16), 31  ;;  %s4461_s13 = sshll.u32 %s7353_s28, 5  ;;  %v6247_v53 = vld [vmem:[#allocation2 + $0x74] sm:$0xf0]  ;;  %v6245_v60 = vld [vmem:[#allocation2 + $0x64] sm:$0xf0] }
  0x1e   : > { %s6957_s17 = sadd.s32 %s4461_s13, %s7355_s16  ;;  %v4541_v57 = vor.u32 %v6247_v53, %v4540_v51  ;;  %v4533_v62 = vor.u32 %v6245_v60, %v4532_v59  ;;  %v4524_v63 = vld [vmem:[#allocation2 + $0x50] sm:$0xf]  ;;  %v6243_v0 = vld [vmem:[#allocation2 + $0x54] sm:$0xf0]  ;;  %v6273_v51 = vld [vmem:[#allocation2 + $0x144] sm:$0xf0] }
  0x1f   : > { %s4462_s18 = sshll.u32 %s6957_s17, 2  ;;  %v4604_v5 = vld [vmem:[#allocation2 + $0xf0] sm:$0xf]  ;;  %v6311_v60 = vld [vmem:[#allocation2 + $0x274] sm:$0xf0]  ;;  %vm3806_vm3 = vcmask 343040  }
  0x20   : > { %s6963_s14 = scalar_lea.vmem %s7331_s0, %s4462_s18  ;;  %v4796_v59 = vld [vmem:[#allocation2 + $0x270] sm:$0xf]  ;;  %s4465_s16 = sshll.u32 %s6957_s17, 3 }
  0x21   : > { %v380_v1 = vld [vmem:[%s6963_s14] sm:$0xff]  ;;  %v381_v2 = vld [vmem:[%s6963_s14 + $0x8] sm:$0xff]  ;;  %v382_v3 = vld [vmem:[%s6963_s14 + $0x10] sm:$0xff]  ;;  %s7266_s19 = scalar_lea.vmem %s7339_s8, %s4465_s16 }
  0x22   : > { %396 = vst [vmem:[#allocation1] ss:$2 sm:$0xff] %v380_v1  ;;  %v383_v4 = vld [vmem:[%s6963_s14 + $0x18] sm:$0xff]  ;;  %v384_v6 = vld [vmem:[%s6963_s14 + $0x20] sm:$0xff]  ;;  %v385_v7 = vld [vmem:[%s6963_s14 + $0x28] sm:$0xff]  ;;  %v4525_v1 = vor.u32 %v6243_v0, %v4524_v63 }
  0x23   : > { %398 = vst [vmem:[#allocation1 + $0x10] ss:$2 sm:$0xff] %v381_v2  ;;  %v386_v13 = vld [vmem:[%s6963_s14 + $0x30] sm:$0xff]  ;;  %v387_v24 = vld [vmem:[%s6963_s14 + $0x38] sm:$0xff]  ;;  %v4516_v2 = vld [vmem:[#allocation2 + $0x40] sm:$0xf] }
  0x24   : > { %400 = vst [vmem:[#allocation1 + $0x20] ss:$2 sm:$0xff] %v382_v3  ;;  %v6241_v3 = vld [vmem:[#allocation2 + $0x44] sm:$0xf0]  ;;  %v4732_v63 = vld [vmem:[#allocation2 + $0x1f0] sm:$0xf] }
  0x25   : > { %402 = vst [vmem:[#allocation1 + $0x30] ss:$2 sm:$0xff] %v383_v4  ;;  %v6295_v0 = vld [vmem:[#allocation2 + $0x1f4] sm:$0xf0] }
  0x29   : > { %v403_v8 = vld.sshfl [vmem:[#allocation1] sm:$0xff pattern:$0x75316420]  ;;  %v404_v9 = vld.sshfl [vmem:[#allocation1 + $0x8] sm:$0xff pattern:$0x75316420] }
  0x2a   : > { %v6974_v10 = vpack.c.bf16 %v403_v8, %v403_v8  ;;  %411 = vst [vmem:[#allocation1] ss:$2 sm:$0xff] %v384_v6  ;;  %v6976_v11 = vpack.c.bf16 %v404_v9, %v404_v9  ;;  %v405_v12 = vld.sshfl [vmem:[#allocation1 + $0x10] sm:$0xff pattern:$0x75316420]  ;;  %v4517_v9 = vor.u32 %v6241_v3, %v4516_v2 }
  0x2b   : > { %v6979_v14 = vpack.c.bf16 %v405_v12, %v405_v12  ;;  %v407_v15 = vld.sshfl [vmem:[#allocation1 + $0x20] sm:$0xff pattern:$0x75316420]  ;;  %v406_v16 = vld.sshfl [vmem:[#allocation1 + $0x18] sm:$0xff pattern:$0x75316420] }
  0x2c   : > { %v468_v17 = vsel %vm466_vm0, %v6974_v10, 0  ;;  %v471_v18 = vsel %vm466_vm0, %v6976_v11, 0  ;;  %v6990_v20 = vpack.c.bf16 %v407_v15, %v407_v15  ;;  %412 = vst [vmem:[#allocation1 + $0x10] ss:$2 sm:$0xff] %v385_v7  ;;  %v6992_v21 = vpack.c.bf16 %v406_v16, %v406_v16  ;;  %v6263_v6 = vld [vmem:[#allocation2 + $0xf4] sm:$0xf0] }
  0x2d   : > { %522 = vmatpush.bf16.msra.mxu3 %v468_v17  ;;  %535 = vmatpush.bf16.msra.mxu1 %v471_v18  ;;  %v474_v22 = vsel %vm466_vm0, %v6979_v14, 0  ;;  %v408_v23 = vld.sshfl [vmem:[#allocation1 + $0x28] sm:$0xff pattern:$0x75316420]  ;;  %v4668_v7 = vld [vmem:[#allocation2 + $0x170] sm:$0xf]  ;;  %v4605_v16 = vor.u32 %v6263_v6, %v4604_v5  ;;  %v4733_v6 = vor.u32 %v6295_v0, %v4732_v63 }
  0x2e   : > { %548 = vmatpush.bf16.msra.mxu2 %v474_v22  ;;  %v480_v25 = vsel %vm466_vm0, %v6990_v20, 0  ;;  %v477_v26 = vsel %vm466_vm0, %v6992_v21, 0  ;;  %413 = vst [vmem:[#allocation1 + $0x20] ss:$2 sm:$0xff] %v386_v13  ;;  %v7001_v27 = vpack.c.bf16 %v408_v23, %v408_v23  ;;  %v6279_v8 = vld [vmem:[#allocation2 + $0x174] sm:$0xf0] }
  0x2f   : > { %574 = vmatpush.bf16.msra.mxu0 %v480_v25  ;;  %v409_v29 = vld.sshfl [vmem:[#allocation1 + $0x30] sm:$0xff pattern:$0x75316420]  ;;  %v410_v30 = vld.sshfl [vmem:[#allocation1 + $0x38] sm:$0xff pattern:$0x75316420]  ;;  %v4669_v17 = vor.u32 %v6279_v8, %v4668_v7 }
  0x30   : > { %4466 = vmatmul.msk.bf16.vlgmr.msra.gmra.mxu3 %vm462_vm1, %v6988_v19  ;;  %4467 = vmatmul.msk.bf16.vlgmr.msra.gmra.mxu1 %vm462_vm1, %v6988_v19  ;;  %v483_v31 = vsel %vm466_vm0, %v7001_v27, 0  ;;  %v7012_v32 = vpack.c.bf16 %v409_v29, %v409_v29  ;;  %414 = vst [vmem:[#allocation1 + $0x30] ss:$2 sm:$0xff] %v387_v24  ;;  %v7014_v33 = vpack.c.bf16 %v410_v30, %v410_v30  ;;  %v4508_v13 = vld [vmem:[#allocation2 + $0x30] sm:$0xf] }
  0x31   : > { %561 = vmatpush.bf16.msrb.mxu3 %v477_v26  ;;  %4468 = vmatmul.msk.bf16.vlgmr.msra.gmra.mxu2 %vm462_vm1, %v6988_v19  ;;  %v415_v34 = vld.sshfl [vmem:[#allocation1] sm:$0xff pattern:$0x75316420]  ;;  %v416_v35 = vld.sshfl [vmem:[#allocation1 + $0x8] sm:$0xff pattern:$0x75316420] }
  0x32   : > { %587 = vmatpush.bf16.msrb.mxu1 %v483_v31  ;;  %4470 = vmatmul.msk.bf16.vlgmr.msra.gmra.mxu0 %vm462_vm1, %v6988_v19  ;;  %v486_v36 = vsel %vm466_vm0, %v7012_v32, 0  ;;  %v7022_v37 = vpack.c.bf16 %v415_v34, %v415_v34  ;;  %v7024_v38 = vpack.c.bf16 %v416_v35, %v416_v35  ;;  %2719 = vst [vmem:[#allocation1] ss:$2 sm:$0xff] %v2717_v28  ;;  %v489_v39 = vsel %vm466_vm0, %v7014_v33, 0  ;;  %v6239_v15 = vld [vmem:[#allocation2 + $0x34] sm:$0xf0] }
  0x33   : > { %600 = vmatpush.bf16.msrb.mxu2 %v486_v36  ;;  %v417_v40 = vld.sshfl [vmem:[#allocation1 + $0x10] sm:$0xff pattern:$0x75316420]  ;;  %v418_v54 = vld.sshfl [vmem:[#allocation1 + $0x18] sm:$0xff pattern:$0x75316420]  ;;  %v4509_v25 = vor.u32 %v6239_v15, %v4508_v13 }
  0x34   : > { %v492_v41 = vsel %vm466_vm0, %v7022_v37, 0  ;;  %v495_v42 = vsel %vm466_vm0, %v7024_v38, 0  ;;  %v7032_v43 = vpack.c.bf16 %v417_v40, %v417_v40  ;;  %v7044_v55 = vpack.c.bf16 %v418_v54, %v418_v54  ;;  %v4596_v18 = vld [vmem:[#allocation2 + $0xe0] sm:$0xf]  ;;  %v6261_v22 = vld [vmem:[#allocation2 + $0xe4] sm:$0xf0] }
  0x35   : > { %613 = vmatpush.bf16.msra.mxu3 %v489_v39  ;;  %626 = vmatpush.bf16.msrb.mxu0 %v492_v41  ;;  %v419_v44 = vld.sshfl [vmem:[#allocation1 + $0x20] sm:$0xff pattern:$0x75316420]  ;;  %v420_v47 = vld.sshfl [vmem:[#allocation1 + $0x28] sm:$0xff pattern:$0x75316420]  ;;  %v4597_v30 = vor.u32 %v6261_v22, %v4596_v18 }
  0x36   : > { %639 = vmatpush.bf16.msra.mxu1 %v495_v42  ;;  %v7034_v45 = vpack.c.bf16 %v419_v44, %v419_v44  ;;  %v498_v46 = vsel %vm466_vm0, %v7032_v43, 0  ;;  %v7040_v50 = vpack.c.bf16 %v420_v47, %v420_v47  ;;  %v501_v61 = vsel %vm466_vm0, %v7044_v55, 0  ;;  %v4660_v23 = vld [vmem:[#allocation2 + $0x160] sm:$0xf]  ;;  %v6277_v24 = vld [vmem:[#allocation2 + $0x164] sm:$0xf0] }
  0x37   : > { %652 = vmatpush.bf16.msra.mxu2 %v498_v46  ;;  %v421_v49 = vld.sshfl [vmem:[#allocation1 + $0x30] sm:$0xff pattern:$0x75316420]  ;;  %v422_v4 = vld.sshfl [vmem:[#allocation1 + $0x38] sm:$0xff pattern:$0x75316420]  ;;  %v4661_v31 = vor.u32 %v6277_v24, %v4660_v23 }
  0x38   : > { %v504_v48 = vsel %vm466_vm0, %v7034_v45, 0  ;;  %v7042_v52 = vpack.c.bf16 %v421_v49, %v421_v49  ;;  %v507_v56 = vsel %vm466_vm0, %v7040_v50, 0  ;;  %v7060_v12 = vpack.c.bf16 %v422_v4, %v422_v4  ;;  %v4500_v28 = vld [vmem:[#allocation2 + $0x20] sm:$0xf]  ;;  %v6237_v29 = vld [vmem:[#allocation2 + $0x24] sm:$0xf0] }
  0x39   : > { %678 = vmatpush.bf16.msra.mxu0 %v504_v48  ;;  %v4588_v34 = vld [vmem:[#allocation2 + $0xd0] sm:$0xf]  ;;  %v6259_v35 = vld [vmem:[#allocation2 + $0xd4] sm:$0xf0]  ;;  %v4501_v40 = vor.u32 %v6237_v29, %v4500_v28  ;;  %v4580_v47 = vld [vmem:[#allocation2 + $0xc0] sm:$0xf]  ;;  %v4797_v4 = vor.u32 %v6311_v60, %v4796_v59 }
  0x3a   : > { %v510_v58 = vsel %vm466_vm0, %v7042_v52, 0  ;;  %v513_v26 = vsel %vm466_vm0, %v7060_v12, 0  ;;  %v4652_v36 = vld [vmem:[#allocation2 + $0x150] sm:$0xf]  ;;  %v6275_v39 = vld [vmem:[#allocation2 + $0x154] sm:$0xf0]  ;;  %v4589_v44 = vor.u32 %v6259_v35, %v4588_v34 }
  0x3b   : > { %v4492_v41 = vld [vmem:[#allocation2 + $0x10] sm:$0xf]  ;;  %v6235_v42 = vld [vmem:[#allocation2 + $0x14] sm:$0xf0]  ;;  %v4653_v46 = vor.u32 %v6275_v39, %v4652_v36  ;;  %v6257_v48 = vld [vmem:[#allocation2 + $0xc4] sm:$0xf0] }
  0x3c   : > { %v4644_v49 = vld [vmem:[#allocation2 + $0x140] sm:$0xf]  ;;  %v4493_v53 = vor.u32 %v6235_v42, %v4492_v41  ;;  %v6271_v2 = vld [vmem:[#allocation2 + $0x134] sm:$0xf0]  ;;  %v6253_v15 = vld [vmem:[#allocation2 + $0xa4] sm:$0xf0] }
  0x3d   : > { %v4484_v54 = vld [vmem:[#allocation2] sm:$0xf]  ;;  %v6269_v22 = vld [vmem:[#allocation2 + $0x124] sm:$0xf0]  ;;  %v4780_v28 = vld [vmem:[#allocation2 + $0x250] sm:$0xf] }
  0x3e   : > { %v4564_v7 = vld [vmem:[#allocation2 + $0xa0] sm:$0xf]  ;;  %v6307_v29 = vld [vmem:[#allocation2 + $0x254] sm:$0xf0]  ;;  %v4716_v34 = vld [vmem:[#allocation2 + $0x1d0] sm:$0xf] }
  0x3f   : > { %v4788_v8 = vld [vmem:[#allocation2 + $0x260] sm:$0xf]  ;;  %v4565_v24 = vor.u32 %v6253_v15, %v4564_v7  ;;  %v6291_v35 = vld [vmem:[#allocation2 + $0x1d4] sm:$0xf0]  ;;  %v4620_v36 = vld [vmem:[#allocation2 + $0x110] sm:$0xf]  ;;  %v4781_v41 = vor.u32 %v6307_v29, %v4780_v28 }
  0x40   : > { %4469 = vmatmul.msk.bf16.vlgmr.msrb.gmra.mxu3 %vm462_vm1, %v6988_v19  ;;  %4471 = vmatmul.msk.bf16.vlgmr.msrb.gmra.mxu1 %vm462_vm1, %v6988_v19  ;;  %v4628_v18 = vld [vmem:[#allocation2 + $0x120] sm:$0xf]  ;;  %v6267_v39 = vld [vmem:[#allocation2 + $0x114] sm:$0xf0]  ;;  %v4924_v59 = vld [vmem:[#allocation2 + $0x370] sm:$0xf] }
  0x41   : > { %4472 = vmatmul.msk.bf16.vlgmr.msrb.gmra.mxu2 %vm462_vm1, %v6988_v19  ;;  %691 = vmatpush.bf16.msrb.mxu1 %v507_v56  ;;  %v6233_v56 = vld [vmem:[#allocation2 + $0x4] sm:$0xf0]  ;;  %v6343_v60 = vld [vmem:[#allocation2 + $0x374] sm:$0xf0]  ;;  %v4764_v0 = vld [vmem:[#allocation2 + $0x230] sm:$0xf] }
  0x42   : > { %4474 = vmatmul.msk.bf16.vlgmr.msrb.gmra.mxu0 %vm462_vm1, %v6988_v19  ;;  %704 = vmatpush.bf16.msrb.mxu2 %v510_v58  ;;  %v4572_v58 = vld [vmem:[#allocation2 + $0xb0] sm:$0xf]  ;;  %v4485_v3 = vor.u32 %v6233_v56, %v4484_v54  ;;  %v6289_v54 = vld [vmem:[#allocation2 + $0x1c4] sm:$0xf0]  ;;  %v4852_v7 = vld [vmem:[#allocation2 + $0x2e0] sm:$0xf] }
  0x43   : > { %2259 = vmatpush.bf16.msrb.mxu0 %v4541_v57  ;;  %665 = vmatpush.bf16.msrb.mxu3 %v501_v61  ;;  %v4581_v57 = vor.u32 %v6257_v48, %v4580_v47  ;;  %v4645_v61 = vor.u32 %v6273_v51, %v4644_v49  ;;  %v4772_v47 = vld [vmem:[#allocation2 + $0x240] sm:$0xf]  ;;  %v6305_v48 = vld [vmem:[#allocation2 + $0x244] sm:$0xf0]  ;;  %v4621_v49 = vor.u32 %v6267_v39, %v4620_v36  ;;  %v6323_v28 = vld [vmem:[#allocation2 + $0x2d4] sm:$0xf0] }
  0x44   : > { %v4612_v51 = vld [vmem:[#allocation2 + $0x100] sm:$0xf]  ;;  %v6265_v56 = vld [vmem:[#allocation2 + $0x104] sm:$0xf0]  ;;  %v4908_v29 = vld [vmem:[#allocation2 + $0x350] sm:$0xf] }
  0x45   : > { %v6299_v36 = vld [vmem:[#allocation2 + $0x214] sm:$0xf0] }
  0x47   : > { %2260 = vmatpush.bf16.msrb.mxu0 %v4533_v62  ;;  %v6255_v62 = vld [vmem:[#allocation2 + $0xb4] sm:$0xf0] }
  0x48   : > { %v4573_v5 = vor.u32 %v6255_v62, %v4572_v58  ;;  %v6327_v58 = vld [vmem:[#allocation2 + $0x2f4] sm:$0xf0] }
  0x4b   : > { %2261 = vmatpush.bf16.msrb.mxu0 %v4525_v1  ;;  %v4636_v1 = vld [vmem:[#allocation2 + $0x130] sm:$0xf] }
  0x4c   : > { %v4637_v13 = vor.u32 %v6271_v2, %v4636_v1  ;;  %v6303_v1 = vld [vmem:[#allocation2 + $0x234] sm:$0xf0]  ;;  %v4613_v2 = vor.u32 %v6265_v56, %v4612_v51  ;;  %v6297_v56 = vld [vmem:[#allocation2 + $0x204] sm:$0xf0] }
  0x4d   : > { %v4765_v15 = vor.u32 %v6303_v1, %v4764_v0  ;;  %v6359_v0 = vld [vmem:[#allocation2 + $0x3f4] sm:$0xf0]  ;;  %v4892_v1 = vld [vmem:[#allocation2 + $0x330] sm:$0xf] }
  0x4f   : > { %2262 = vmatpush.bf16.msrb.mxu0 %v4517_v9  ;;  %v6309_v9 = vld [vmem:[#allocation2 + $0x264] sm:$0xf0] }
  0x50   : > { %4473 = vmatmul.msk.bf16.vlgmr.msra.gmra.mxu3 %vm462_vm1, %v6988_v19  ;;  %4475 = vmatmul.msk.bf16.vlgmr.msra.gmra.mxu1 %vm462_vm1, %v6988_v19  ;;  %v4789_v23 = vor.u32 %v6309_v9, %v4788_v8  ;;  %v6325_v8 = vld [vmem:[#allocation2 + $0x2e4] sm:$0xf0]  ;;  %v4916_v9 = vld [vmem:[#allocation2 + $0x360] sm:$0xf] }
  0x51   : > { %4476 = vmatmul.msk.bf16.vlgmr.msra.gmra.mxu2 %vm462_vm1, %v6988_v19  ;;  %2272 = vmatpush.bf16.msra.mxu1 %v4605_v16  ;;  %v4724_v16 = vld [vmem:[#allocation2 + $0x1e0] sm:$0xf] }
  0x52   : > { %2285 = vmatpush.bf16.msra.mxu2 %v4669_v17  ;;  %717 = vmatpush.bf16.msra.mxu3 %v513_v26  ;;  %v6293_v17 = vld [vmem:[#allocation2 + $0x1e4] sm:$0xf0]  ;;  %v4556_v26 = vld [vmem:[#allocation2 + $0x90] sm:$0xf] }
  0x53   : > { %2263 = vmatpush.bf16.msrb.mxu0 %v4509_v25  ;;  %v4725_v25 = vor.u32 %v6293_v17, %v4724_v16  ;;  %v4756_v17 = vld [vmem:[#allocation2 + $0x220] sm:$0xf] }
  0x54   : > { %4478 = vmatmul.msk.bf16.vlgmr.msra.gmra.mxu0 %vm462_vm1, %v6988_v19 }
  0x55   : > { %2273 = vmatpush.bf16.msra.mxu1 %v4597_v30  ;;  %v4629_v30 = vor.u32 %v6269_v22, %v4628_v18  ;;  %v6301_v18 = vld [vmem:[#allocation2 + $0x224] sm:$0xf0]  ;;  %v4853_v22 = vor.u32 %v6325_v8, %v4852_v7  ;;  %v4820_v8 = vld [vmem:[#allocation2 + $0x2a0] sm:$0xf] }
  0x56   : > { %2286 = vmatpush.bf16.msra.mxu2 %v4661_v31  ;;  %v6251_v31 = vld [vmem:[#allocation2 + $0x94] sm:$0xf0] }
  0x57   : > { %2264 = vmatpush.bf16.msrb.mxu0 %v4501_v40  ;;  %v4548_v40 = vld [vmem:[#allocation2 + $0x80] sm:$0xf]  ;;  %v4557_v42 = vor.u32 %v6251_v31, %v4556_v26  ;;  %v4844_v26 = vld [vmem:[#allocation2 + $0x2d0] sm:$0xf]  ;;  %v4757_v31 = vor.u32 %v6301_v18, %v4756_v17  ;;  %v6357_v18 = vld [vmem:[#allocation2 + $0x3e4] sm:$0xf0] }
  0x58   : > { %v4845_v39 = vor.u32 %v6323_v28, %v4844_v26  ;;  %v4980_v17 = vld [vmem:[#allocation2 + $0x3e0] sm:$0xf]  ;;  %v4812_v28 = vld [vmem:[#allocation2 + $0x290] sm:$0xf] }
  0x59   : > { %2274 = vmatpush.bf16.msra.mxu1 %v4589_v44  ;;  %v4717_v44 = vor.u32 %v6291_v35, %v4716_v34  ;;  %v4748_v35 = vld [vmem:[#allocation2 + $0x210] sm:$0xf]  ;;  %v4981_v26 = vor.u32 %v6357_v18, %v4980_v17  ;;  %v5012_v17 = vld [vmem:[#allocation2 + $0x420] sm:$0xf]  ;;  %v6365_v18 = vld [vmem:[#allocation2 + $0x424] sm:$0xf0] }
  0x5a   : > { %2287 = vmatpush.bf16.msra.mxu2 %v4653_v46  ;;  %v6249_v46 = vld [vmem:[#allocation2 + $0x84] sm:$0xf0] }
  0x5b   : > { %2265 = vmatpush.bf16.msrb.mxu0 %v4493_v53  ;;  %v4708_v53 = vld [vmem:[#allocation2 + $0x1c0] sm:$0xf]  ;;  %v4549_v62 = vor.u32 %v6249_v46, %v4548_v40  ;;  %v4684_v40 = vld [vmem:[#allocation2 + $0x190] sm:$0xf]  ;;  %v6321_v46 = vld [vmem:[#allocation2 + $0x2c4] sm:$0xf0] }
  0x5c   : > { %v4709_v63 = vor.u32 %v6289_v54, %v4708_v53  ;;  %v6281_v53 = vld [vmem:[#allocation2 + $0x184] sm:$0xf0]  ;;  %v4740_v54 = vld [vmem:[#allocation2 + $0x200] sm:$0xf] }
  0x5d   : > { %2275 = vmatpush.bf16.msra.mxu1 %v4581_v57  ;;  %v4860_v57 = vld [vmem:[#allocation2 + $0x2f0] sm:$0xf] }
  0x5e   : > { %2288 = vmatpush.bf16.msra.mxu2 %v4645_v61  ;;  %v4773_v61 = vor.u32 %v6305_v48, %v4772_v47  ;;  %v4900_v47 = vld [vmem:[#allocation2 + $0x340] sm:$0xf] }
  0x5f   : > { %2266 = vmatpush.bf16.msrb.mxu0 %v4485_v3  ;;  %v4861_v3 = vor.u32 %v6327_v58, %v4860_v57  ;;  %v4676_v48 = vld [vmem:[#allocation2 + $0x180] sm:$0xf]  ;;  %v4828_v58 = vld [vmem:[#allocation2 + $0x2b0] sm:$0xf] }
  0x60   : > { %4477 = vmatmul.msk.bf16.vlgmr.msrb.gmra.mxu3 %vm462_vm1, %v6988_v19  ;;  %4479 = vmatmul.msk.bf16.vlgmr.msrb.gmra.mxu1 %vm462_vm1, %v6988_v19 }
  0x61   : > { %2276 = vmatpush.bf16.msra.mxu1 %v4573_v5  ;;  %2298 = vmatpush.bf16.msrb.mxu3 %v4733_v6  ;;  %v6287_v5 = vld [vmem:[#allocation2 + $0x1b4] sm:$0xf0]  ;;  %v4925_v6 = vor.u32 %v6343_v60, %v4924_v59  ;;  %v5052_v59 = vld [vmem:[#allocation2 + $0x470] sm:$0xf] }
  0x62   : > { %2289 = vmatpush.bf16.msra.mxu2 %v4637_v13  ;;  %v6341_v13 = vld [vmem:[#allocation2 + $0x364] sm:$0xf0]  ;;  %v6375_v60 = vld [vmem:[#allocation2 + $0x474] sm:$0xf0] }
  0x63   : > { %2311 = vmatpush.bf16.msra.mxu0 %v4797_v4  ;;  %4480 = vmatmul.msk.bf16.vlgmr.msrb.gmra.mxu2 %vm462_vm1, %v6988_v19  ;;  %v4700_v4 = vld [vmem:[#allocation2 + $0x1b0] sm:$0xf] }
  0x64   : > { %2267 = vmatmul.bf16.vlgmr.msrb.gmra.mxu0 %v6974_v10  ;;  %v4701_v16 = vor.u32 %v6287_v5, %v4700_v4  ;;  %v4677_v4 = vor.u32 %v6281_v53, %v4676_v48  ;;  %v5053_v5 = vor.u32 %v6375_v60, %v5052_v59  ;;  %v6369_v48 = vld [vmem:[#allocation2 + $0x444] sm:$0xf0]  ;;  %v4964_v53 = vld [vmem:[#allocation2 + $0x3c0] sm:$0xf]  ;;  %v5180_v59 = vld [vmem:[#allocation2 + $0x570] sm:$0xf] }
  0x65   : > { %2277 = vmatpush.bf16.msra.mxu1 %v4565_v24  ;;  %2299 = vmatpush.bf16.msrb.mxu3 %v4725_v25  ;;  %v6285_v24 = vld [vmem:[#allocation2 + $0x1a4] sm:$0xf0]  ;;  %v4917_v25 = vor.u32 %v6341_v13, %v4916_v9  ;;  %v5044_v9 = vld [vmem:[#allocation2 + $0x460] sm:$0xf]  ;;  %v6407_v60 = vld [vmem:[#allocation2 + $0x574] sm:$0xf0] }
  0x66   : > { %2290 = vmatpush.bf16.msra.mxu2 %v4629_v30  ;;  %v6339_v30 = vld [vmem:[#allocation2 + $0x354] sm:$0xf0]  ;;  %v6373_v13 = vld [vmem:[#allocation2 + $0x464] sm:$0xf0] }
  0x67   : > { %2312 = vmatpush.bf16.msra.mxu0 %v4789_v23  ;;  %v4692_v23 = vld [vmem:[#allocation2 + $0x1a0] sm:$0xf] }
  0x68   : > { %v4693_v34 = vor.u32 %v6285_v24, %v4692_v23  ;;  %v6333_v23 = vld [vmem:[#allocation2 + $0x324] sm:$0xf0]  ;;  %v5045_v24 = vor.u32 %v6373_v13, %v5044_v9  ;;  %v5172_v9 = vld [vmem:[#allocation2 + $0x560] sm:$0xf] }
  0x69   : > { %2278 = vmatpush.bf16.msra.mxu1 %v4557_v42  ;;  %2300 = vmatpush.bf16.msrb.mxu3 %v4717_v44  ;;  %v4909_v42 = vor.u32 %v6339_v30, %v4908_v29  ;;  %v4836_v44 = vld [vmem:[#allocation2 + $0x2c0] sm:$0xf]  ;;  %v5036_v29 = vld [vmem:[#allocation2 + $0x450] sm:$0xf]  ;;  %v6371_v30 = vld [vmem:[#allocation2 + $0x454] sm:$0xf0] }
  0x6a   : > { %2291 = vmatpush.bf16.msra.mxu2 %v4621_v49  ;;  %v4749_v49 = vor.u32 %v6299_v36, %v4748_v35  ;;  %v4837_v57 = vor.u32 %v6321_v46, %v4836_v44  ;;  %v4972_v35 = vld [vmem:[#allocation2 + $0x3d0] sm:$0xf]  ;;  %v6355_v36 = vld [vmem:[#allocation2 + $0x3d4] sm:$0xf0]  ;;  %v6405_v13 = vld [vmem:[#allocation2 + $0x564] sm:$0xf0] }
  0x6b   : > { %2313 = vmatpush.bf16.msra.mxu0 %v4781_v41  ;;  %v6283_v41 = vld [vmem:[#allocation2 + $0x194] sm:$0xf0]  ;;  %v4973_v46 = vor.u32 %v6355_v36, %v4972_v35  ;;  %v5004_v35 = vld [vmem:[#allocation2 + $0x410] sm:$0xf] }
  0x6c   : > { %v4685_v51 = vor.u32 %v6283_v41, %v4684_v40  ;;  %v6331_v40 = vld [vmem:[#allocation2 + $0x314] sm:$0xf0]  ;;  %v4804_v41 = vld [vmem:[#allocation2 + $0x280] sm:$0xf] }
  0x6d   : > { %2279 = vmatpush.bf16.msra.mxu1 %v4549_v62  ;;  %2301 = vmatpush.bf16.msrb.mxu3 %v4709_v63  ;;  %v6319_v62 = vld [vmem:[#allocation2 + $0x2b4] sm:$0xf0]  ;;  %v4988_v63 = vld [vmem:[#allocation2 + $0x3f0] sm:$0xf] }
  0x6e   : > { %2292 = vmatpush.bf16.msra.mxu2 %v4613_v2  ;;  %v6335_v2 = vld [vmem:[#allocation2 + $0x334] sm:$0xf0]  ;;  %v4989_v7 = vor.u32 %v6359_v0, %v4988_v63  ;;  %v5020_v0 = vld [vmem:[#allocation2 + $0x430] sm:$0xf] }
  0x6f   : > { %2314 = vmatpush.bf16.msra.mxu0 %v4773_v61  ;;  %v6363_v36 = vld [vmem:[#allocation2 + $0x414] sm:$0xf0] }
  0x70   : > { %4481 = vmatmul.msk.bf16.vlgmr.msra.gmra.mxu3 %vm462_vm1, %v6988_v19  ;;  %2280 = vmatmul.bf16.vlgmr.msra.gmra.mxu1 %v6976_v11  ;;  %v6337_v19 = vld [vmem:[#allocation2 + $0x344] sm:$0xf0] }
  0x71   : > { %2324 = vmatpush.bf16.msrb.mxu1 %v4861_v3  ;;  %2302 = vmatpush.bf16.msrb.mxu3 %v4701_v16  ;;  %v4901_v61 = vor.u32 %v6337_v19, %v4900_v47  ;;  %v4741_v3 = vor.u32 %v6297_v56, %v4740_v54  ;;  %v6317_v16 = vld [vmem:[#allocation2 + $0x2a4] sm:$0xf0]  ;;  %v5028_v19 = vld [vmem:[#allocation2 + $0x440] sm:$0xf] }
  0x72   : > { %2337 = vmatpush.bf16.msrb.mxu2 %v4925_v6  ;;  %v4829_v6 = vor.u32 %v6319_v62, %v4828_v58  ;;  %v6313_v47 = vld [vmem:[#allocation2 + $0x284] sm:$0xf0]  ;;  %v6391_v58 = vld [vmem:[#allocation2 + $0x4f4] sm:$0xf0] }
  0x73   : > { %2315 = vmatpush.bf16.msra.mxu0 %v4765_v15  ;;  %2293 = vmatmul.bf16.vlgmr.msra.gmra.mxu2 %v6979_v14  ;;  %v4893_v15 = vor.u32 %v6335_v2, %v4892_v1  ;;  %v6353_v54 = vld [vmem:[#allocation2 + $0x3c4] sm:$0xf0]  ;;  %v4805_v62 = vor.u32 %v6313_v47, %v4804_v41  ;;  %v6367_v1 = vld [vmem:[#allocation2 + $0x434] sm:$0xf0]  ;;  %v5156_v47 = vld [vmem:[#allocation2 + $0x540] sm:$0xf] }
  0x74   : > { %v6329_v56 = vld [vmem:[#allocation2 + $0x304] sm:$0xf0]  ;;  %v4965_v63 = vor.u32 %v6353_v54, %v4964_v53  ;;  %v6347_v41 = vld [vmem:[#allocation2 + $0x394] sm:$0xf0]  ;;  %v4996_v54 = vld [vmem:[#allocation2 + $0x400] sm:$0xf] }
  0x75   : > { %2325 = vmatpush.bf16.msrb.mxu1 %v4853_v22  ;;  %2303 = vmatpush.bf16.msrb.mxu3 %v4693_v34  ;;  %v4884_v22 = vld [vmem:[#allocation2 + $0x320] sm:$0xf]  ;;  %v6315_v34 = vld [vmem:[#allocation2 + $0x294] sm:$0xf0]  ;;  %v6345_v53 = vld [vmem:[#allocation2 + $0x384] sm:$0xf0] }
  0x76   : > { %2338 = vmatpush.bf16.msrb.mxu2 %v4917_v25  ;;  %v4821_v25 = vor.u32 %v6317_v16, %v4820_v8  ;;  %v4813_v44 = vor.u32 %v6315_v34, %v4812_v28  ;;  %v6389_v8 = vld [vmem:[#allocation2 + $0x4e4] sm:$0xf0]  ;;  %v6387_v28 = vld [vmem:[#allocation2 + $0x4d4] sm:$0xf0] }
  0x77   : > { %2316 = vmatpush.bf16.msra.mxu0 %v4757_v31  ;;  %v4885_v31 = vor.u32 %v6333_v23, %v4884_v22  ;;  %v4948_v23 = vld [vmem:[#allocation2 + $0x3a0] sm:$0xf] }
  0x79   : > { %2326 = vmatpush.bf16.msrb.mxu1 %v4845_v39  ;;  %2304 = vmatpush.bf16.msrb.mxu3 %v4685_v51  ;;  %v4876_v39 = vld [vmem:[#allocation2 + $0x310] sm:$0xf]  ;;  %v4868_v51 = vld [vmem:[#allocation2 + $0x300] sm:$0xf] }
  0x7a   : > { %2339 = vmatpush.bf16.msrb.mxu2 %v4909_v42  ;;  %v5037_v42 = vor.u32 %v6371_v30, %v5036_v29  ;;  %v4869_v2 = vor.u32 %v6329_v56, %v4868_v51  ;;  %v5164_v29 = vld [vmem:[#allocation2 + $0x550] sm:$0xf]  ;;  %v6403_v30 = vld [vmem:[#allocation2 + $0x554] sm:$0xf0]  ;;  %v6361_v56 = vld [vmem:[#allocation2 + $0x404] sm:$0xf0] }
  0x7b   : > { %2317 = vmatpush.bf16.msra.mxu0 %v4749_v49  ;;  %v4877_v49 = vor.u32 %v6331_v40, %v4876_v39  ;;  %v4940_v40 = vld [vmem:[#allocation2 + $0x390] sm:$0xf] }
  0x7c   : > { %v4941_v51 = vor.u32 %v6347_v41, %v4940_v40  ;;  %v6395_v40 = vld [vmem:[#allocation2 + $0x514] sm:$0xf0]  ;;  %v5060_v41 = vld [vmem:[#allocation2 + $0x480] sm:$0xf] }
  0x7d   : > { %2327 = vmatpush.bf16.msrb.mxu1 %v4837_v57  ;;  %2305 = vmatpush.bf16.msrb.mxu3 %v4677_v4  ;;  %v5116_v57 = vld [vmem:[#allocation2 + $0x4f0] sm:$0xf] }
  0x7e   : > { %2340 = vmatpush.bf16.msrb.mxu2 %v4901_v61  ;;  %v5029_v61 = vor.u32 %v6369_v48, %v5028_v19  ;;  %v4956_v4 = vld [vmem:[#allocation2 + $0x3b0] sm:$0xf]  ;;  %v6401_v19 = vld [vmem:[#allocation2 + $0x544] sm:$0xf0]  ;;  %v4932_v48 = vld [vmem:[#allocation2 + $0x380] sm:$0xf] }
  0x7f   : > { %2318 = vmatpush.bf16.msra.mxu0 %v4741_v3  ;;  %v5117_v3 = vor.u32 %v6391_v58, %v5116_v57  ;;  %v5084_v58 = vld [vmem:[#allocation2 + $0x4b0] sm:$0xf] }
  0x80   : > { %2306 = vmatmul.bf16.vlgmr.msrb.gmra.mxu3 %v6992_v21 }
  0x81   : > { %2328 = vmatpush.bf16.msrb.mxu1 %v4829_v6  ;;  %2350 = vmatpush.bf16.msra.mxu3 %v4989_v7  ;;  %v5181_v6 = vor.u32 %v6407_v60, %v5180_v59  ;;  %v5108_v7 = vld [vmem:[#allocation2 + $0x4e0] sm:$0xf]  ;;  %v5308_v59 = vld [vmem:[#allocation2 + $0x670] sm:$0xf]  ;;  %v6439_v60 = vld [vmem:[#allocation2 + $0x674] sm:$0xf0] }
  0x82   : > { %2341 = vmatpush.bf16.msrb.mxu2 %v4893_v15  ;;  %2319 = vmatmul.bf16.vlgmr.msra.gmra.mxu0 %v6990_v20  ;;  %v5021_v15 = vor.u32 %v6367_v1, %v5020_v0  ;;  %v5109_v22 = vor.u32 %v6389_v8, %v5108_v7  ;;  %v6423_v0 = vld [vmem:[#allocation2 + $0x5f4] sm:$0xf0]  ;;  %v5148_v1 = vld [vmem:[#allocation2 + $0x530] sm:$0xf]  ;;  %v5076_v8 = vld [vmem:[#allocation2 + $0x4a0] sm:$0xf] }
  0x83   : > { %2363 = vmatpush.bf16.msrb.mxu0 %v5053_v5  ;;  %v6351_v5 = vld [vmem:[#allocation2 + $0x3b4] sm:$0xf0] }
  0x84   : > { %v4957_v16 = vor.u32 %v6351_v5, %v4956_v4  ;;  %v4933_v4 = vor.u32 %v6345_v53, %v4932_v48  ;;  %v5309_v5 = vor.u32 %v6439_v60, %v5308_v59  ;;  %v6433_v48 = vld [vmem:[#allocation2 + $0x644] sm:$0xf0]  ;;  %v5220_v53 = vld [vmem:[#allocation2 + $0x5c0] sm:$0xf]  ;;  %v5436_v59 = vld [vmem:[#allocation2 + $0x770] sm:$0xf] }
  0x85   : > { %2329 = vmatpush.bf16.msrb.mxu1 %v4821_v25  ;;  %2351 = vmatpush.bf16.msra.mxu3 %v4981_v26  ;;  %v5173_v25 = vor.u32 %v6405_v13, %v5172_v9  ;;  %v5100_v26 = vld [vmem:[#allocation2 + $0x4d0] sm:$0xf]  ;;  %v5300_v9 = vld [vmem:[#allocation2 + $0x660] sm:$0xf]  ;;  %v6437_v13 = vld [vmem:[#allocation2 + $0x664] sm:$0xf0] }
  0x86   : > { %2342 = vmatpush.bf16.msrb.mxu2 %v4885_v31  ;;  %v5013_v31 = vor.u32 %v6365_v18, %v5012_v17  ;;  %v5101_v39 = vor.u32 %v6387_v28, %v5100_v26  ;;  %v5236_v17 = vld [vmem:[#allocation2 + $0x5e0] sm:$0xf]  ;;  %v6421_v18 = vld [vmem:[#allocation2 + $0x5e4] sm:$0xf0]  ;;  %v5068_v28 = vld [vmem:[#allocation2 + $0x490] sm:$0xf] }
  0x87   : > { %2364 = vmatpush.bf16.msrb.mxu0 %v5045_v24  ;;  %v6349_v24 = vld [vmem:[#allocation2 + $0x3a4] sm:$0xf0]  ;;  %v5237_v26 = vor.u32 %v6421_v18, %v5236_v17  ;;  %v6471_v60 = vld [vmem:[#allocation2 + $0x774] sm:$0xf0]  ;;  %v5268_v17 = vld [vmem:[#allocation2 + $0x620] sm:$0xf] }
  0x88   : > { %v4949_v34 = vor.u32 %v6349_v24, %v4948_v23  ;;  %v6397_v23 = vld [vmem:[#allocation2 + $0x524] sm:$0xf0]  ;;  %v5301_v24 = vor.u32 %v6437_v13, %v5300_v9  ;;  %v5428_v9 = vld [vmem:[#allocation2 + $0x760] sm:$0xf] }
  0x89   : > { %2330 = vmatpush.bf16.msrb.mxu1 %v4813_v44  ;;  %2352 = vmatpush.bf16.msra.mxu3 %v4973_v46  ;;  %v5092_v44 = vld [vmem:[#allocation2 + $0x4c0] sm:$0xf]  ;;  %v6385_v46 = vld [vmem:[#allocation2 + $0x4c4] sm:$0xf0] }
  0x8a   : > { %2343 = vmatpush.bf16.msrb.mxu2 %v4877_v49  ;;  %v5005_v49 = vor.u32 %v6363_v36, %v5004_v35  ;;  %v5093_v57 = vor.u32 %v6385_v46, %v5092_v44  ;;  %v5228_v35 = vld [vmem:[#allocation2 + $0x5d0] sm:$0xf]  ;;  %v6419_v36 = vld [vmem:[#allocation2 + $0x5d4] sm:$0xf0]  ;;  %v6469_v13 = vld [vmem:[#allocation2 + $0x764] sm:$0xf0] }
  0x8b   : > { %2365 = vmatpush.bf16.msrb.mxu0 %v5037_v42  ;;  %v5165_v42 = vor.u32 %v6403_v30, %v5164_v29  ;;  %v5292_v29 = vld [vmem:[#allocation2 + $0x650] sm:$0xf]  ;;  %v6435_v30 = vld [vmem:[#allocation2 + $0x654] sm:$0xf0]  ;;  %v5229_v46 = vor.u32 %v6419_v36, %v5228_v35  ;;  %v6429_v18 = vld [vmem:[#allocation2 + $0x624] sm:$0xf0] }
  0x8c   : > { %v5260_v35 = vld [vmem:[#allocation2 + $0x610] sm:$0xf]  ;;  %v6427_v36 = vld [vmem:[#allocation2 + $0x614] sm:$0xf0] }
  0x8d   : > { %2331 = vmatpush.bf16.msrb.mxu1 %v4805_v62  ;;  %2353 = vmatpush.bf16.msra.mxu3 %v4965_v63  ;;  %v6383_v62 = vld [vmem:[#allocation2 + $0x4b4] sm:$0xf0]  ;;  %v5244_v63 = vld [vmem:[#allocation2 + $0x5f0] sm:$0xf] }
  0x8e   : > { %2344 = vmatpush.bf16.msrb.mxu2 %v4869_v2  ;;  %v6399_v2 = vld [vmem:[#allocation2 + $0x534] sm:$0xf0]  ;;  %v5245_v7 = vor.u32 %v6423_v0, %v5244_v63  ;;  %v5276_v0 = vld [vmem:[#allocation2 + $0x630] sm:$0xf] }
  0x8f   : > { %2366 = vmatpush.bf16.msrb.mxu0 %v5029_v61  ;;  %v5157_v61 = vor.u32 %v6401_v19, %v5156_v47  ;;  %v6377_v47 = vld [vmem:[#allocation2 + $0x484] sm:$0xf0]  ;;  %v5284_v19 = vld [vmem:[#allocation2 + $0x640] sm:$0xf] }
  0x90   : > { %2332 = vmatmul.bf16.vlgmr.msrb.gmra.mxu1 %v7001_v27 }
  0x91   : > { %2376 = vmatpush.bf16.msra.mxu1 %v5117_v3  ;;  %2354 = vmatpush.bf16.msra.mxu3 %v4957_v16  ;;  %v4997_v3 = vor.u32 %v6361_v56, %v4996_v54  ;;  %v6381_v16 = vld [vmem:[#allocation2 + $0x4a4] sm:$0xf0] }
  0x92   : > { %2389 = vmatpush.bf16.msra.mxu2 %v5181_v6  ;;  %v5085_v6 = vor.u32 %v6383_v62, %v5084_v58  ;;  %v6417_v54 = vld [vmem:[#allocation2 + $0x5c4] sm:$0xf0]  ;;  %v6455_v58 = vld [vmem:[#allocation2 + $0x6f4] sm:$0xf0]  ;;  %v5061_v62 = vor.u32 %v6377_v47, %v5060_v41 }
  0x93   : > { %2367 = vmatpush.bf16.msrb.mxu0 %v5021_v15  ;;  %2345 = vmatmul.bf16.vlgmr.msrb.gmra.mxu2 %v7012_v32  ;;  %v5149_v15 = vor.u32 %v6399_v2, %v5148_v1  ;;  %v6393_v56 = vld [vmem:[#allocation2 + $0x504] sm:$0xf0]  ;;  %v5221_v63 = vor.u32 %v6417_v54, %v5220_v53  ;;  %v6431_v1 = vld [vmem:[#allocation2 + $0x634] sm:$0xf0] }
  0x94   : > { %v6411_v41 = vld [vmem:[#allocation2 + $0x594] sm:$0xf0]  ;;  %v6409_v54 = vld [vmem:[#allocation2 + $0x584] sm:$0xf0] }
  0x95   : > { %2377 = vmatpush.bf16.msra.mxu1 %v5109_v22  ;;  %2355 = vmatpush.bf16.msra.mxu3 %v4949_v34  ;;  %v5140_v22 = vld [vmem:[#allocation2 + $0x520] sm:$0xf]  ;;  %v6379_v34 = vld [vmem:[#allocation2 + $0x494] sm:$0xf0] }
  0x96   : > { %2390 = vmatpush.bf16.msra.mxu2 %v5173_v25  ;;  %v5077_v25 = vor.u32 %v6381_v16, %v5076_v8  ;;  %v5069_v44 = vor.u32 %v6379_v34, %v5068_v28  ;;  %v6453_v8 = vld [vmem:[#allocation2 + $0x6e4] sm:$0xf0]  ;;  %v6451_v28 = vld [vmem:[#allocation2 + $0x6d4] sm:$0xf0] }
  0x97   : > { %2368 = vmatpush.bf16.msrb.mxu0 %v5013_v31  ;;  %v5141_v31 = vor.u32 %v6397_v23, %v5140_v22  ;;  %v5204_v23 = vld [vmem:[#allocation2 + $0x5a0] sm:$0xf] }
  0x99   : > { %2378 = vmatpush.bf16.msra.mxu1 %v5101_v39  ;;  %2356 = vmatpush.bf16.msra.mxu3 %v4941_v51  ;;  %v5132_v39 = vld [vmem:[#allocation2 + $0x510] sm:$0xf]  ;;  %v5124_v51 = vld [vmem:[#allocation2 + $0x500] sm:$0xf] }
  0x9a   : > { %2391 = vmatpush.bf16.msra.mxu2 %v5165_v42  ;;  %v5293_v42 = vor.u32 %v6435_v30, %v5292_v29  ;;  %v5125_v2 = vor.u32 %v6393_v56, %v5124_v51  ;;  %v5420_v29 = vld [vmem:[#allocation2 + $0x750] sm:$0xf]  ;;  %v6467_v30 = vld [vmem:[#allocation2 + $0x754] sm:$0xf0]  ;;  %v5261_v51 = vor.u32 %v6427_v36, %v5260_v35  ;;  %v5252_v56 = vld [vmem:[#allocation2 + $0x600] sm:$0xf] }
  0x9b   : > { %2369 = vmatpush.bf16.msrb.mxu0 %v5005_v49  ;;  %v5133_v49 = vor.u32 %v6395_v40, %v5132_v39  ;;  %v5196_v40 = vld [vmem:[#allocation2 + $0x590] sm:$0xf] }
  0x9c   : > { %v5197_v53 = vor.u32 %v6411_v41, %v5196_v40  ;;  %v5324_v36 = vld [vmem:[#allocation2 + $0x690] sm:$0xf]  ;;  %v4526_v40 = vld [vmem:[#allocation2 + $0x58] sm:$0xf0] }
  0x9d   : > { %2379 = vmatpush.bf16.msra.mxu1 %v5093_v57  ;;  %2357 = vmatpush.bf16.msra.mxu3 %v4933_v4  ;;  %v5372_v57 = vld [vmem:[#allocation2 + $0x6f0] sm:$0xf] }
  0x9e   : > { %2392 = vmatpush.bf16.msra.mxu2 %v5157_v61  ;;  %v5285_v61 = vor.u32 %v6433_v48, %v5284_v19  ;;  %v5212_v4 = vld [vmem:[#allocation2 + $0x5b0] sm:$0xf]  ;;  %v5412_v19 = vld [vmem:[#allocation2 + $0x740] sm:$0xf]  ;;  %v6465_v48 = vld [vmem:[#allocation2 + $0x744] sm:$0xf0] }
  0x9f   : > { %2370 = vmatpush.bf16.msrb.mxu0 %v4997_v3  ;;  %v5373_v3 = vor.u32 %v6455_v58, %v5372_v57  ;;  %v6425_v57 = vld [vmem:[#allocation2 + $0x604] sm:$0xf0] }
  0xa0   : > { %2358 = vmatmul.bf16.vlgmr.msra.gmra.mxu3 %v7014_v33 }
  0xa1   : > { %2380 = vmatpush.bf16.msra.mxu1 %v5085_v6  ;;  %2402 = vmatpush.bf16.msrb.mxu3 %v5245_v7  ;;  %v5437_v6 = vor.u32 %v6471_v60, %v5436_v59  ;;  %v5364_v7 = vld [vmem:[#allocation2 + $0x6e0] sm:$0xf]  ;;  %v5340_v60 = vld [vmem:[#allocation2 + $0x6b0] sm:$0xf] }
  0xa2   : > { %2393 = vmatpush.bf16.msra.mxu2 %v5149_v15  ;;  %2371 = vmatmul.bf16.vlgmr.msrb.gmra.mxu0 %v7022_v37  ;;  %v5277_v15 = vor.u32 %v6431_v1, %v5276_v0  ;;  %v5365_v22 = vor.u32 %v6453_v8, %v5364_v7  ;;  %v6447_v0 = vld [vmem:[#allocation2 + $0x6b4] sm:$0xf0]  ;;  %v5500_v1 = vld [vmem:[#allocation2 + $0x7f0] sm:$0xf] }
  0xa3   : > { %2415 = vmatpush.bf16.msra.mxu0 %v5309_v5  ;;  %v6415_v5 = vld [vmem:[#allocation2 + $0x5b4] sm:$0xf0] }
  0xa4   : > { %v5213_v16 = vor.u32 %v6415_v5, %v5212_v4  ;;  %v6463_v4 = vld [vmem:[#allocation2 + $0x734] sm:$0xf0]  ;;  %v5253_v5 = vor.u32 %v6425_v57, %v5252_v56 }
  0xa5   : > { %2381 = vmatpush.bf16.msra.mxu1 %v5077_v25  ;;  %2403 = vmatpush.bf16.msrb.mxu3 %v5237_v26  ;;  %v5429_v25 = vor.u32 %v6469_v13, %v5428_v9  ;;  %v5356_v26 = vld [vmem:[#allocation2 + $0x6d0] sm:$0xf]  ;;  %v5341_v9 = vor.u32 %v6447_v0, %v5340_v60  ;;  %v6240_v60 = vld [vmem:[#allocation2 + $0x44] sm:$0xf]  ;;  %v5476_v0 = vld [vmem:[#allocation2 + $0x7c0] sm:$0xf] }
  0xa6   : > { %2394 = vmatpush.bf16.msra.mxu2 %v5141_v31  ;;  %v5269_v31 = vor.u32 %v6429_v18, %v5268_v17  ;;  %v5357_v39 = vor.u32 %v6451_v28, %v5356_v26  ;;  %v6244_v17 = vld [vmem:[#allocation2 + $0x64] sm:$0xf]  ;;  %v4534_v18 = vld [vmem:[#allocation2 + $0x68] sm:$0xf0]  ;;  %v5396_v28 = vld [vmem:[#allocation2 + $0x720] sm:$0xf] }
  0xa7   : > { %2416 = vmatpush.bf16.msra.mxu0 %v5301_v24  ;;  %v6413_v24 = vld [vmem:[#allocation2 + $0x5a4] sm:$0xf0] }
  0xa8   : > { %v5205_v34 = vor.u32 %v6413_v24, %v5204_v23  ;;  %v6445_v23 = vld [vmem:[#allocation2 + $0x6a4] sm:$0xf0]  ;;  %v5492_v24 = vld [vmem:[#allocation2 + $0x7e0] sm:$0xf] }
  0xa9   : > { %2382 = vmatpush.bf16.msra.mxu1 %v5069_v44  ;;  %2404 = vmatpush.bf16.msrb.mxu3 %v5229_v46  ;;  %v5348_v44 = vld [vmem:[#allocation2 + $0x6c0] sm:$0xf]  ;;  %v6449_v46 = vld [vmem:[#allocation2 + $0x6c4] sm:$0xf0] }
  0xaa   : > { %2395 = vmatpush.bf16.msra.mxu2 %v5133_v49  ;;  %v5188_v49 = vld [vmem:[#allocation2 + $0x580] sm:$0xf]  ;;  %v5349_v59 = vor.u32 %v6449_v46, %v5348_v44  ;;  %v5484_v44 = vld [vmem:[#allocation2 + $0x7d0] sm:$0xf]  ;;  %v6483_v46 = vld [vmem:[#allocation2 + $0x7d4] sm:$0xf0] }
  0xab   : > { %2417 = vmatpush.bf16.msra.mxu0 %v5293_v42  ;;  %v5421_v42 = vor.u32 %v6467_v30, %v5420_v29  ;;  %v5189_v7 = vor.u32 %v6409_v54, %v5188_v49  ;;  %v6461_v29 = vld [vmem:[#allocation2 + $0x724] sm:$0xf0]  ;;  %v4537_v30 = vor.u32 %v6244_v17, %v4534_v18  ;;  %v5485_v56 = vor.u32 %v6483_v46, %v5484_v44  ;;  %v6238_v18 = vld [vmem:[#allocation2 + $0x34] sm:$0xf]  ;;  %v5460_v46 = vld [vmem:[#allocation2 + $0x7a0] sm:$0xf] }
  0xac   : > { %v5397_v41 = vor.u32 %v6461_v29, %v5396_v28  ;;  %v6260_v29 = vld [vmem:[#allocation2 + $0xe4] sm:$0xf] }
  0xad   : > { %2383 = vmatpush.bf16.msra.mxu1 %v5061_v62  ;;  %2405 = vmatpush.bf16.msrb.mxu3 %v5221_v63  ;;  %v7091_v47 = vpop.f32.mrf.mxu1  ;;  %v4542_v62 = vld [vmem:[#allocation2 + $0x78] sm:$0xf0]  ;;  %v5413_v63 = vor.u32 %v6465_v48, %v5412_v19  ;;  %v5388_v19 = vld [vmem:[#allocation2 + $0x710] sm:$0xf]  ;;  %v6459_v48 = vld [vmem:[#allocation2 + $0x714] sm:$0xf0] }
  0xae   : > { %2396 = vmatpush.bf16.msra.mxu2 %v5125_v2  ;;  %v6487_v2 = vld [vmem:[#allocation2 + $0x7f4] sm:$0xf0] }
  0xaf   : > { %2418 = vmatpush.bf16.msra.mxu0 %v5285_v61  ;;  %v7093_v58 = vpop.f32.mrf.mxu0  ;;  %v6246_v61 = vld [vmem:[#allocation2 + $0x74] sm:$0xf]  ;;  %v5501_v13 = vor.u32 %v6487_v2, %v5500_v1  ;;  %v6481_v1 = vld [vmem:[#allocation2 + $0x7c4] sm:$0xf0] }
  0xb0   : > { %2384 = vmatmul.bf16.vlgmr.msra.gmra.mxu1 %v7024_v38  ;;  %v4545_v8 = vor.u32 %v6246_v61, %v4542_v62  ;;  %v4518_v61 = vld [vmem:[#allocation2 + $0x48] sm:$0xf0]  ;;  %v5389_v62 = vor.u32 %v6459_v48, %v5388_v19  ;;  %v5477_v17 = vor.u32 %v6481_v1, %v5476_v0  ;;  %v6477_v19 = vld [vmem:[#allocation2 + $0x7a4] sm:$0xf0]  ;;  %v5452_v0 = vld [vmem:[#allocation2 + $0x790] sm:$0xf] }
  0xb1   : > { %2428 = vmatpush.bf16.msrb.mxu1 %v5373_v3  ;;  %2397 = vmatmul.bf16.vlgmr.msra.gmra.mxu2 %v7032_v43  ;;  %v5404_v3 = vld [vmem:[#allocation2 + $0x730] sm:$0xf]  ;;  %v6475_v1 = vld [vmem:[#allocation2 + $0x794] sm:$0xf0] }
  0xb2   : > { %2441 = vmatpush.bf16.msrb.mxu2 %v5437_v6  ;;  %2406 = vmatpush.bf16.msrb.mxu3 %v5213_v16  ;;  %v5332_v16 = vld [vmem:[#allocation2 + $0x6a0] sm:$0xf] }
  0xb3   : > { %2419 = vmatpush.bf16.msra.mxu0 %v5277_v15  ;;  %v7095_v6 = vpop.f32.mrf.mxu3 }
  0xb4   : > { %v7097_v15 = vpop.f32.mrf.mxu2 }
  0xb5   : > { %2429 = vmatpush.bf16.msrb.mxu1 %v5365_v22  ;;  %v5405_v22 = vor.u32 %v6463_v4, %v5404_v3  ;;  %v539_v26 = vpop.f32.mrf.mxu1  ;;  %v6457_v3 = vld [vmem:[#allocation2 + $0x704] sm:$0xf0]  ;;  %v6262_v4 = vld [vmem:[#allocation2 + $0xf4] sm:$0xf] }
  0xb6   : > { %2442 = vmatpush.bf16.msrb.mxu2 %v5429_v25  ;;  %2407 = vmatpush.bf16.msrb.mxu3 %v5205_v34  ;;  %v6485_v25 = vld [vmem:[#allocation2 + $0x7e4] sm:$0xf0]  ;;  %v5333_v34 = vor.u32 %v6445_v23, %v5332_v16  ;;  %v6479_v26 = vld [vmem:[#allocation2 + $0x7b4] sm:$0xf0] }
  0xb7   : > { %2420 = vmatpush.bf16.msra.mxu0 %v5269_v31  ;;  %v578_v31 = vpop.f32.mrf.mxu0  ;;  %v5493_v35 = vor.u32 %v6485_v25, %v5492_v24  ;;  %v5468_v25 = vld [vmem:[#allocation2 + $0x7b0] sm:$0xf] }
  0xb9   : > { %2430 = vmatpush.bf16.msrb.mxu1 %v5357_v39  ;;  %v6242_v39 = vld [vmem:[#allocation2 + $0x54] sm:$0xf] }
  0xba   : > { %2443 = vmatpush.bf16.msrb.mxu2 %v5421_v42  ;;  %2408 = vmatpush.bf16.msrb.mxu3 %v5197_v53  ;;  %v6443_v42 = vld [vmem:[#allocation2 + $0x694] sm:$0xf0]  ;;  %v4529_v53 = vor.u32 %v6242_v39, %v4526_v40  ;;  %v5469_v39 = vor.u32 %v6479_v26, %v5468_v25  ;;  %v4486_v25 = vld [vmem:[#allocation2 + $0x8] sm:$0xf0] }
  0xbb   : > { %2421 = vmatpush.bf16.msra.mxu0 %v5261_v51  ;;  %v526_v49 = vpop.f32.mrf.mxu3  ;;  %v5316_v51 = vld [vmem:[#allocation2 + $0x680] sm:$0xf]  ;;  %v5325_v54 = vor.u32 %v6443_v42, %v5324_v36  ;;  %v4502_v42 = vld [vmem:[#allocation2 + $0x28] sm:$0xf0] }
  0xbc   : > { %v552_v57 = vpop.f32.mrf.mxu2 }
  0xbd   : > { %2431 = vmatpush.bf16.msrb.mxu1 %v5349_v59  ;;  %v6441_v59 = vld [vmem:[#allocation2 + $0x684] sm:$0xf0]  ;;  %v7101_v2 = vpop.f32.mrf.mxu1 }
  0xbe   : > { %2444 = vmatpush.bf16.msrb.mxu2 %v5413_v63  ;;  %2409 = vmatpush.bf16.msrb.mxu3 %v5189_v7  ;;  %v5380_v63 = vld [vmem:[#allocation2 + $0x700] sm:$0xf]  ;;  %v6278_v7 = vld [vmem:[#allocation2 + $0x174] sm:$0xf]  ;;  %v5317_v16 = vor.u32 %v6441_v59, %v5316_v51 }
  0xbf   : > { %2422 = vmatpush.bf16.msra.mxu0 %v5253_v5  ;;  %v4606_v5 = vld [vmem:[#allocation2 + $0xf8] sm:$0xf0]  ;;  %v5381_v23 = vor.u32 %v6457_v3, %v5380_v63  ;;  %v6258_v51 = vld [vmem:[#allocation2 + $0xd4] sm:$0xf] }
  0xc0   : > { %v4609_v24 = vor.u32 %v6262_v4, %v4606_v5  ;;  %v6256_v4 = vld [vmem:[#allocation2 + $0xc4] sm:$0xf]  ;;  %v4582_v5 = vld [vmem:[#allocation2 + $0xc8] sm:$0xf0] }
  0xc1   : > { %2432 = vmatpush.bf16.msrb.mxu1 %v5341_v9  ;;  %2410 = vmatmul.bf16.vlgmr.msrb.gmra.mxu3 %v7044_v55  ;;  %v4521_v9 = vor.u32 %v6240_v60, %v4518_v61  ;;  %v5461_v60 = vor.u32 %v6477_v19, %v5460_v46  ;;  %v6234_v61 = vld [vmem:[#allocation2 + $0x14] sm:$0xf]  ;;  %v4585_v26 = vor.u32 %v6256_v4, %v4582_v5 }
  0xc2   : > { %2454 = vmatpush.bf16.msra.mxu3 %v5501_v13  ;;  %2445 = vmatpush.bf16.msrb.mxu2 %v5405_v22  ;;  %v7103_v13 = vpop.f32.mrf.mxu0  ;;  %v4510_v22 = vld [vmem:[#allocation2 + $0x38] sm:$0xf0] }
  0xc3   : > { %2467 = vmatpush.bf16.msrb.mxu0 %v4545_v8  ;;  %v4670_v8 = vld [vmem:[#allocation2 + $0x178] sm:$0xf0]  ;;  %v7105_v31 = vpop.f32.mrf.mxu3  ;;  %v4513_v36 = vor.u32 %v6238_v18, %v4510_v22  ;;  %v5453_v18 = vor.u32 %v6475_v1, %v5452_v0  ;;  %v4630_v0 = vld [vmem:[#allocation2 + $0x128] sm:$0xf0] }
  0xc4   : > { %2423 = vmatmul.bf16.vlgmr.msra.gmra.mxu0 %v7034_v45  ;;  %v4673_v28 = vor.u32 %v6278_v7, %v4670_v8  ;;  %v7107_v40 = vpop.f32.mrf.mxu2  ;;  %v6272_v8 = vld [vmem:[#allocation2 + $0x144] sm:$0xf] }
  0xc5   : > { %2433 = vmatpush.bf16.msrb.mxu1 %v5333_v34  ;;  %v6276_v34 = vld [vmem:[#allocation2 + $0x164] sm:$0xf]  ;;  %v591_v48 = vpop.f32.mrf.mxu1 }
  0xc6   : > { %2455 = vmatpush.bf16.msra.mxu3 %v5493_v35  ;;  %2446 = vmatpush.bf16.msrb.mxu2 %v5397_v41  ;;  %v4662_v35 = vld [vmem:[#allocation2 + $0x168] sm:$0xf0]  ;;  %v6236_v41 = vld [vmem:[#allocation2 + $0x24] sm:$0xf] }
  0xc7   : > { %2468 = vmatpush.bf16.msrb.mxu0 %v4537_v30  ;;  %v4598_v30 = vld [vmem:[#allocation2 + $0xe8] sm:$0xf0]  ;;  %v4665_v49 = vor.u32 %v6276_v34, %v4662_v35  ;;  %v4505_v57 = vor.u32 %v6236_v41, %v4502_v42  ;;  %v4798_v34 = vld [vmem:[#allocation2 + $0x278] sm:$0xf0]  ;;  %v6270_v42 = vld [vmem:[#allocation2 + $0x134] sm:$0xf] }
  0xc8   : > { %v4601_v44 = vor.u32 %v6260_v29, %v4598_v30  ;;  %v6310_v30 = vld [vmem:[#allocation2 + $0x274] sm:$0xf]  ;;  %v4734_v41 = vld [vmem:[#allocation2 + $0x1f8] sm:$0xf0] }
  0xc9   : > { %2434 = vmatpush.bf16.msrb.mxu1 %v5325_v54  ;;  %v6274_v54 = vld [vmem:[#allocation2 + $0x154] sm:$0xf]  ;;  %v4801_v48 = vor.u32 %v6310_v30, %v4798_v34 }
  0xca   : > { %2456 = vmatpush.bf16.msra.mxu3 %v5485_v56  ;;  %2447 = vmatpush.bf16.msrb.mxu2 %v5389_v62  ;;  %v4654_v56 = vld [vmem:[#allocation2 + $0x158] sm:$0xf0]  ;;  %v630_v59 = vpop.f32.mrf.mxu0 }
  0xcb   : > { %2469 = vmatpush.bf16.msrb.mxu0 %v4529_v53  ;;  %v4590_v53 = vld [vmem:[#allocation2 + $0xd8] sm:$0xf0]  ;;  %v4657_v3 = vor.u32 %v6274_v54, %v4654_v56  ;;  %v565_v7 = vpop.f32.mrf.mxu3  ;;  %v6308_v54 = vld [vmem:[#allocation2 + $0x264] sm:$0xf]  ;;  %v4790_v56 = vld [vmem:[#allocation2 + $0x268] sm:$0xf0] }
  0xcc   : > { %v4494_v62 = vld [vmem:[#allocation2 + $0x18] sm:$0xf0]  ;;  %v4593_v63 = vor.u32 %v6258_v51, %v4590_v53  ;;  %v604_v22 = vpop.f32.mrf.mxu2  ;;  %v6252_v53 = vld [vmem:[#allocation2 + $0xa4] sm:$0xf]  ;;  %v4566_v59 = vld [vmem:[#allocation2 + $0xa8] sm:$0xf0]  ;;  %v4793_v4 = vor.u32 %v6308_v54, %v4790_v56 }
  0xcd   : > { %2435 = vmatpush.bf16.msrb.mxu1 %v5317_v16  ;;  %v5444_v16 = vld [vmem:[#allocation2 + $0x780] sm:$0xf]  ;;  %v7111_v29 = vpop.f32.mrf.mxu1  ;;  %v4569_v5 = vor.u32 %v6252_v53, %v4566_v59  ;;  %v4558_v22 = vld [vmem:[#allocation2 + $0x98] sm:$0xf0]  ;;  %v6342_v56 = vld [vmem:[#allocation2 + $0x374] sm:$0xf] }
  0xce   : > { %2457 = vmatpush.bf16.msra.mxu3 %v5477_v17  ;;  %2448 = vmatpush.bf16.msrb.mxu2 %v5381_v23  ;;  %v4497_v17 = vor.u32 %v6234_v61, %v4494_v62  ;;  %v6473_v23 = vld [vmem:[#allocation2 + $0x784] sm:$0xf0]  ;;  %v4726_v61 = vld [vmem:[#allocation2 + $0x1e8] sm:$0xf0] }
  0xcf   : > { %2470 = vmatpush.bf16.msrb.mxu0 %v4521_v9  ;;  %v4646_v9 = vld [vmem:[#allocation2 + $0x148] sm:$0xf0]  ;;  %v5445_v19 = vor.u32 %v6473_v23, %v5444_v16  ;;  %v6306_v16 = vld [vmem:[#allocation2 + $0x254] sm:$0xf] }
  0xd0   : > { %2436 = vmatmul.bf16.vlgmr.msrb.gmra.mxu1 %v7040_v50  ;;  %v4649_v35 = vor.u32 %v6272_v8, %v4646_v9  ;;  %v6250_v8 = vld [vmem:[#allocation2 + $0x94] sm:$0xf] }
  0xd1   : > { %2480 = vmatpush.bf16.msra.mxu1 %v4609_v24  ;;  %2449 = vmatmul.bf16.vlgmr.msrb.gmra.mxu2 %v7042_v52  ;;  %v6232_v24 = vld [vmem:[#allocation2 + $0x4] sm:$0xf]  ;;  %v6290_v23 = vld [vmem:[#allocation2 + $0x1d4] sm:$0xf]  ;;  %v4561_v34 = vor.u32 %v6250_v8, %v4558_v22  ;;  %v4702_v8 = vld [vmem:[#allocation2 + $0x1b8] sm:$0xf0] }
  0xd2   : > { %2493 = vmatpush.bf16.msra.mxu2 %v4673_v28  ;;  %2458 = vmatpush.bf16.msra.mxu3 %v5469_v39  ;;  %v6254_v28 = vld [vmem:[#allocation2 + $0xb4] sm:$0xf]  ;;  %v4489_v46 = vor.u32 %v6232_v24, %v4486_v25  ;;  %v7115_v1 = vpop.f32.mrf.mxu0  ;;  %v4718_v24 = vld [vmem:[#allocation2 + $0x1d8] sm:$0xf0]  ;;  %v6340_v22 = vld [vmem:[#allocation2 + $0x364] sm:$0xf] }
  0xd3   : > { %2471 = vmatpush.bf16.msrb.mxu0 %v4513_v36  ;;  %v4574_v36 = vld [vmem:[#allocation2 + $0xb8] sm:$0xf0]  ;;  %v6294_v39 = vld [vmem:[#allocation2 + $0x1f4] sm:$0xf]  ;;  %v7113_v62 = vpop.f32.mrf.mxu3 }
  0xd4   : > { %v4737_v51 = vor.u32 %v6294_v39, %v4734_v41  ;;  %v6266_v25 = vld [vmem:[#allocation2 + $0x114] sm:$0xf]  ;;  %v6304_v39 = vld [vmem:[#allocation2 + $0x244] sm:$0xf]  ;;  %v4774_v41 = vld [vmem:[#allocation2 + $0x248] sm:$0xf0] }
  0xd5   : > { %2481 = vmatpush.bf16.msra.mxu1 %v4601_v44  ;;  %v4638_v44 = vld [vmem:[#allocation2 + $0x138] sm:$0xf0]  ;;  %v643_v9 = vpop.f32.mrf.mxu1  ;;  %v4777_v59 = vor.u32 %v6304_v39, %v4774_v41  ;;  %v6322_v41 = vld [vmem:[#allocation2 + $0x2d4] sm:$0xf] }
  0xd6   : > { %2494 = vmatpush.bf16.msra.mxu2 %v4665_v49  ;;  %2459 = vmatpush.bf16.msra.mxu3 %v5461_v60  ;;  %v4577_v49 = vor.u32 %v6254_v28, %v4574_v36  ;;  %v6292_v60 = vld [vmem:[#allocation2 + $0x1e4] sm:$0xf]  ;;  %v4550_v36 = vld [vmem:[#allocation2 + $0x88] sm:$0xf0] }
  0xd7   : > { %2472 = vmatpush.bf16.msrb.mxu0 %v4505_v57  ;;  %v4641_v57 = vor.u32 %v6270_v42, %v4638_v44  ;;  %v4729_v7 = vor.u32 %v6292_v60, %v4726_v61  ;;  %v6248_v28 = vld [vmem:[#allocation2 + $0x84] sm:$0xf] }
  0xd8   : > { %v6264_v44 = vld [vmem:[#allocation2 + $0x104] sm:$0xf]  ;;  %v4553_v60 = vor.u32 %v6248_v28, %v4550_v36  ;;  %v4758_v28 = vld [vmem:[#allocation2 + $0x228] sm:$0xf0] }
  0xd9   : > { %2482 = vmatpush.bf16.msra.mxu1 %v4593_v63  ;;  %v6268_v63 = vld [vmem:[#allocation2 + $0x124] sm:$0xf] }
  0xda   : > { %2495 = vmatpush.bf16.msra.mxu2 %v4657_v3  ;;  %2460 = vmatpush.bf16.msra.mxu3 %v5453_v18  ;;  %v7117_v3 = vpop.f32.mrf.mxu2  ;;  %v4633_v18 = vor.u32 %v6268_v63, %v4630_v0  ;;  %v682_v53 = vpop.f32.mrf.mxu0  ;;  %v6302_v63 = vld [vmem:[#allocation2 + $0x234] sm:$0xf]  ;;  %v4766_v0 = vld [vmem:[#allocation2 + $0x238] sm:$0xf0] }
  0xdb   : > { %2473 = vmatpush.bf16.msrb.mxu0 %v4497_v17  ;;  %v4782_v17 = vld [vmem:[#allocation2 + $0x258] sm:$0xf0] }
  0xdc   : > { %v4785_v30 = vor.u32 %v6306_v16, %v4782_v17  ;;  %v6324_v16 = vld [vmem:[#allocation2 + $0x2e4] sm:$0xf]  ;;  %v4854_v17 = vld [vmem:[#allocation2 + $0x2e8] sm:$0xf0] }
  0xdd   : > { %2483 = vmatpush.bf16.msra.mxu1 %v4585_v26  ;;  %v4622_v26 = vld [vmem:[#allocation2 + $0x118] sm:$0xf0] }
  0xde   : > { %2496 = vmatpush.bf16.msra.mxu2 %v4649_v35  ;;  %2461 = vmatpush.bf16.msra.mxu3 %v5445_v19  ;;  %v4721_v35 = vor.u32 %v6290_v23, %v4718_v24  ;;  %v4625_v42 = vor.u32 %v6266_v25, %v4622_v26  ;;  %v4710_v19 = vld [vmem:[#allocation2 + $0x1c8] sm:$0xf0]  ;;  %v4769_v24 = vor.u32 %v6302_v63, %v4766_v0  ;;  %v6300_v26 = vld [vmem:[#allocation2 + $0x224] sm:$0xf] }
  0xdf   : > { %2474 = vmatpush.bf16.msrb.mxu0 %v4489_v46  ;;  %v6288_v46 = vld [vmem:[#allocation2 + $0x1c4] sm:$0xf]  ;;  %v4918_v23 = vld [vmem:[#allocation2 + $0x368] sm:$0xf0] }
  0xe0   : > { %v4713_v61 = vor.u32 %v6288_v46, %v4710_v19  ;;  %v4921_v39 = vor.u32 %v6340_v22, %v4918_v23  ;;  %v4910_v46 = vld [vmem:[#allocation2 + $0x358] sm:$0xf0]  ;;  %v4761_v19 = vor.u32 %v6300_v26, %v4758_v28  ;;  %v4902_v0 = vld [vmem:[#allocation2 + $0x348] sm:$0xf0]  ;;  %v6374_v22 = vld [vmem:[#allocation2 + $0x474] sm:$0xf] }
  0xe1   : > { %2484 = vmatpush.bf16.msra.mxu1 %v4577_v49  ;;  %2462 = vmatmul.bf16.vlgmr.msra.gmra.mxu3 %v7060_v12  ;;  %v6326_v49 = vld [vmem:[#allocation2 + $0x2f4] sm:$0xf]  ;;  %v5054_v23 = vld [vmem:[#allocation2 + $0x478] sm:$0xf0] }
  0xe2   : > { %2506 = vmatpush.bf16.msrb.mxu3 %v4737_v51  ;;  %2497 = vmatpush.bf16.msra.mxu2 %v4641_v57  ;;  %v4862_v51 = vld [vmem:[#allocation2 + $0x2f8] sm:$0xf0]  ;;  %v656_v54 = vpop.f32.mrf.mxu2  ;;  %v6358_v28 = vld [vmem:[#allocation2 + $0x3f4] sm:$0xf] }
  0xe3   : > { %2519 = vmatpush.bf16.msra.mxu0 %v4801_v48  ;;  %v4614_v48 = vld [vmem:[#allocation2 + $0x108] sm:$0xf0]  ;;  %v4926_v57 = vld [vmem:[#allocation2 + $0x378] sm:$0xf0]  ;;  %v6282_v54 = vld [vmem:[#allocation2 + $0x194] sm:$0xf] }
  0xe4   : > { %2475 = vmatmul.bf16.vlgmr.msrb.gmra.mxu0 %v6974_v10  ;;  %v617_v10 = vpop.f32.mrf.mxu3  ;;  %v4929_v9 = vor.u32 %v6342_v56, %v4926_v57  ;;  %v4686_v56 = vld [vmem:[#allocation2 + $0x198] sm:$0xf0] }
  0xe5   : > { %2485 = vmatpush.bf16.msra.mxu1 %v4569_v5  ;;  %v4865_v5 = vor.u32 %v6326_v49, %v4862_v51  ;;  %v7126_v10 = vpop.f32.mrf.mxu0  ;;  %v6298_v49 = vld [vmem:[#allocation2 + $0x214] sm:$0xf]  ;;  %v4750_v51 = vld [vmem:[#allocation2 + $0x218] sm:$0xf0] }
  0xe6   : > { %2507 = vmatpush.bf16.msrb.mxu3 %v4729_v7  ;;  %2498 = vmatpush.bf16.msra.mxu2 %v4633_v18  ;;  %v6286_v7 = vld [vmem:[#allocation2 + $0x1b4] sm:$0xf]  ;;  %v7121_v18 = vpop.f32.mrf.mxu1  ;;  %v4830_v26 = vld [vmem:[#allocation2 + $0x2b8] sm:$0xf0] }
  0xe7   : > { %2520 = vmatpush.bf16.msra.mxu0 %v4793_v4  ;;  %v4617_v4 = vor.u32 %v6264_v44, %v4614_v48  ;;  %v4705_v25 = vor.u32 %v6286_v7, %v4702_v8  ;;  %v6338_v44 = vld [vmem:[#allocation2 + $0x354] sm:$0xf]  ;;  %v4689_v7 = vor.u32 %v6282_v54, %v4686_v56  ;;  %v4678_v8 = vld [vmem:[#allocation2 + $0x188] sm:$0xf0] }
  0xe8   : > { %v4822_v56 = vld [vmem:[#allocation2 + $0x2a8] sm:$0xf0] }
  0xe9   : > { %2486 = vmatpush.bf16.msra.mxu1 %v4561_v34  ;;  %v6284_v34 = vld [vmem:[#allocation2 + $0x1a4] sm:$0xf] }
  0xea   : > { %2508 = vmatpush.bf16.msrb.mxu3 %v4721_v35  ;;  %2499 = vmatpush.bf16.msra.mxu2 %v4625_v42  ;;  %v4694_v35 = vld [vmem:[#allocation2 + $0x1a8] sm:$0xf0]  ;;  %v4846_v42 = vld [vmem:[#allocation2 + $0x2d8] sm:$0xf0]  ;;  %v7129_v57 = vpop.f32.mrf.mxu2 }
  0xeb   : > { %2521 = vmatpush.bf16.msra.mxu0 %v4785_v30  ;;  %v4857_v30 = vor.u32 %v6324_v16, %v4854_v17  ;;  %v4697_v48 = vor.u32 %v6284_v34, %v4694_v35  ;;  %v4849_v53 = vor.u32 %v6322_v41, %v4846_v42  ;;  %v6318_v17 = vld [vmem:[#allocation2 + $0x2b4] sm:$0xf]  ;;  %v4894_v35 = vld [vmem:[#allocation2 + $0x338] sm:$0xf0] }
  0xec   : > { %v7123_v36 = vpop.f32.mrf.mxu3  ;;  %v6334_v34 = vld [vmem:[#allocation2 + $0x334] sm:$0xf] }
  0xed   : > { %2487 = vmatpush.bf16.msra.mxu1 %v4553_v60  ;;  %v6320_v60 = vld [vmem:[#allocation2 + $0x2c4] sm:$0xf]  ;;  %v2270_v41 = vpop.f32.mrf.mxu0  ;;  %v4897_v54 = vor.u32 %v6334_v34, %v4894_v35  ;;  %v4806_v35 = vld [vmem:[#allocation2 + $0x288] sm:$0xf0] }
  0xee   : > { %2509 = vmatpush.bf16.msrb.mxu3 %v4713_v61  ;;  %2500 = vmatpush.bf16.msra.mxu2 %v4617_v4  ;;  %v4838_v61 = vld [vmem:[#allocation2 + $0x2c8] sm:$0xf0]  ;;  %v695_v63 = vpop.f32.mrf.mxu1  ;;  %v6280_v4 = vld [vmem:[#allocation2 + $0x184] sm:$0xf] }
  0xef   : > { %2522 = vmatpush.bf16.msra.mxu0 %v4777_v59  ;;  %v4913_v59 = vor.u32 %v6338_v44, %v4910_v46  ;;  %v4841_v16 = vor.u32 %v6320_v60, %v4838_v61  ;;  %v4681_v42 = vor.u32 %v6280_v4, %v4678_v8  ;;  %v5057_v44 = vor.u32 %v6374_v22, %v5054_v23  ;;  %v4982_v60 = vld [vmem:[#allocation2 + $0x3e8] sm:$0xf0]  ;;  %v6332_v61 = vld [vmem:[#allocation2 + $0x324] sm:$0xf]  ;;  %v6314_v8 = vld [vmem:[#allocation2 + $0x294] sm:$0xf] }
  0xf0   : > { %2488 = vmatmul.bf16.vlgmr.msra.gmra.mxu1 %v6976_v11  ;;  %v6336_v11 = vld [vmem:[#allocation2 + $0x344] sm:$0xf]  ;;  %v4833_v46 = vor.u32 %v6318_v17, %v4830_v26  ;;  %v4886_v63 = vld [vmem:[#allocation2 + $0x328] sm:$0xf0]  ;;  %v4814_v22 = vld [vmem:[#allocation2 + $0x298] sm:$0xf0] }
  0xf1   : > { %2532 = vmatpush.bf16.msrb.mxu1 %v4865_v5  ;;  %2501 = vmatmul.bf16.vlgmr.msra.gmra.mxu2 %v6979_v14  ;;  %v4753_v5 = vor.u32 %v6298_v49, %v4750_v51  ;;  %v6296_v14 = vld [vmem:[#allocation2 + $0x204] sm:$0xf]  ;;  %v5046_v51 = vld [vmem:[#allocation2 + $0x468] sm:$0xf0]  ;;  %v6354_v23 = vld [vmem:[#allocation2 + $0x3d4] sm:$0xf] }
  0xf2   : > { %2545 = vmatpush.bf16.msrb.mxu2 %v4929_v9  ;;  %2510 = vmatpush.bf16.msrb.mxu3 %v4705_v25  ;;  %v4742_v9 = vld [vmem:[#allocation2 + $0x208] sm:$0xf0]  ;;  %v4905_v25 = vor.u32 %v6336_v11, %v4902_v0  ;;  %v6372_v49 = vld [vmem:[#allocation2 + $0x464] sm:$0xf]  ;;  %v4878_v26 = vld [vmem:[#allocation2 + $0x318] sm:$0xf0] }
  0xf3   : > { %2523 = vmatpush.bf16.msra.mxu0 %v4769_v24  ;;  %v5049_v0 = vor.u32 %v6372_v49, %v5046_v51  ;;  %v5030_v41 = vld [vmem:[#allocation2 + $0x448] sm:$0xf0]  ;;  %v6390_v49 = vld [vmem:[#allocation2 + $0x4f4] sm:$0xf]  ;;  %v5118_v51 = vld [vmem:[#allocation2 + $0x4f8] sm:$0xf0] }
  0xf4   : > { %v669_v24 = vpop.f32.mrf.mxu3 }
  0xf5   : > { %2533 = vmatpush.bf16.msrb.mxu1 %v4857_v30  ;;  %v4990_v30 = vld [vmem:[#allocation2 + $0x3f8] sm:$0xf0] }
  0xf6   : > { %2546 = vmatpush.bf16.msrb.mxu2 %v4921_v39  ;;  %2511 = vmatpush.bf16.msrb.mxu3 %v4697_v48  ;;  %v4745_v39 = vor.u32 %v6296_v14, %v4742_v9  ;;  %v6316_v48 = vld [vmem:[#allocation2 + $0x2a4] sm:$0xf]  ;;  %v2281_v11 = vpop.f32.mrf.mxu1  ;;  %v6370_v14 = vld [vmem:[#allocation2 + $0x454] sm:$0xf]  ;;  %v5038_v9 = vld [vmem:[#allocation2 + $0x458] sm:$0xf0] }
  0xf7   : > { %2524 = vmatpush.bf16.msra.mxu0 %v4761_v19  ;;  %v4993_v19 = vor.u32 %v6358_v28, %v4990_v30  ;;  %v2282_v4 = vadd.f32 %v2281_v11, %v7126_v10  ;;  %v4974_v24 = vld [vmem:[#allocation2 + $0x3d8] sm:$0xf0]  ;;  %v6312_v10 = vld [vmem:[#allocation2 + $0x284] sm:$0xf]  ;;  %v5041_v28 = vor.u32 %v6370_v14, %v5038_v9  ;;  %v4817_v30 = vor.u32 %v6314_v8, %v4814_v22  ;;  %v6350_v8 = vld [vmem:[#allocation2 + $0x3b4] sm:$0xf] }
  0xf8   : > { %v4977_v34 = vor.u32 %v6354_v23, %v4974_v24  ;;  %v5022_v11 = vld [vmem:[#allocation2 + $0x438] sm:$0xf0]  ;;  %v6404_v23 = vld [vmem:[#allocation2 + $0x564] sm:$0xf]  ;;  %v5174_v24 = vld [vmem:[#allocation2 + $0x568] sm:$0xf0] }
  0xf9   : > { %2534 = vmatpush.bf16.msrb.mxu1 %v4849_v53  ;;  %v708_v53 = vpop.f32.mrf.mxu2  ;;  %v4958_v14 = vld [vmem:[#allocation2 + $0x3b8] sm:$0xf0] }
  0xfa   : > { %2547 = vmatpush.bf16.msrb.mxu2 %v4913_v59  ;;  %2512 = vmatpush.bf16.msrb.mxu3 %v4689_v7  ;;  %v6356_v59 = vld [vmem:[#allocation2 + $0x3e4] sm:$0xf] }
  0xfb   : > { %2525 = vmatpush.bf16.msra.mxu0 %v4753_v5  ;;  %v4825_v5 = vor.u32 %v6316_v48, %v4822_v56  ;;  %v4985_v7 = vor.u32 %v6356_v59, %v4982_v60  ;;  %v4870_v48 = vld [vmem:[#allocation2 + $0x308] sm:$0xf0]  ;;  %v5182_v56 = vld [vmem:[#allocation2 + $0x578] sm:$0xf0]  ;;  %v4809_v60 = vor.u32 %v6312_v10, %v4806_v35  ;;  %v6364_v10 = vld [vmem:[#allocation2 + $0x424] sm:$0xf] }
  0xfc   : > { %v7132_v17 = vpop.f32.mrf.mxu3  ;;  %v4950_v35 = vld [vmem:[#allocation2 + $0x3a8] sm:$0xf0] }
  0xfd   : > { %2535 = vmatpush.bf16.msrb.mxu1 %v4841_v16  ;;  %v4889_v16 = vor.u32 %v6332_v61, %v4886_v63  ;;  %v6366_v63 = vld [vmem:[#allocation2 + $0x434] sm:$0xf] }
  0xfe   : > { %2548 = vmatpush.bf16.msrb.mxu2 %v4905_v25  ;;  %2513 = vmatpush.bf16.msrb.mxu3 %v4681_v42  ;;  %v6330_v25 = vld [vmem:[#allocation2 + $0x314] sm:$0xf]  ;;  %v2283_v53 = vpop.f32.mrf.mxu1 }
  0xff   : > { %2526 = vmatpush.bf16.msra.mxu0 %v4745_v39  ;;  %v6368_v39 = vld [vmem:[#allocation2 + $0x444] sm:$0xf]  ;;  %v4881_v42 = vor.u32 %v6330_v25, %v4878_v26  ;;  %v2320_v22 = vpop.f32.mrf.mxu0  ;;  %v5025_v25 = vor.u32 %v6366_v63, %v5022_v11  ;;  %v4961_v26 = vor.u32 %v6350_v8, %v4958_v14  ;;  %v5094_v63 = vld [vmem:[#allocation2 + $0x4c8] sm:$0xf0] }
 0x100   : > { %v5033_v59 = vor.u32 %v6368_v39, %v5030_v41  ;;  %v5177_v41 = vor.u32 %v6404_v23, %v5174_v24  ;;  %v4934_v14 = vld [vmem:[#allocation2 + $0x388] sm:$0xf0]  ;;  %v6382_v24 = vld [vmem:[#allocation2 + $0x4b4] sm:$0xf] }
 0x101   : > { %2536 = vmatpush.bf16.msrb.mxu1 %v4833_v46  ;;  %2514 = vmatmul.bf16.vlgmr.msrb.gmra.mxu3 %v6992_v21  ;;  %v6352_v46 = vld [vmem:[#allocation2 + $0x3c4] sm:$0xf] }
 0x102   : > { %2558 = vmatpush.bf16.msra.mxu3 %v4993_v19  ;;  %2549 = vmatpush.bf16.msrb.mxu2 %v4897_v54  ;;  %v4966_v19 = vld [vmem:[#allocation2 + $0x3c8] sm:$0xf0]  ;;  %v6406_v54 = vld [vmem:[#allocation2 + $0x574] sm:$0xf] }
 0x103   : > { %2571 = vmatpush.bf16.msrb.mxu0 %v5057_v44  ;;  %v6328_v44 = vld [vmem:[#allocation2 + $0x304] sm:$0xf]  ;;  %v4969_v61 = vor.u32 %v6352_v46, %v4966_v19  ;;  %v5185_v9 = vor.u32 %v6406_v54, %v5182_v56  ;;  %v6402_v46 = vld [vmem:[#allocation2 + $0x554] sm:$0xf]  ;;  %v5166_v19 = vld [vmem:[#allocation2 + $0x558] sm:$0xf0] }
 0x104   : > { %2527 = vmatmul.bf16.vlgmr.msra.gmra.mxu0 %v6990_v20  ;;  %v2294_v20 = vpop.f32.mrf.mxu2  ;;  %v6346_v54 = vld [vmem:[#allocation2 + $0x394] sm:$0xf]  ;;  %v4942_v56 = vld [vmem:[#allocation2 + $0x398] sm:$0xf0] }
 0x105   : > { %2537 = vmatpush.bf16.msrb.mxu1 %v4825_v5  ;;  %v2295_v21 = vadd.f32 %v2294_v20, %v2282_v4  ;;  %v5121_v5 = vor.u32 %v6390_v49, %v5118_v51  ;;  %v5110_v4 = vld [vmem:[#allocation2 + $0x4e8] sm:$0xf0]  ;;  %v6362_v49 = vld [vmem:[#allocation2 + $0x414] sm:$0xf]  ;;  %v5006_v51 = vld [vmem:[#allocation2 + $0x418] sm:$0xf0] }
 0x106   : > { %2559 = vmatpush.bf16.msra.mxu3 %v4985_v7  ;;  %2550 = vmatpush.bf16.msrb.mxu2 %v4889_v16  ;;  %v721_v7 = vpop.f32.mrf.mxu3  ;;  %v6388_v16 = vld [vmem:[#allocation2 + $0x4e4] sm:$0xf]  ;;  %v5009_v8 = vor.u32 %v6362_v49, %v5006_v51 }
 0x107   : > { %2572 = vmatpush.bf16.msrb.mxu0 %v5049_v0  ;;  %v4873_v0 = vor.u32 %v6328_v44, %v4870_v48  ;;  %v5102_v44 = vld [vmem:[#allocation2 + $0x4d8] sm:$0xf0]  ;;  %v5158_v7 = vld [vmem:[#allocation2 + $0x548] sm:$0xf0] }
 0x109   : > { %2538 = vmatpush.bf16.msrb.mxu1 %v4817_v30  ;;  %v5113_v30 = vor.u32 %v6388_v16, %v5110_v4  ;;  %v6360_v16 = vld [vmem:[#allocation2 + $0x404] sm:$0xf]  ;;  %v4998_v4 = vld [vmem:[#allocation2 + $0x408] sm:$0xf0] }
 0x10a   : > { %2560 = vmatpush.bf16.msra.mxu3 %v4977_v34  ;;  %2551 = vmatpush.bf16.msrb.mxu2 %v4881_v42  ;;  %v6348_v34 = vld [vmem:[#allocation2 + $0x3a4] sm:$0xf]  ;;  %v6386_v42 = vld [vmem:[#allocation2 + $0x4d4] sm:$0xf] }
 0x10b   : > { %2573 = vmatpush.bf16.msrb.mxu0 %v5041_v28  ;;  %v5014_v28 = vld [vmem:[#allocation2 + $0x428] sm:$0xf0]  ;;  %v4953_v48 = vor.u32 %v6348_v34, %v4950_v35  ;;  %v5105_v53 = vor.u32 %v6386_v42, %v5102_v44  ;;  %v6398_v34 = vld [vmem:[#allocation2 + $0x534] sm:$0xf]  ;;  %v5150_v35 = vld [vmem:[#allocation2 + $0x538] sm:$0xf0] }
 0x10c   : > { %v2296_v39 = vpop.f32.mrf.mxu2  ;;  %v5017_v20 = vor.u32 %v6364_v10, %v5014_v28  ;;  %v5086_v10 = vld [vmem:[#allocation2 + $0x4b8] sm:$0xf0]  ;;  %v6422_v28 = vld [vmem:[#allocation2 + $0x5f4] sm:$0xf]  ;;  %v5153_v51 = vor.u32 %v6398_v34, %v5150_v35  ;;  %v5286_v34 = vld [vmem:[#allocation2 + $0x648] sm:$0xf0] }
 0x10d   : > { %2539 = vmatpush.bf16.msrb.mxu1 %v4809_v60  ;;  %v5169_v60 = vor.u32 %v6402_v46, %v5166_v19  ;;  %v5001_v39 = vor.u32 %v6360_v16, %v4998_v4  ;;  %v7140_v42 = vpop.f32.mrf.mxu1  ;;  %v5089_v44 = vor.u32 %v6382_v24, %v5086_v10  ;;  %v6380_v19 = vld [vmem:[#allocation2 + $0x4a4] sm:$0xf]  ;;  %v6394_v16 = vld [vmem:[#allocation2 + $0x514] sm:$0xf]  ;;  %v5134_v4 = vld [vmem:[#allocation2 + $0x518] sm:$0xf0] }
 0x10e   : > { %2561 = vmatpush.bf16.msra.mxu3 %v4969_v61  ;;  %2552 = vmatpush.bf16.msrb.mxu2 %v4873_v0  ;;  %v6384_v61 = vld [vmem:[#allocation2 + $0x4c4] sm:$0xf]  ;;  %v2322_v0 = vpop.f32.mrf.mxu0  ;;  %v5137_v35 = vor.u32 %v6394_v16, %v5134_v4  ;;  %v5270_v16 = vld [vmem:[#allocation2 + $0x628] sm:$0xf0] }
 0x10f   : > { %2574 = vmatpush.bf16.msrb.mxu0 %v5033_v59  ;;  %v2307_v59 = vpop.f32.mrf.mxu3  ;;  %v5097_v23 = vor.u32 %v6384_v61, %v5094_v63  ;;  %v6378_v0 = vld [vmem:[#allocation2 + $0x494] sm:$0xf]  ;;  %v6376_v24 = vld [vmem:[#allocation2 + $0x484] sm:$0xf] }
 0x110   : > { %2540 = vmatmul.bf16.vlgmr.msrb.gmra.mxu1 %v7001_v27  ;;  %v2308_v11 = vadd.f32 %v2307_v59, %v2295_v21  ;;  %v6344_v27 = vld [vmem:[#allocation2 + $0x384] sm:$0xf] }
 0x111   : > { %2584 = vmatpush.bf16.msra.mxu1 %v5121_v5  ;;  %2553 = vmatmul.bf16.vlgmr.msrb.gmra.mxu2 %v7012_v32  ;;  %v6400_v5 = vld [vmem:[#allocation2 + $0x544] sm:$0xf]  ;;  %v4945_v32 = vor.u32 %v6346_v54, %v4942_v56  ;;  %v5238_v56 = vld [vmem:[#allocation2 + $0x5e8] sm:$0xf0] }
 0x112   : > { %2597 = vmatpush.bf16.msra.mxu2 %v5185_v9  ;;  %2562 = vmatpush.bf16.msra.mxu3 %v4961_v26  ;;  %v7138_v9 = vadd.f32 %v2320_v22, %v2308_v11  ;;  %v5310_v26 = vld [vmem:[#allocation2 + $0x678] sm:$0xf0]  ;;  %v5161_v21 = vor.u32 %v6400_v5, %v5158_v7  ;;  %v6420_v54 = vld [vmem:[#allocation2 + $0x5e4] sm:$0xf]  ;;  %v6434_v5 = vld [vmem:[#allocation2 + $0x654] sm:$0xf] }
 0x113   : > { %2575 = vmatpush.bf16.msrb.mxu0 %v5025_v25  ;;  %v6438_v25 = vld [vmem:[#allocation2 + $0x674] sm:$0xf]  ;;  %v6396_v59 = vld [vmem:[#allocation2 + $0x524] sm:$0xf]  ;;  %v5241_v11 = vor.u32 %v6420_v54, %v5238_v56  ;;  %v5294_v7 = vld [vmem:[#allocation2 + $0x658] sm:$0xf0] }
 0x114   : > { %v5313_v22 = vor.u32 %v6438_v25, %v5310_v26  ;;  %v5297_v25 = vor.u32 %v6434_v5, %v5294_v7  ;;  %v6468_v7 = vld [vmem:[#allocation2 + $0x764] sm:$0xf] }
 0x115   : > { %2585 = vmatpush.bf16.msra.mxu1 %v5113_v30  ;;  %v5246_v30 = vld [vmem:[#allocation2 + $0x5f8] sm:$0xf0]  ;;  %v2335_v26 = vpop.f32.mrf.mxu1 }
 0x116   : > { %2598 = vmatpush.bf16.msra.mxu2 %v5177_v41  ;;  %2563 = vmatpush.bf16.msra.mxu3 %v4953_v48  ;;  %v4937_v41 = vor.u32 %v6344_v27, %v4934_v14  ;;  %v5249_v46 = vor.u32 %v6422_v28, %v5246_v30  ;;  %v5302_v48 = vld [vmem:[#allocation2 + $0x668] sm:$0xf0]  ;;  %v5230_v14 = vld [vmem:[#allocation2 + $0x5d8] sm:$0xf0]  ;;  %v6432_v30 = vld [vmem:[#allocation2 + $0x644] sm:$0xf] }
 0x117   : > { %2576 = vmatpush.bf16.msrb.mxu0 %v5017_v20  ;;  %v6436_v20 = vld [vmem:[#allocation2 + $0x664] sm:$0xf]  ;;  %v2309_v49 = vpop.f32.mrf.mxu3  ;;  %v5062_v28 = vld [vmem:[#allocation2 + $0x488] sm:$0xf0] }
 0x118   : > { %v5305_v61 = vor.u32 %v6436_v20, %v5302_v48  ;;  %v5289_v20 = vor.u32 %v6432_v30, %v5286_v34  ;;  %v5065_v48 = vor.u32 %v6376_v24, %v5062_v28  ;;  %v6412_v24 = vld [vmem:[#allocation2 + $0x5a4] sm:$0xf]  ;;  %v6466_v28 = vld [vmem:[#allocation2 + $0x754] sm:$0xf]  ;;  %v5422_v30 = vld [vmem:[#allocation2 + $0x758] sm:$0xf0] }
 0x119   : > { %2586 = vmatpush.bf16.msra.mxu1 %v5105_v53  ;;  %v5078_v53 = vld [vmem:[#allocation2 + $0x4a8] sm:$0xf0] }
 0x11a   : > { %2599 = vmatpush.bf16.msra.mxu2 %v5169_v60  ;;  %2564 = vmatpush.bf16.msra.mxu3 %v4945_v32  ;;  %v5142_v60 = vld [vmem:[#allocation2 + $0x528] sm:$0xf0]  ;;  %v5081_v63 = vor.u32 %v6380_v19, %v5078_v53  ;;  %v6418_v32 = vld [vmem:[#allocation2 + $0x5d4] sm:$0xf]  ;;  %v5438_v19 = vld [vmem:[#allocation2 + $0x778] sm:$0xf0] }
 0x11b   : > { %2577 = vmatpush.bf16.msrb.mxu0 %v5009_v8  ;;  %v5145_v27 = vor.u32 %v6396_v59, %v5142_v60  ;;  %v5070_v8 = vld [vmem:[#allocation2 + $0x498] sm:$0xf0]  ;;  %v5233_v10 = vor.u32 %v6418_v32, %v5230_v14  ;;  %v6414_v59 = vld [vmem:[#allocation2 + $0x5b4] sm:$0xf]  ;;  %v6428_v14 = vld [vmem:[#allocation2 + $0x624] sm:$0xf] }
 0x11c   : > { %v5278_v53 = vld [vmem:[#allocation2 + $0x638] sm:$0xf0]  ;;  %v5273_v34 = vor.u32 %v6428_v14, %v5270_v16 }
 0x11d   : > { %2587 = vmatpush.bf16.msra.mxu1 %v5097_v23  ;;  %v7144_v23 = vpop.f32.mrf.mxu2  ;;  %v5214_v60 = vld [vmem:[#allocation2 + $0x5b8] sm:$0xf0] }
 0x11e   : > { %2600 = vmatpush.bf16.msra.mxu2 %v5161_v21  ;;  %2565 = vmatpush.bf16.msra.mxu3 %v4937_v41  ;;  %v5073_v21 = vor.u32 %v6378_v0, %v5070_v8  ;;  %v5126_v41 = vld [vmem:[#allocation2 + $0x508] sm:$0xf0]  ;;  %v5217_v32 = vor.u32 %v6414_v59, %v5214_v60  ;;  %v6408_v59 = vld [vmem:[#allocation2 + $0x584] sm:$0xf] }
 0x11f   : > { %2578 = vmatpush.bf16.msrb.mxu0 %v5001_v39  ;;  %v6416_v39 = vld [vmem:[#allocation2 + $0x5c4] sm:$0xf]  ;;  %v7146_v5 = vpop.f32.mrf.mxu0  ;;  %v5190_v60 = vld [vmem:[#allocation2 + $0x588] sm:$0xf0] }
 0x120   : > { %v5193_v16 = vor.u32 %v6408_v59, %v5190_v60  ;;  %v6480_v59 = vld [vmem:[#allocation2 + $0x7c4] sm:$0xf]  ;;  %v5478_v60 = vld [vmem:[#allocation2 + $0x7c8] sm:$0xf0] }
 0x121   : > { %2588 = vmatpush.bf16.msra.mxu1 %v5089_v44  ;;  %2566 = vmatmul.bf16.vlgmr.msra.gmra.mxu3 %v7014_v33  ;;  %v5222_v33 = vld [vmem:[#allocation2 + $0x5c8] sm:$0xf0]  ;;  %v5374_v44 = vld [vmem:[#allocation2 + $0x6f8] sm:$0xf0] }
 0x122   : > { %2610 = vmatpush.bf16.msrb.mxu3 %v5249_v46  ;;  %2601 = vmatpush.bf16.msra.mxu2 %v5153_v51  ;;  %v6470_v46 = vld [vmem:[#allocation2 + $0x774] sm:$0xf]  ;;  %v5225_v49 = vor.u32 %v6416_v39, %v5222_v33  ;;  %v5262_v39 = vld [vmem:[#allocation2 + $0x618] sm:$0xf0] }
 0x123   : > { %2623 = vmatpush.bf16.msra.mxu0 %v5313_v22  ;;  %v6454_v22 = vld [vmem:[#allocation2 + $0x6f4] sm:$0xf]  ;;  %v7150_v33 = vpop.f32.mrf.mxu3 }
 0x124   : > { %2579 = vmatmul.bf16.vlgmr.msrb.gmra.mxu0 %v7022_v37  ;;  %v6392_v37 = vld [vmem:[#allocation2 + $0x504] sm:$0xf]  ;;  %v6430_v51 = vld [vmem:[#allocation2 + $0x634] sm:$0xf]  ;;  %v5377_v56 = vor.u32 %v6454_v22, %v5374_v44  ;;  %v5198_v44 = vld [vmem:[#allocation2 + $0x598] sm:$0xf0] }
 0x125   : > { %2589 = vmatpush.bf16.msra.mxu1 %v5081_v63  ;;  %v5129_v54 = vor.u32 %v6392_v37, %v5126_v41  ;;  %v6452_v63 = vld [vmem:[#allocation2 + $0x6e4] sm:$0xf]  ;;  %v2348_v0 = vpop.f32.mrf.mxu2  ;;  %v5281_v8 = vor.u32 %v6430_v51, %v5278_v53  ;;  %v6426_v37 = vld [vmem:[#allocation2 + $0x614] sm:$0xf] }
 0x126   : > { %2611 = vmatpush.bf16.msrb.mxu3 %v5241_v11  ;;  %2602 = vmatpush.bf16.msra.mxu2 %v5145_v27  ;;  %v5366_v11 = vld [vmem:[#allocation2 + $0x6e8] sm:$0xf0]  ;;  %v6410_v22 = vld [vmem:[#allocation2 + $0x594] sm:$0xf]  ;;  %v5265_v51 = vor.u32 %v6426_v37, %v5262_v39  ;;  %v6424_v53 = vld [vmem:[#allocation2 + $0x604] sm:$0xf] }
 0x127   : > { %2624 = vmatpush.bf16.msra.mxu0 %v5305_v61  ;;  %v5441_v61 = vor.u32 %v6470_v46, %v5438_v19  ;;  %v5430_v27 = vld [vmem:[#allocation2 + $0x768] sm:$0xf0]  ;;  %v5369_v4 = vor.u32 %v6452_v63, %v5366_v11  ;;  %v5425_v46 = vor.u32 %v6466_v28, %v5422_v30  ;;  %v6448_v19 = vld [vmem:[#allocation2 + $0x6c4] sm:$0xf]  ;;  %v5342_v11 = vld [vmem:[#allocation2 + $0x6b8] sm:$0xf0] }
 0x128   : > { %v5433_v26 = vor.u32 %v6468_v7, %v5430_v27  ;;  %v6486_v0 = vld [vmem:[#allocation2 + $0x7f4] sm:$0xf]  ;;  %v5502_v7 = vld [vmem:[#allocation2 + $0x7f8] sm:$0xf0]  ;;  %v6484_v28 = vld [vmem:[#allocation2 + $0x7e4] sm:$0xf] }
 0x129   : > { %2590 = vmatpush.bf16.msra.mxu1 %v5073_v21  ;;  %v6450_v21 = vld [vmem:[#allocation2 + $0x6d4] sm:$0xf]  ;;  %v5494_v30 = vld [vmem:[#allocation2 + $0x7e8] sm:$0xf0] }
 0x12a   : > { %2612 = vmatpush.bf16.msrb.mxu3 %v5233_v10  ;;  %2603 = vmatpush.bf16.msra.mxu2 %v5137_v35  ;;  %v5358_v10 = vld [vmem:[#allocation2 + $0x6d8] sm:$0xf0]  ;;  %v6462_v27 = vld [vmem:[#allocation2 + $0x734] sm:$0xf]  ;;  %v5497_v39 = vor.u32 %v6484_v28, %v5494_v30 }
 0x12b   : > { %2625 = vmatpush.bf16.msra.mxu0 %v5297_v25  ;;  %v5206_v25 = vld [vmem:[#allocation2 + $0x5a8] sm:$0xf0]  ;;  %v5361_v41 = vor.u32 %v6450_v21, %v5358_v10 }
 0x12c   : > { %v5209_v35 = vor.u32 %v6412_v24, %v5206_v25  ;;  %v5505_v24 = vor.u32 %v6486_v0, %v5502_v7  ;;  %v6444_v25 = vld [vmem:[#allocation2 + $0x6a4] sm:$0xf]  ;;  %v5334_v10 = vld [vmem:[#allocation2 + $0x6a8] sm:$0xf0]  ;;  %v6478_v0 = vld [vmem:[#allocation2 + $0x7b4] sm:$0xf] }
 0x12d   : > { %2591 = vmatpush.bf16.msra.mxu1 %v5065_v48  ;;  %v6464_v48 = vld [vmem:[#allocation2 + $0x744] sm:$0xf]  ;;  %v7152_v14 = vpop.f32.mrf.mxu1  ;;  %v5337_v37 = vor.u32 %v6444_v25, %v5334_v10  ;;  %v5470_v7 = vld [vmem:[#allocation2 + $0x7b8] sm:$0xf0]  ;;  %v2334_v25 = vadd.f32 %v7140_v42, %v7138_v9 }
 0x12e   : > { %2613 = vmatpush.bf16.msrb.mxu3 %v5225_v49  ;;  %2604 = vmatpush.bf16.msra.mxu2 %v5129_v54  ;;  %v5414_v49 = vld [vmem:[#allocation2 + $0x748] sm:$0xf0]  ;;  %v5454_v10 = vld [vmem:[#allocation2 + $0x798] sm:$0xf0] }
 0x12f   : > { %2626 = vmatpush.bf16.msra.mxu0 %v5289_v20  ;;  %v2374_v20 = vpop.f32.mrf.mxu0  ;;  %v5254_v54 = vld [vmem:[#allocation2 + $0x608] sm:$0xf0]  ;;  %v5417_v63 = vor.u32 %v6464_v48, %v5414_v49  ;;  %v5390_v48 = vld [vmem:[#allocation2 + $0x718] sm:$0xf0] }
 0x130   : > { %2592 = vmatmul.bf16.vlgmr.msra.gmra.mxu1 %v7024_v38  ;;  %v5350_v38 = vld [vmem:[#allocation2 + $0x6c8] sm:$0xf0]  ;;  %v6458_v20 = vld [vmem:[#allocation2 + $0x714] sm:$0xf] }
 0x131   : > { %2636 = vmatpush.bf16.msrb.mxu1 %v5377_v56  ;;  %2605 = vmatmul.bf16.vlgmr.msra.gmra.mxu2 %v7032_v43  ;;  %v5201_v43 = vor.u32 %v6410_v22, %v5198_v44  ;;  %v5353_v56 = vor.u32 %v6448_v19, %v5350_v38  ;;  %v5326_v44 = vld [vmem:[#allocation2 + $0x698] sm:$0xf0] }
 0x132   : > { %2649 = vmatpush.bf16.msrb.mxu2 %v5441_v61  ;;  %2614 = vmatpush.bf16.msrb.mxu3 %v5217_v32  ;;  %v6446_v61 = vld [vmem:[#allocation2 + $0x6b4] sm:$0xf]  ;;  %v5257_v32 = vor.u32 %v6424_v53, %v5254_v54  ;;  %v5486_v19 = vld [vmem:[#allocation2 + $0x7d8] sm:$0xf0]  ;;  %v6440_v53 = vld [vmem:[#allocation2 + $0x684] sm:$0xf]  ;;  %v5393_v54 = vor.u32 %v6458_v20, %v5390_v48 }
 0x133   : > { %2627 = vmatpush.bf16.msra.mxu0 %v5281_v8  ;;  %v5406_v8 = vld [vmem:[#allocation2 + $0x738] sm:$0xf0] }
 0x134   : > { %v5409_v21 = vor.u32 %v6462_v27, %v5406_v8  ;;  %v2398_v38 = vpop.f32.mrf.mxu2 }
 0x135   : > { %2637 = vmatpush.bf16.msrb.mxu1 %v5369_v4  ;;  %v5345_v4 = vor.u32 %v6446_v61, %v5342_v11  ;;  %v2387_v49 = vpop.f32.mrf.mxu1  ;;  %v6456_v61 = vld [vmem:[#allocation2 + $0x704] sm:$0xf]  ;;  %v5481_v11 = vor.u32 %v6480_v59, %v5478_v60 }
 0x136   : > { %2650 = vmatpush.bf16.msrb.mxu2 %v5433_v26  ;;  %2615 = vmatpush.bf16.msrb.mxu3 %v5209_v35  ;;  %v2361_v26 = vpop.f32.mrf.mxu3  ;;  %v5398_v35 = vld [vmem:[#allocation2 + $0x728] sm:$0xf0] }
 0x137   : > { %2628 = vmatpush.bf16.msra.mxu0 %v5273_v34  ;;  %v6460_v34 = vld [vmem:[#allocation2 + $0x724] sm:$0xf] }
 0x138   : > { %v5401_v22 = vor.u32 %v6460_v34, %v5398_v35  ;;  %v2347_v34 = vadd.f32 %v7144_v23, %v2334_v25  ;;  %v6472_v35 = vld [vmem:[#allocation2 + $0x784] sm:$0xf] }
 0x139   : > { %2638 = vmatpush.bf16.msrb.mxu1 %v5361_v41  ;;  %v6442_v41 = vld [vmem:[#allocation2 + $0x694] sm:$0xf] }
 0x13a   : > { %2651 = vmatpush.bf16.msrb.mxu2 %v5425_v46  ;;  %2616 = vmatpush.bf16.msrb.mxu3 %v5201_v43  ;;  %v6482_v46 = vld [vmem:[#allocation2 + $0x7d4] sm:$0xf] }
 0x13b   : > { %2629 = vmatpush.bf16.msra.mxu0 %v5265_v51  ;;  %v5329_v51 = vor.u32 %v6442_v41, %v5326_v44  ;;  %v5489_v43 = vor.u32 %v6482_v46, %v5486_v19 }
 0x13c   : > { %v2400_v8 = vpop.f32.mrf.mxu2 }
 0x13d   : > { %2639 = vmatpush.bf16.msrb.mxu1 %v5353_v56  ;;  %v5318_v56 = vld [vmem:[#allocation2 + $0x688] sm:$0xf0] }
 0x13e   : > { %2652 = vmatpush.bf16.msrb.mxu2 %v5417_v63  ;;  %2617 = vmatpush.bf16.msrb.mxu3 %v5193_v16  ;;  %v5382_v63 = vld [vmem:[#allocation2 + $0x708] sm:$0xf0]  ;;  %v6476_v16 = vld [vmem:[#allocation2 + $0x7a4] sm:$0xf] }
 0x13f   : > { %2630 = vmatpush.bf16.msra.mxu0 %v5257_v32  ;;  %v5473_v32 = vor.u32 %v6478_v0, %v5470_v7 }
 0x141   : > { %2640 = vmatpush.bf16.msrb.mxu1 %v5345_v4  ;;  %2618 = vmatmul.bf16.vlgmr.msrb.gmra.mxu3 %v7044_v55  ;;  %v5385_v55 = vor.u32 %v6456_v61, %v5382_v63  ;;  %v2424_v27 = vpop.f32.mrf.mxu0  ;;  %v5462_v4 = vld [vmem:[#allocation2 + $0x7a8] sm:$0xf0] }
 0x142   : > { %2662 = vmatpush.bf16.msra.mxu3 %v5505_v24  ;;  %2653 = vmatpush.bf16.msrb.mxu2 %v5409_v21  ;;  %v5465_v24 = vor.u32 %v6476_v16, %v5462_v4  ;;  %v6474_v21 = vld [vmem:[#allocation2 + $0x794] sm:$0xf] }
 0x143   : > { %2631 = vmatmul.bf16.vlgmr.msra.gmra.mxu0 %v7034_v45  ;;  %v5321_v45 = vor.u32 %v6440_v53, %v5318_v56  ;;  %v5457_v30 = vor.u32 %v6474_v21, %v5454_v10 }
 0x144   : > { %v2411_v26 = vpop.f32.mrf.mxu3 }
 0x145   : > { %2641 = vmatpush.bf16.msrb.mxu1 %v5337_v37  ;;  %v5446_v37 = vld [vmem:[#allocation2 + $0x788] sm:$0xf0] }
 0x146   : > { %2663 = vmatpush.bf16.msra.mxu3 %v5497_v39  ;;  %2654 = vmatpush.bf16.msrb.mxu2 %v5401_v22 }
 0x149   : > { %2642 = vmatpush.bf16.msrb.mxu1 %v5329_v51  ;;  %v2426_v28 = vpop.f32.mrf.mxu0 }
 0x14a   : > { %2664 = vmatpush.bf16.msra.mxu3 %v5489_v43  ;;  %2655 = vmatpush.bf16.msrb.mxu2 %v5393_v54 }
 0x14c   : > { %v2413_v41 = vpop.f32.mrf.mxu3 }
 0x14d   : > { %2643 = vmatpush.bf16.msrb.mxu1 %v5321_v45  ;;  %v2437_v39 = vpop.f32.mrf.mxu1 }
 0x14e   : > { %2665 = vmatpush.bf16.msra.mxu3 %v5481_v11  ;;  %2656 = vmatpush.bf16.msrb.mxu2 %v5385_v55 }
 0x150   : > { %2644 = vmatmul.bf16.vlgmr.msrb.gmra.mxu1 %v7040_v50  ;;  %v5449_v50 = vor.u32 %v6472_v35, %v5446_v37 }
 0x151   : > { %2657 = vmatmul.bf16.vlgmr.msrb.gmra.mxu2 %v7042_v52  ;;  %v2360_v52 = vadd.f32 %v7150_v33, %v2347_v34 }
 0x152   : > { %2666 = vmatpush.bf16.msra.mxu3 %v5473_v32 }
 0x153   : > { %v2373_v22 = vadd.f32 %v7146_v5, %v2360_v52 }
 0x154   : > { %v2450_v9 = vpop.f32.mrf.mxu2 }
 0x155   : > { %v2439_v42 = vpop.f32.mrf.mxu1  ;;  %v2386_v44 = vadd.f32 %v7152_v14, %v2373_v22 }
 0x156   : > { %2667 = vmatpush.bf16.msra.mxu3 %v5465_v24  ;;  %v2675_v24 = vld [vmem:[%s7332_s1] sm:$0x3] }
 0x157   : > { %v2399_v46 = vadd.f32 %v2398_v38, %v2386_v44 }
 0x159   : > { %v2412_v19 = vadd.f32 %v2411_v26, %v2399_v46 }
 0x15a   : > { %2668 = vmatpush.bf16.msra.mxu3 %v5457_v30 }
 0x15b   : > { %v2425_v48 = vadd.f32 %v2424_v27, %v2412_v19 }
 0x15c   : > { %v2452_v23 = vpop.f32.mrf.mxu2 }
 0x15d   : > { %v2438_v49 = vadd.f32 %v2437_v39, %v2425_v48 }
 0x15e   : > { %2669 = vmatpush.bf16.msra.mxu3 %v5449_v50 }
 0x15f   : > { %v2451_v51 = vadd.f32 %v2450_v9, %v2438_v49 }
 0x161   : > { %2670 = vmatmul.bf16.vlgmr.msra.gmra.mxu3 %v7060_v12  ;;  %v2476_v20 = vpop.f32.mrf.mxu0 }
 0x164   : > { %v2463_v43 = vpop.f32.mrf.mxu3 }
 0x165   : > { %v2464_v53 = vadd.f32 %v2463_v43, %v2451_v51 }
 0x167   : > { %v2676_v54 = vpack.c.bf16 %v2464_v53, %v2464_v53 }
 0x169   : > { %v2478_v33 = vpop.f32.mrf.mxu0  ;;  %v2682_v56 = vsel %vm466_vm0, %v2676_v54, 0 }
 0x16a   : > { %2694 = vmatpush.bf16.msrb.mxu0 %v2682_v56 }
 0x16c   : > { %v2465_v59 = vpop.f32.mrf.mxu3 }
 0x16d   : > { %v2489_v5 = vpop.f32.mrf.mxu1  ;;  %5506 = vmatmul.msk.bf16.vlgmr.msrb.gmra.mxu0 %vm462_vm1, %v2675_v24 }
 0x16e   : > { %v2490_v12 = vadd.f32 %v2489_v5, %v2476_v20 }
 0x174   : > { %v2502_v60 = vpop.f32.mrf.mxu2 }
 0x175   : > { %v2503_v61 = vadd.f32 %v2502_v60, %v2490_v12  ;;  %v2491_v14 = vpop.f32.mrf.mxu1  ;;  %v2720_v60 = vld.sshfl [vmem:[#allocation1] sm:$0xff pattern:$0x75316420] }
 0x17c   : > { %v2504_v38 = vpop.f32.mrf.mxu2 }
 0x181   : > { %v2528_v63 = vpop.f32.mrf.mxu0 }
 0x184   : > { %v2515_v45 = vpop.f32.mrf.mxu3 }
 0x185   : > { %v2516_v11 = vadd.f32 %v2515_v45, %v2503_v61 }
 0x187   : > { %v2529_v0 = vadd.f32 %v2528_v63, %v2516_v11  ;;  %v7176_v11 = vld [vmem:[%s7333_s2] sm:$0xf] }
 0x189   : > { %v2530_v55 = vpop.f32.mrf.mxu0 }
 0x18a   : > { %v5960_v55 = vld [vmem:[#allocation4 + $0x380] sm:$0xf] }
 0x18c   : > { %v2517_v27 = vpop.f32.mrf.mxu3 }
 0x18d   : > { %v2541_v7 = vpop.f32.mrf.mxu1 }
 0x18e   : > { %v2542_v37 = vadd.f32 %v2541_v7, %v2529_v0  ;;  %v6608_v0 = vld [vmem:[#allocation4 + $0x3bc] sm:$0xf0] }
 0x18f   : > { %v5896_v7 = vld [vmem:[#allocation4 + $0x300] sm:$0xf]  ;;  %v5961_v27 = vor.u32 %v6608_v0, %v5960_v55 }
 0x191   : > { %3859 = vmatpush.bf16.msra.mxu0 %v5961_v27  ;;  %v6585_v27 = vld [vmem:[#allocation4 + $0x30c] sm:$0xf] }
 0x194   : > { %v2554_v8 = vpop.f32.mrf.mxu2 }
 0x195   : > { %v2543_v32 = vpop.f32.mrf.mxu1  ;;  %v2555_v52 = vadd.f32 %v2554_v8, %v2542_v37  ;;  %v6592_v8 = vld [vmem:[#allocation4 + $0x33c] sm:$0xf0]  ;;  %v6568_v37 = vld [vmem:[#allocation4 + $0x284] sm:$0xf] }
 0x196   : > { %v5897_v32 = vor.u32 %v6592_v8, %v5896_v7  ;;  %v5906_v8 = vld [vmem:[#allocation4 + $0x348] sm:$0xf0] }
 0x198   : > { %3860 = vmatpush.bf16.msra.mxu0 %v5897_v32  ;;  %v5909_v32 = vor.u32 %v6585_v27, %v5906_v8  ;;  %v6617_v8 = vld [vmem:[#allocation4 + $0x40c] sm:$0xf] }
 0x19c   : > { %v2556_v16 = vpop.f32.mrf.mxu2 }
 0x19d   : > { %v5832_v16 = vld [vmem:[#allocation4 + $0x280] sm:$0xf] }
 0x1a1   : > { %v2580_v4 = vpop.f32.mrf.mxu0 }
 0x1a4   : > { %v2567_v25 = vpop.f32.mrf.mxu3 }
 0x1a5   : > { %v2568_v22 = vadd.f32 %v2567_v25, %v2555_v52  ;;  %v5962_v25 = vld [vmem:[#allocation4 + $0x3c0] sm:$0xf0]  ;;  %v5704_v52 = vld [vmem:[#allocation4 + $0x180] sm:$0xf] }
 0x1a7   : > { %v2581_v42 = vadd.f32 %v2580_v4, %v2568_v22  ;;  %v6576_v4 = vld [vmem:[#allocation4 + $0x2bc] sm:$0xf0] }
 0x1a9   : > { %v2582_v26 = vpop.f32.mrf.mxu0 }
 0x1ac   : > { %v2569_v10 = vpop.f32.mrf.mxu3 }
 0x1ad   : > { %v2593_v21 = vpop.f32.mrf.mxu1  ;;  %v5833_v10 = vor.u32 %v6576_v4, %v5832_v16  ;;  %v6569_v16 = vld [vmem:[#allocation4 + $0x28c] sm:$0xf] }
 0x1ae   : > { %v2594_v19 = vadd.f32 %v2593_v21, %v2581_v42  ;;  %v6584_v21 = vld [vmem:[#allocation4 + $0x304] sm:$0xf]  ;;  %v5842_v4 = vld [vmem:[#allocation4 + $0x2c8] sm:$0xf0] }
 0x1af   : > { %3861 = vmatpush.bf16.msra.mxu0 %v5833_v10  ;;  %v5770_v42 = vld [vmem:[#allocation4 + $0x240] sm:$0xf0]  ;;  %v6537_v10 = vld [vmem:[#allocation4 + $0x18c] sm:$0xf] }
 0x1b4   : > { %v2606_v28 = vpop.f32.mrf.mxu2 }
 0x1b5   : > { %v2595_v30 = vpop.f32.mrf.mxu1  ;;  %v2607_v23 = vadd.f32 %v2606_v28, %v2594_v19  ;;  %v5898_v28 = vld [vmem:[#allocation4 + $0x340] sm:$0xf0]  ;;  %v6528_v19 = vld [vmem:[#allocation4 + $0x13c] sm:$0xf0] }
 0x1b6   : > { %v5768_v30 = vld [vmem:[#allocation4 + $0x200] sm:$0xf] }
 0x1bc   : > { %v2608_v35 = vpop.f32.mrf.mxu2 }
 0x1bd   : > { %v5901_v35 = vor.u32 %v6584_v21, %v5898_v28  ;;  %v5714_v28 = vld [vmem:[#allocation4 + $0x1c8] sm:$0xf0] }
 0x1c0   : > { %v2632_v34 = vpop.f32.mrf.mxu0 }
 0x1c4   : > { %v2619_v39 = vpop.f32.mrf.mxu3 }
 0x1c5   : > { %v2620_v20 = vadd.f32 %v2619_v39, %v2607_v23  ;;  %v5834_v39 = vld [vmem:[#allocation4 + $0x2c0] sm:$0xf0] }
 0x1c6   : > { %v5837_v22 = vor.u32 %v6568_v37, %v5834_v39  ;;  %v6521_v37 = vld [vmem:[#allocation4 + $0x10c] sm:$0xf] }
 0x1c7   : > { %v2633_v49 = vadd.f32 %v2632_v34, %v2620_v20  ;;  %v6560_v34 = vld [vmem:[#allocation4 + $0x23c] sm:$0xf0]  ;;  %v6536_v20 = vld [vmem:[#allocation4 + $0x184] sm:$0xf] }
 0x1c8   : > { %v2634_v50 = vpop.f32.mrf.mxu0 }
 0x1c9   : > { %v5769_v50 = vor.u32 %v6560_v34, %v5768_v30  ;;  %v5717_v30 = vor.u32 %v6537_v10, %v5714_v28  ;;  %v6520_v34 = vld [vmem:[#allocation4 + $0x104] sm:$0xf]  ;;  %v6593_v10 = vld [vmem:[#allocation4 + $0x344] sm:$0xf0] }
 0x1cb   : > { %3862 = vmatpush.bf16.msra.mxu0 %v5769_v50 }
 0x1cc   : > { %v2621_v9 = vpop.f32.mrf.mxu3 }
 0x1cd   : > { %v2645_v41 = vpop.f32.mrf.mxu1  ;;  %v6552_v9 = vld [vmem:[#allocation4 + $0x204] sm:$0xf] }
 0x1ce   : > { %v2646_v51 = vadd.f32 %v2645_v41, %v2633_v49  ;;  %v6544_v41 = vld [vmem:[#allocation4 + $0x1bc] sm:$0xf0]  ;;  %v5773_v23 = vor.u32 %v6552_v9, %v5770_v42  ;;  %v5586_v42 = vld [vmem:[#allocation4 + $0xc8] sm:$0xf0] }
 0x1d4   : > { %v2658_v44 = vpop.f32.mrf.mxu2 }
 0x1d5   : > { %v2647_v46 = vpop.f32.mrf.mxu1  ;;  %v2659_v43 = vadd.f32 %v2658_v44, %v2646_v51  ;;  %v5705_v44 = vor.u32 %v6544_v41, %v5704_v52  ;;  %v6504_v52 = vld [vmem:[#allocation4 + $0x84] sm:$0xf] }
 0x1d6   : > { %v5640_v46 = vld [vmem:[#allocation4 + $0x100] sm:$0xf]  ;;  %v5578_v41 = vld [vmem:[#allocation4 + $0xc0] sm:$0xf0] }
 0x1d7   : > { %3863 = vmatpush.bf16.msra.mxu0 %v5705_v44  ;;  %v5641_v51 = vor.u32 %v6528_v19, %v5640_v46  ;;  %v5581_v9 = vor.u32 %v6504_v52, %v5578_v41  ;;  %v6488_v44 = vld [vmem:[#allocation4 + $0x4] sm:$0xf]  ;;  %v6577_v52 = vld [vmem:[#allocation4 + $0x2c4] sm:$0xf0] }
 0x1d8   : > { %v5514_v46 = vld [vmem:[#allocation4 + $0x40] sm:$0xf0] }
 0x1db   : > { %3864 = vmatpush.bf16.msra.mxu0 %v5641_v51  ;;  %v6649_v51 = vld [vmem:[#allocation4 + $0x50c] sm:$0xf] }
 0x1dc   : > { %v2660_v48 = vpop.f32.mrf.mxu2 }
 0x1dd   : > { %v5706_v48 = vld [vmem:[#allocation4 + $0x1c0] sm:$0xf0] }
 0x1e4   : > { %v2671_v53 = vpop.f32.mrf.mxu3 }
 0x1e5   : > { %v2672_v33 = vadd.f32 %v2671_v53, %v2659_v43  ;;  %v5576_v53 = vld [vmem:[#allocation4 + $0x80] sm:$0xf] }
 0x1e7   : > { %v2677_v54 = vpack.c.bf16 %v2672_v33, %v2672_v33  ;;  %v6512_v33 = vld [vmem:[#allocation4 + $0xbc] sm:$0xf0] }
 0x1e9   : > { %v2685_v56 = vsel %vm466_vm0, %v2677_v54, 0  ;;  %v5709_v54 = vor.u32 %v6536_v20, %v5706_v48  ;;  %v5522_v20 = vld [vmem:[#allocation4 + $0x48] sm:$0xf0]  ;;  %v6152_v48 = vld [vmem:[#allocation4 + $0x500] sm:$0xf] }
 0x1ea   : > { %2707 = vmatpush.bf16.msra.mxu1 %v2685_v56  ;;  %v2696_v59 = vpop.f32.mrf.mxu0  ;;  %v2721_v56 = vld.sshfl [vmem:[#allocation1 + $0x8] sm:$0xff pattern:$0x75316420] }
 0x1eb   : > { %v2713_v12 = vmul.f32 0.2, %v2696_v59 }
 0x1ec   : > { %v2673_v5 = vpop.f32.mrf.mxu3 }
 0x1ed   : > { %5507 = vmatmul.msk.bf16.vlgmr.msra.gmra.mxu1 %vm462_vm1, %v2675_v24  ;;  %v2715_v61 = vmax.f32 %v2696_v59, %v2713_v12  ;;  %v6600_v24 = vld [vmem:[#allocation4 + $0x384] sm:$0xf]  ;;  %v5577_v59 = vor.u32 %v6512_v33, %v5576_v53  ;;  %v6162_v53 = vld [vmem:[#allocation4 + $0x548] sm:$0x10]  ;;  %v5517_v33 = vor.u32 %v6488_v44, %v5514_v46  ;;  %v5776_v44 = vld [vmem:[#allocation4 + $0x208] sm:$0xf] }
 0x1ee   : > { %v5965_v26 = vor.u32 %v6600_v24, %v5962_v25  ;;  %v5845_v24 = vor.u32 %v6569_v16, %v5842_v4  ;;  %v6553_v25 = vld [vmem:[#allocation4 + $0x20c] sm:$0xf]  ;;  %v6602_v46 = vld [vmem:[#allocation4 + $0x394] sm:$0xf] }
 0x1ef   : > { %v2724_v14 = vmul.f32 %v2720_v60, %v2715_v61  ;;  %v5512_v60 = vld [vmem:[#allocation4] sm:$0xf]  ;;  %3865 = vmatpush.bf16.msra.mxu0 %v5577_v59 }
 0x1f0   : > { %v6496_v61 = vld [vmem:[#allocation4 + $0x3c] sm:$0xf0] }
 0x1f1   : > { %v2727_v38 = vpack.c.bf16 %v2724_v14, %v2724_v14  ;;  %v6601_v14 = vld [vmem:[#allocation4 + $0x38c] sm:$0xf]  ;;  %v5513_v55 = vor.u32 %v6496_v61, %v5512_v60 }
 0x1f2   : > { %v2698_v63 = vpop.f32.mrf.mxu0 }
 0x1f3   : > { %v2733_v45 = vsel %vm466_vm0, %v2727_v38, 0  ;;  %v5970_v38 = vld [vmem:[#allocation4 + $0x3c8] sm:$0xf0]  ;;  %3866 = vmatpush.bf16.msra.mxu0 %v5513_v55  ;;  %v5968_v55 = vld [vmem:[#allocation4 + $0x388] sm:$0xf] }
 0x1f4   : > { %2745 = vmatpush.bf16.msra.mxu2 %v2733_v45  ;;  %v5973_v7 = vor.u32 %v6601_v14, %v5970_v38  ;;  %v6633_v14 = vld [vmem:[#allocation4 + $0x48c] sm:$0xf] }
 0x1f5   : > { %v6098_v38 = vld [vmem:[#allocation4 + $0x4c8] sm:$0xf0] }
 0x1f7   : > { %5508 = vmatmul.msk.bf16.vlgmr.msra.gmra.mxu2 %vm462_vm1, %v7176_v11  ;;  %3937 = vmatpush.bf16.msrb.mxu0 %v5973_v7  ;;  %v6609_v7 = vld [vmem:[#allocation4 + $0x3c4] sm:$0xf0] }
 0x1f8   : > { %3885 = vmatpush.bf16.msrb.mxu2 %v5965_v26  ;;  %v5778_v26 = vld [vmem:[#allocation4 + $0x248] sm:$0xf0]  ;;  %v5969_v16 = vor.u32 %v6609_v7, %v5968_v55  ;;  %v6618_v55 = vld [vmem:[#allocation4 + $0x414] sm:$0xf]  ;;  %v6096_v7 = vld [vmem:[#allocation4 + $0x488] sm:$0xf] }
 0x1f9   : > { %v5781_v21 = vor.u32 %v6553_v25, %v5778_v26  ;;  %v6154_v25 = vld [vmem:[#allocation4 + $0x540] sm:$0x10] }
 0x1fb   : > { %3938 = vmatpush.bf16.msrb.mxu0 %v5909_v32  ;;  %v6034_v32 = vld [vmem:[#allocation4 + $0x448] sm:$0xf0] }
 0x1fc   : > { %3886 = vmatpush.bf16.msrb.mxu2 %v5901_v35  ;;  %v5642_v35 = vld [vmem:[#allocation4 + $0x140] sm:$0xf0]  ;;  %v6037_v4 = vor.u32 %v6617_v8, %v6034_v32  ;;  %v6042_v8 = vld [vmem:[#allocation4 + $0x450] sm:$0xf0] }
 0x1fd   : > { %v5645_v39 = vor.u32 %v6520_v34, %v5642_v35  ;;  %v6170_v34 = vld [vmem:[#allocation4 + $0x550] sm:$0x10] }
 0x1fe   : > { %v6570_v32 = vld [vmem:[#allocation4 + $0x294] sm:$0xf] }
 0x1ff   : > { %3939 = vmatpush.bf16.msrb.mxu0 %v5845_v24  ;;  %v6648_v24 = vld [vmem:[#allocation4 + $0x504] sm:$0xf] }
 0x200   : > { %3887 = vmatpush.bf16.msrb.mxu2 %v5837_v22  ;;  %v6505_v22 = vld [vmem:[#allocation4 + $0x8c] sm:$0xf]  ;;  %v6157_v26 = vor.u32 %v6648_v24, %v6154_v25  ;;  %v6045_v24 = vor.u32 %v6618_v55, %v6042_v8 }
 0x201   : > { %v5589_v19 = vor.u32 %v6505_v22, %v5586_v42  ;;  %v6026_v42 = vld [vmem:[#allocation4 + $0x440] sm:$0xf0] }
 0x202   : > { %v3815_v35 = vsel %vm3810_vm2, %v6157_v26, 0 }
 0x203   : > { %3940 = vmatpush.bf16.msrb.mxu0 %v5781_v21  ;;  %v5904_v21 = vld [vmem:[#allocation4 + $0x308] sm:$0xf] }
 0x204   : > { %3888 = vmatpush.bf16.msrb.mxu2 %v5773_v23  ;;  %v6489_v23 = vld [vmem:[#allocation4 + $0xc] sm:$0xf]  ;;  %v5905_v28 = vor.u32 %v6593_v10, %v5904_v21  ;;  %v6554_v21 = vld [vmem:[#allocation4 + $0x214] sm:$0xf] }
 0x205   : > { %v5525_v59 = vor.u32 %v6489_v23, %v5522_v20  ;;  %v6561_v20 = vld [vmem:[#allocation4 + $0x244] sm:$0xf0]  ;;  %v5786_v10 = vld [vmem:[#allocation4 + $0x250] sm:$0xf0] }
 0x207   : > { %3941 = vmatpush.bf16.msrb.mxu0 %v5717_v30  ;;  %v6650_v30 = vld [vmem:[#allocation4 + $0x514] sm:$0xf] }
 0x208   : > { %3889 = vmatpush.bf16.msrb.mxu2 %v5709_v54  ;;  %v6165_v54 = vor.u32 %v6649_v51, %v6162_v53  ;;  %v6173_v22 = vor.u32 %v6650_v30, %v6170_v34  ;;  %v6634_v51 = vld [vmem:[#allocation4 + $0x494] sm:$0xf]  ;;  %v5789_v30 = vor.u32 %v6554_v21, %v5786_v10  ;;  %v5986_v34 = vld [vmem:[#allocation4 + $0x3d8] sm:$0xf0] }
 0x209   : > { %v6491_v21 = vld [vmem:[#allocation4 + $0x1c] sm:$0xf] }
 0x20a   : > { %v3821_v60 = vsel %vm3810_vm2, %v6165_v54, 0  ;;  %v6160_v54 = vld [vmem:[#allocation4 + $0x508] sm:$0xf]  ;;  %v5538_v10 = vld [vmem:[#allocation4 + $0x58] sm:$0xf0] }
 0x20c   : > { %3890 = vmatpush.bf16.msrb.mxu2 %v5645_v39  ;;  %v6090_v39 = vld [vmem:[#allocation4 + $0x4c0] sm:$0xf0] }
 0x210   : > { %3891 = vmatpush.bf16.msrb.mxu2 %v5581_v9  ;;  %v6616_v9 = vld [vmem:[#allocation4 + $0x404] sm:$0xf] }
 0x211   : > { %v6029_v23 = vor.u32 %v6616_v9, %v6026_v42  ;;  %v5858_v9 = vld [vmem:[#allocation4 + $0x2d8] sm:$0xf0] }
 0x214   : > { %3892 = vmatpush.bf16.msrb.mxu2 %v5517_v33 }
 0x218   : > { %3955 = vmatpush.bf16.msra.mxu2 %v3821_v60  ;;  %v5914_v60 = vld [vmem:[#allocation4 + $0x350] sm:$0xf0] }
 0x26a   : > { %v2709_v49 = vpop.f32.mrf.mxu1 }
 0x26b   : > { %v2714_v43 = vmul.f32 0.2, %v2709_v49 }
 0x26d   : > { %v2716_v5 = vmax.f32 %v2709_v49, %v2714_v43  ;;  %v6656_v49 = vld [vmem:[#allocation4 + $0x53c] sm:$0x10] }
 0x26e   : > { %v6153_v43 = vor.u32 %v6656_v49, %v6152_v48  ;;  %v5777_v48 = vor.u32 %v6561_v20, %v5776_v44  ;;  %v3827_v49 = vsel %vm3810_vm2, %v6173_v22, 0  ;;  %v6571_v22 = vld [vmem:[#allocation4 + $0x29c] sm:$0xf] }
 0x26f   : > { %v2725_v12 = vmul.f32 %v2721_v56, %v2716_v5  ;;  %v6088_v56 = vld [vmem:[#allocation4 + $0x480] sm:$0xf]  ;;  %v5861_v42 = vor.u32 %v6571_v22, %v5858_v9  ;;  %v6555_v44 = vld [vmem:[#allocation4 + $0x21c] sm:$0xf] }
 0x270   : > { %v6640_v5 = vld [vmem:[#allocation4 + $0x4bc] sm:$0xf0]  ;;  %v5730_v20 = vld [vmem:[#allocation4 + $0x1d8] sm:$0xf0] }
 0x271   : > { %v2728_v63 = vpack.c.bf16 %v2725_v12, %v2725_v12  ;;  %v3812_v12 = vsel %vm3810_vm2, %v6153_v43, 0  ;;  %v6089_v61 = vor.u32 %v6640_v5, %v6088_v56  ;;  %v6106_v43 = vld [vmem:[#allocation4 + $0x4d0] sm:$0xf0]  ;;  %v6657_v56 = vld [vmem:[#allocation4 + $0x544] sm:$0x10] }
 0x272   : > { %v2711_v45 = vpop.f32.mrf.mxu1  ;;  %3877 = vmatpush.bf16.msrb.mxu1 %v3812_v12  ;;  %v5712_v5 = vld [vmem:[#allocation4 + $0x188] sm:$0xf]  ;;  %v6586_v12 = vld [vmem:[#allocation4 + $0x314] sm:$0xf] }
 0x273   : > { %v2736_v0 = vsel %vm466_vm0, %v2728_v63, 0  ;;  %v6024_v63 = vld [vmem:[#allocation4 + $0x400] sm:$0xf] }
 0x274   : > { %2758 = vmatpush.bf16.msrb.mxu3 %v2736_v0  ;;  %v6624_v45 = vld [vmem:[#allocation4 + $0x43c] sm:$0xf0]  ;;  %v6101_v0 = vor.u32 %v6633_v14, %v6098_v38  ;;  %v6545_v14 = vld [vmem:[#allocation4 + $0x1c4] sm:$0xf0] }
 0x275   : > { %v6025_v27 = vor.u32 %v6624_v45, %v6024_v63  ;;  %v5713_v38 = vor.u32 %v6545_v14, %v5712_v5  ;;  %v6109_v45 = vor.u32 %v6634_v51, %v6106_v43  ;;  %v6529_v51 = vld [vmem:[#allocation4 + $0x144] sm:$0xf0]  ;;  %v6522_v43 = vld [vmem:[#allocation4 + $0x114] sm:$0xf] }
 0x276   : > { %3878 = vmatpush.bf16.msrb.mxu1 %v6089_v61  ;;  %3956 = vmatpush.bf16.msra.mxu2 %v6101_v0  ;;  %v6161_v61 = vor.u32 %v6657_v56, %v6160_v54  ;;  %v5917_v0 = vor.u32 %v6586_v12, %v5914_v60  ;;  %v6523_v54 = vld [vmem:[#allocation4 + $0x11c] sm:$0xf]  ;;  %v6032_v60 = vld [vmem:[#allocation4 + $0x408] sm:$0xf] }
 0x277   : > { %5509 = vmatmul.msk.bf16.vlgmr.msrb.gmra.mxu3 %vm462_vm1, %v7176_v11  ;;  %v5650_v11 = vld [vmem:[#allocation4 + $0x148] sm:$0xf0]  ;;  %v5666_v56 = vld [vmem:[#allocation4 + $0x158] sm:$0xf0] }
 0x278   : > { %v5653_v50 = vor.u32 %v6521_v37, %v5650_v11  ;;  %3903 = vmatpush.bf16.msra.mxu3 %v3815_v35  ;;  %v6632_v37 = vld [vmem:[#allocation4 + $0x484] sm:$0xf]  ;;  %v5840_v11 = vld [vmem:[#allocation4 + $0x288] sm:$0xf]  ;;  %v3818_v63 = vsel %vm3810_vm2, %v6161_v61, 0  ;;  %v5669_v12 = vor.u32 %v6523_v54, %v5666_v56 }
 0x279   : > { %v5841_v41 = vor.u32 %v6577_v52, %v5840_v11  ;;  %v6538_v35 = vld [vmem:[#allocation4 + $0x194] sm:$0xf]  ;;  %v5922_v52 = vld [vmem:[#allocation4 + $0x358] sm:$0xf0]  ;;  %v6625_v61 = vld [vmem:[#allocation4 + $0x444] sm:$0xf0] }
 0x27a   : > { %3942 = vmatpush.bf16.msrb.mxu0 %v5653_v50  ;;  %3879 = vmatpush.bf16.msrb.mxu1 %v6025_v27  ;;  %v6093_v50 = vor.u32 %v6632_v37, %v6090_v39  ;;  %v2747_v53 = vpop.f32.mrf.mxu2  ;;  %v6641_v27 = vld [vmem:[#allocation4 + $0x4c4] sm:$0xf0]  ;;  %v5722_v37 = vld [vmem:[#allocation4 + $0x1d0] sm:$0xf0]  ;;  %v6033_v14 = vor.u32 %v6625_v61, %v6032_v60  ;;  %v6114_v54 = vld [vmem:[#allocation4 + $0x4d8] sm:$0xf0] }
 0x27b   : > { %3957 = vmatpush.bf16.msra.mxu2 %v6037_v4  ;;  %v6097_v4 = vor.u32 %v6641_v27, %v6096_v7  ;;  %v5725_v11 = vor.u32 %v6538_v35, %v5722_v37  ;;  %v6507_v7 = vld [vmem:[#allocation4 + $0x9c] sm:$0xf]  ;;  %v6658_v35 = vld [vmem:[#allocation4 + $0x54c] sm:$0x10]  ;;  %v6636_v56 = vld [vmem:[#allocation4 + $0x4a4] sm:$0xf] }
 0x27c   : > { %3904 = vmatpush.bf16.msra.mxu3 %v6093_v50  ;;  %v6587_v50 = vld [vmem:[#allocation4 + $0x31c] sm:$0xf]  ;;  %v5848_v60 = vld [vmem:[#allocation4 + $0x290] sm:$0xf] }
 0x27d   : > { %v5602_v27 = vld [vmem:[#allocation4 + $0xd8] sm:$0xf0]  ;;  %v6578_v61 = vld [vmem:[#allocation4 + $0x2cc] sm:$0xf0] }
 0x27e   : > { %3943 = vmatpush.bf16.msrb.mxu0 %v5589_v19  ;;  %3911 = vmatpush.bf16.msra.mxu1 %v5969_v16  ;;  %v5978_v19 = vld [vmem:[#allocation4 + $0x3d0] sm:$0xf0]  ;;  %v6651_v37 = vld [vmem:[#allocation4 + $0x51c] sm:$0xf] }
 0x27f   : > { %v5981_v33 = vor.u32 %v6602_v46, %v5978_v19  ;;  %v5850_v16 = vld [vmem:[#allocation4 + $0x2d0] sm:$0xf0]  ;;  %v5794_v46 = vld [vmem:[#allocation4 + $0x258] sm:$0xf0] }
 0x280   : > { %3905 = vmatpush.bf16.msra.mxu3 %v6029_v23  ;;  %v5853_v25 = vor.u32 %v6570_v32, %v5850_v16  ;;  %v5797_v19 = vor.u32 %v6555_v44, %v5794_v46  ;;  %v6539_v23 = vld [vmem:[#allocation4 + $0x19c] sm:$0xf]  ;;  %v5605_v32 = vor.u32 %v6507_v7, %v5602_v27  ;;  %v5520_v16 = vld [vmem:[#allocation4 + $0x8] sm:$0xf]  ;;  %v6620_v27 = vld [vmem:[#allocation4 + $0x424] sm:$0xf] }
 0x281   : > { %v6050_v7 = vld [vmem:[#allocation4 + $0x458] sm:$0xf0] }
 0x282   : > { %3944 = vmatpush.bf16.msrb.mxu0 %v5525_v59  ;;  %3912 = vmatpush.bf16.msra.mxu1 %v5905_v28  ;;  %v7187_v59 = vpack.c.bf16 %v2747_v53, %v2747_v53  ;;  %v2749_v26 = vpop.f32.mrf.mxu2  ;;  %v6603_v28 = vld [vmem:[#allocation4 + $0x39c] sm:$0xf] }
 0x283   : > { %v5989_v39 = vor.u32 %v6603_v28, %v5986_v34  ;;  %v5530_v26 = vld [vmem:[#allocation4 + $0x50] sm:$0xf0]  ;;  %v6168_v34 = vld [vmem:[#allocation4 + $0x510] sm:$0xf] }
 0x284   : > { %3867 = vmatmul.bf16.vlgmr.msra.gmra.mxu0 %v7187_v59  ;;  %3893 = vmatmul.bf16.vlgmr.msrb.gmra.mxu2 %v7187_v59  ;;  %v6169_v22 = vor.u32 %v6658_v35, %v6168_v34  ;;  %v5984_v34 = vld [vmem:[#allocation4 + $0x398] sm:$0xf] }
 0x285   : > { %3989 = vmatpush.bf16.msrb.mxu2 %v5981_v33  ;;  %3929 = vmatpush.bf16.msrb.mxu3 %v3818_v63  ;;  %v5658_v33 = vld [vmem:[#allocation4 + $0x150] sm:$0xf0]  ;;  %v6513_v63 = vld [vmem:[#allocation4 + $0xc4] sm:$0xf0]  ;;  %v6611_v35 = vld [vmem:[#allocation4 + $0x3d4] sm:$0xf0] }
 0x286   : > { %3913 = vmatpush.bf16.msra.mxu1 %v5841_v41  ;;  %4007 = vmatpush.bf16.msra.mxu0 %v3827_v49  ;;  %v5925_v41 = vor.u32 %v6587_v50, %v5922_v52  ;;  %v5648_v49 = vld [vmem:[#allocation4 + $0x108] sm:$0xf]  ;;  %v5661_v5 = vor.u32 %v6522_v43, %v5658_v33  ;;  %v6186_v50 = vld [vmem:[#allocation4 + $0x560] sm:$0x10]  ;;  %v5976_v52 = vld [vmem:[#allocation4 + $0x390] sm:$0xf] }
 0x287   : > { %v5649_v53 = vor.u32 %v6529_v51, %v5648_v49  ;;  %v6104_v49 = vld [vmem:[#allocation4 + $0x490] sm:$0xf]  ;;  %v6635_v33 = vld [vmem:[#allocation4 + $0x49c] sm:$0xf] }
 0x289   : > { %3990 = vmatpush.bf16.msrb.mxu2 %v5917_v0  ;;  %3930 = vmatpush.bf16.msrb.mxu3 %v6097_v4  ;;  %v5594_v0 = vld [vmem:[#allocation4 + $0xd0] sm:$0xf0]  ;;  %v6497_v4 = vld [vmem:[#allocation4 + $0x44] sm:$0xf0] }
 0x28a   : > { %3914 = vmatpush.bf16.msra.mxu1 %v5777_v48  ;;  %4008 = vmatpush.bf16.msra.mxu0 %v6109_v45  ;;  %v5733_v48 = vor.u32 %v6539_v23, %v5730_v20  ;;  %v6506_v45 = vld [vmem:[#allocation4 + $0x94] sm:$0xf]  ;;  %v6594_v20 = vld [vmem:[#allocation4 + $0x34c] sm:$0xf0] }
 0x28b   : > { %v5597_v8 = vor.u32 %v6506_v45, %v5594_v0  ;;  %v6040_v45 = vld [vmem:[#allocation4 + $0x410] sm:$0xf]  ;;  %v6619_v0 = vld [vmem:[#allocation4 + $0x41c] sm:$0xf] }
 0x28d   : > { %3991 = vmatpush.bf16.msrb.mxu2 %v5853_v25  ;;  %3931 = vmatpush.bf16.msrb.mxu3 %v6033_v14  ;;  %v5521_v25 = vor.u32 %v6497_v4, %v5520_v16  ;;  %v5849_v16 = vor.u32 %v6578_v61, %v5848_v60  ;;  %v5784_v4 = vld [vmem:[#allocation4 + $0x210] sm:$0xf]  ;;  %v6572_v61 = vld [vmem:[#allocation4 + $0x2a4] sm:$0xf] }
 0x28e   : > { %3915 = vmatpush.bf16.msra.mxu1 %v5713_v38  ;;  %4009 = vmatpush.bf16.msra.mxu0 %v6045_v24  ;;  %v5584_v38 = vld [vmem:[#allocation4 + $0x88] sm:$0xf]  ;;  %v6490_v24 = vld [vmem:[#allocation4 + $0x14] sm:$0xf] }
 0x28f   : > { %v5585_v55 = vor.u32 %v6513_v63, %v5584_v38  ;;  %v5533_v28 = vor.u32 %v6490_v24, %v5530_v26  ;;  %v6117_v38 = vor.u32 %v6635_v33, %v6114_v54  ;;  %v6562_v24 = vld [vmem:[#allocation4 + $0x24c] sm:$0xf0]  ;;  %v6053_v26 = vor.u32 %v6619_v0, %v6050_v7 }
 0x290   : > { %v6514_v54 = vld [vmem:[#allocation4 + $0xcc] sm:$0xf0] }
 0x291   : > { %3992 = vmatpush.bf16.msrb.mxu2 %v5789_v30  ;;  %v5541_v30 = vor.u32 %v6491_v21, %v5538_v10  ;;  %v5785_v10 = vor.u32 %v6562_v24, %v5784_v4  ;;  %v5792_v4 = vld [vmem:[#allocation4 + $0x218] sm:$0xf] }
 0x292   : > { %3916 = vmatpush.bf16.msra.mxu1 %v5649_v53  ;;  %v6642_v53 = vld [vmem:[#allocation4 + $0x4cc] sm:$0xf0]  ;;  %v6563_v24 = vld [vmem:[#allocation4 + $0x254] sm:$0xf0] }
 0x293   : > { %v6105_v14 = vor.u32 %v6642_v53, %v6104_v49  ;;  %v6589_v49 = vld [vmem:[#allocation4 + $0x32c] sm:$0xf]  ;;  %v5592_v53 = vld [vmem:[#allocation4 + $0x90] sm:$0xf] }
 0x294   : > { %3945 = vmatmul.bf16.vlgmr.msrb.gmra.mxu0 %v7187_v59  ;;  %v5593_v0 = vor.u32 %v6514_v54, %v5592_v53  ;;  %v5682_v54 = vld [vmem:[#allocation4 + $0x168] sm:$0xf0] }
 0x295   : > { %4041 = vmatpush.bf16.msrb.mxu0 %v5989_v39  ;;  %3993 = vmatpush.bf16.msrb.mxu2 %v5725_v11  ;;  %v6178_v39 = vld [vmem:[#allocation4 + $0x558] sm:$0x10]  ;;  %v6652_v11 = vld [vmem:[#allocation4 + $0x524] sm:$0xf] }
 0x296   : > { %3917 = vmatpush.bf16.msra.mxu1 %v5585_v55  ;;  %v6181_v9 = vor.u32 %v6651_v37, %v6178_v39  ;;  %v6626_v55 = vld [vmem:[#allocation4 + $0x44c] sm:$0xf0]  ;;  %v6604_v37 = vld [vmem:[#allocation4 + $0x3a4] sm:$0xf] }
 0x297   : > { %v5994_v39 = vld [vmem:[#allocation4 + $0x3e0] sm:$0xf0] }
 0x298   : > { %v3833_v51 = vsel %vm3810_vm2, %v6181_v9, 0  ;;  %v6530_v9 = vld [vmem:[#allocation4 + $0x14c] sm:$0xf0] }
 0x299   : > { %4042 = vmatpush.bf16.msrb.mxu0 %v5925_v41  ;;  %3994 = vmatpush.bf16.msrb.mxu2 %v5661_v5  ;;  %v6610_v41 = vld [vmem:[#allocation4 + $0x3cc] sm:$0xf0]  ;;  %v6122_v5 = vld [vmem:[#allocation4 + $0x4e0] sm:$0xf0] }
 0x29a   : > { %3918 = vmatpush.bf16.msra.mxu1 %v5521_v25  ;;  %v5977_v46 = vor.u32 %v6610_v41, %v5976_v52  ;;  %v6125_v63 = vor.u32 %v6636_v56, %v6122_v5  ;;  %v6041_v25 = vor.u32 %v6626_v55, %v6040_v45  ;;  %v5985_v41 = vor.u32 %v6611_v35, %v5984_v34  ;;  %v5856_v56 = vld [vmem:[#allocation4 + $0x298] sm:$0xf] }
 0x29b   : > { %v6579_v5 = vld [vmem:[#allocation4 + $0x2d4] sm:$0xf0]  ;;  %v5793_v34 = vor.u32 %v6563_v24, %v5792_v4  ;;  %v6653_v4 = vld [vmem:[#allocation4 + $0x52c] sm:$0xf] }
 0x29c   : > { %v6176_v45 = vld [vmem:[#allocation4 + $0x518] sm:$0xf]  ;;  %v5857_v7 = vor.u32 %v6579_v5, %v5856_v56 }
 0x29d   : > { %4043 = vmatpush.bf16.msrb.mxu0 %v5861_v42  ;;  %3995 = vmatpush.bf16.msrb.mxu2 %v5597_v8  ;;  %v6189_v42 = vor.u32 %v6652_v11, %v6186_v50  ;;  %v6058_v8 = vld [vmem:[#allocation4 + $0x460] sm:$0xf0]  ;;  %v6605_v11 = vld [vmem:[#allocation4 + $0x3ac] sm:$0xf]  ;;  %v6659_v55 = vld [vmem:[#allocation4 + $0x554] sm:$0x10] }
 0x29e   : > { %v6061_v21 = vor.u32 %v6620_v27, %v6058_v8  ;;  %v6002_v50 = vld [vmem:[#allocation4 + $0x3e8] sm:$0xf0]  ;;  %v5528_v27 = vld [vmem:[#allocation4 + $0x10] sm:$0xf]  ;;  %v5728_v35 = vld [vmem:[#allocation4 + $0x198] sm:$0xf] }
 0x29f   : > { %v3839_v43 = vsel %vm3810_vm2, %v6189_v42, 0  ;;  %v5997_v42 = vor.u32 %v6604_v37, %v5994_v39  ;;  %v6498_v8 = vld [vmem:[#allocation4 + $0x4c] sm:$0xf0]  ;;  %v6048_v56 = vld [vmem:[#allocation4 + $0x418] sm:$0xf] }
 0x2a0   : > { %v6627_v5 = vld [vmem:[#allocation4 + $0x454] sm:$0xf0] }
 0x2a1   : > { %4044 = vmatpush.bf16.msrb.mxu0 %v5797_v19  ;;  %3996 = vmatpush.bf16.msrb.mxu2 %v5533_v28  ;;  %v5912_v19 = vld [vmem:[#allocation4 + $0x310] sm:$0xf] }
 0x2a2   : > { %v5720_v28 = vld [vmem:[#allocation4 + $0x190] sm:$0xf] }
 0x2a5   : > { %4045 = vmatpush.bf16.msrb.mxu0 %v5733_v48  ;;  %v3824_v48 = vsel %vm3810_vm2, %v6169_v22, 0  ;;  %v5656_v22 = vld [vmem:[#allocation4 + $0x110] sm:$0xf] }
 0x2a9   : > { %4046 = vmatpush.bf16.msrb.mxu0 %v5669_v12  ;;  %v5913_v12 = vor.u32 %v6594_v20, %v5912_v19  ;;  %v6595_v19 = vld [vmem:[#allocation4 + $0x354] sm:$0xf0]  ;;  %v6588_v20 = vld [vmem:[#allocation4 + $0x324] sm:$0xf] }
 0x2ad   : > { %4047 = vmatpush.bf16.msrb.mxu0 %v5605_v32 }
 0x2b1   : > { %4048 = vmatpush.bf16.msrb.mxu0 %v5541_v30  ;;  %v6546_v30 = vld [vmem:[#allocation4 + $0x1cc] sm:$0xf0] }
 0x2b2   : > { %v5721_v52 = vor.u32 %v6546_v30, %v5720_v28  ;;  %v5810_v28 = vld [vmem:[#allocation4 + $0x268] sm:$0xf0]  ;;  %v5529_v30 = vor.u32 %v6498_v8, %v5528_v27  ;;  %v6049_v8 = vor.u32 %v6627_v5, %v6048_v56 }
 0x2b3   : > { %v5618_v27 = vld [vmem:[#allocation4 + $0xe8] sm:$0xf0] }
 0x2b4   : > { %v6637_v5 = vld [vmem:[#allocation4 + $0x4ac] sm:$0xf] }
 0x2fa   : > { %v2760_v44 = vpop.f32.mrf.mxu3 }
 0x2fb   : > { %v7193_v23 = vpack.c.bf16 %v2760_v44, %v2760_v44  ;;  %v6005_v44 = vor.u32 %v6605_v11, %v6002_v50  ;;  %v6547_v50 = vld [vmem:[#allocation4 + $0x1d4] sm:$0xf0] }
 0x2fd   : > { %6214 = vmatmul.msk.bf16.vlgmr.msrb.gmra.mxu1 %vm3806_vm3, %v7193_v23  ;;  %6215 = vmatmul.msk.bf16.vlgmr.msra.gmra.mxu3 %vm3806_vm3, %v7193_v23 }
 0x2fe   : > { %6217 = vmatmul.msk.bf16.vlgmr.msra.gmra.mxu2 %vm3806_vm3, %v7193_v23  ;;  %3963 = vmatpush.bf16.msra.mxu3 %v5977_v46  ;;  %v5920_v46 = vld [vmem:[#allocation4 + $0x318] sm:$0xf] }
 0x2ff   : > { %6219 = vmatmul.msk.bf16.vlgmr.msra.gmra.mxu0 %vm3806_vm3, %v7193_v23  ;;  %3981 = vmatpush.bf16.msrb.mxu1 %v3824_v48  ;;  %v5930_v48 = vld [vmem:[#allocation4 + $0x360] sm:$0xf0]  ;;  %v5921_v33 = vor.u32 %v6595_v19, %v5920_v46  ;;  %v5729_v46 = vor.u32 %v6547_v50, %v5728_v35  ;;  %v5664_v19 = vld [vmem:[#allocation4 + $0x118] sm:$0xf] }
 0x300   : > { %4059 = vmatpush.bf16.msra.mxu2 %v3833_v51  ;;  %4111 = vmatpush.bf16.msra.mxu0 %v3839_v43  ;;  %v5938_v51 = vld [vmem:[#allocation4 + $0x368] sm:$0xf0]  ;;  %v5657_v43 = vor.u32 %v6530_v9, %v5656_v22 }
 0x301   : > { %v5941_v60 = vor.u32 %v6589_v49, %v5938_v51  ;;  %v6541_v22 = vld [vmem:[#allocation4 + $0x1ac] sm:$0xf]  ;;  %v6531_v49 = vld [vmem:[#allocation4 + $0x154] sm:$0xf0]  ;;  %v6524_v51 = vld [vmem:[#allocation4 + $0x124] sm:$0xf] }
 0x302   : > { %3964 = vmatpush.bf16.msra.mxu3 %v5913_v12  ;;  %v2762_v32 = vpop.f32.mrf.mxu3  ;;  %v5933_v12 = vor.u32 %v6588_v20, %v5930_v48  ;;  %v5746_v9 = vld [vmem:[#allocation4 + $0x1e8] sm:$0xf0] }
 0x303   : > { %3982 = vmatpush.bf16.msrb.mxu1 %v6105_v14  ;;  %v5866_v14 = vld [vmem:[#allocation4 + $0x2e0] sm:$0xf0]  ;;  %v5749_v48 = vor.u32 %v6541_v22, %v5746_v9  ;;  %v5554_v22 = vld [vmem:[#allocation4 + $0x68] sm:$0xf0] }
 0x304   : > { %4060 = vmatpush.bf16.msra.mxu2 %v6117_v38  ;;  %4112 = vmatpush.bf16.msra.mxu0 %v6125_v63  ;;  %v6573_v38 = vld [vmem:[#allocation4 + $0x2ac] sm:$0xf]  ;;  %v5869_v32 = vor.u32 %v6572_v61, %v5866_v14  ;;  %v5665_v61 = vor.u32 %v6531_v49, %v5664_v19  ;;  %v5600_v14 = vld [vmem:[#allocation4 + $0x98] sm:$0xf]  ;;  %v5864_v19 = vld [vmem:[#allocation4 + $0x2a0] sm:$0xf] }
 0x305   : > { %v5874_v63 = vld [vmem:[#allocation4 + $0x2e8] sm:$0xf0] }
 0x306   : > { %3965 = vmatpush.bf16.msra.mxu3 %v5849_v16  ;;  %v5877_v16 = vor.u32 %v6573_v38, %v5874_v63  ;;  %v6515_v38 = vld [vmem:[#allocation4 + $0xd4] sm:$0xf0]  ;;  %v6508_v63 = vld [vmem:[#allocation4 + $0xa4] sm:$0xf] }
 0x307   : > { %3983 = vmatpush.bf16.msrb.mxu1 %v6041_v25  ;;  %v6556_v25 = vld [vmem:[#allocation4 + $0x224] sm:$0xf] }
 0x308   : > { %4061 = vmatpush.bf16.msra.mxu2 %v6053_v26  ;;  %4113 = vmatpush.bf16.msra.mxu0 %v6061_v21  ;;  %v6177_v26 = vor.u32 %v6659_v55, %v6176_v45  ;;  %v5802_v21 = vld [vmem:[#allocation4 + $0x260] sm:$0xf0] }
 0x309   : > { %v5805_v37 = vor.u32 %v6556_v25, %v5802_v21  ;;  %v6194_v25 = vld [vmem:[#allocation4 + $0x568] sm:$0x10]  ;;  %v6202_v21 = vld [vmem:[#allocation4 + $0x570] sm:$0x10] }
 0x30a   : > { %3966 = vmatpush.bf16.msra.mxu3 %v5785_v10  ;;  %v6557_v10 = vld [vmem:[#allocation4 + $0x22c] sm:$0xf]  ;;  %v3830_v11 = vsel %vm3810_vm2, %v6177_v26, 0  ;;  %v6654_v26 = vld [vmem:[#allocation4 + $0x534] sm:$0xf]  ;;  %v6197_v9 = vor.u32 %v6653_v4, %v6194_v25 }
 0x30b   : > { %v5813_v39 = vor.u32 %v6557_v10, %v5810_v28  ;;  %v5601_v10 = vor.u32 %v6515_v38, %v5600_v14  ;;  %v5928_v28 = vld [vmem:[#allocation4 + $0x320] sm:$0xf]  ;;  %v6074_v4 = vld [vmem:[#allocation4 + $0x470] sm:$0xf0] }
 0x30c   : > { %v5800_v14 = vld [vmem:[#allocation4 + $0x220] sm:$0xf] }
 0x30d   : > { %3919 = vmatmul.bf16.vlgmr.msra.gmra.mxu1 %v7187_v59  ;;  %6216 = vmatmul.msk.bf16.vlgmr.msrb.gmra.mxu3 %vm3806_vm3, %v7193_v23  ;;  %v6564_v38 = vld [vmem:[#allocation4 + $0x25c] sm:$0xf0] }
 0x30e   : > { %3967 = vmatpush.bf16.msra.mxu3 %v5721_v52  ;;  %3997 = vmatmul.bf16.vlgmr.msrb.gmra.mxu2 %v7187_v59  ;;  %v6540_v52 = vld [vmem:[#allocation4 + $0x1a4] sm:$0xf]  ;;  %v6548_v25 = vld [vmem:[#allocation4 + $0x1dc] sm:$0xf0] }
 0x30f   : > { %4015 = vmatpush.bf16.msra.mxu1 %v5985_v41  ;;  %4049 = vmatmul.bf16.vlgmr.msrb.gmra.mxu0 %v7187_v59  ;;  %v5738_v41 = vld [vmem:[#allocation4 + $0x1e0] sm:$0xf0] }
 0x310   : > { %4093 = vmatpush.bf16.msrb.mxu2 %v5997_v42  ;;  %4145 = vmatpush.bf16.msrb.mxu0 %v6005_v44  ;;  %v6112_v42 = vld [vmem:[#allocation4 + $0x498] sm:$0xf]  ;;  %v5741_v20 = vor.u32 %v6540_v52, %v5738_v41  ;;  %v5546_v52 = vld [vmem:[#allocation4 + $0x60] sm:$0xf0]  ;;  %v6493_v41 = vld [vmem:[#allocation4 + $0x2c] sm:$0xf] }
 0x311   : > { %v6643_v44 = vld [vmem:[#allocation4 + $0x4d4] sm:$0xf0]  ;;  %v5557_v49 = vor.u32 %v6493_v41, %v5554_v22  ;;  %v5672_v41 = vld [vmem:[#allocation4 + $0x120] sm:$0xf] }
 0x312   : > { %3968 = vmatpush.bf16.msra.mxu3 %v5657_v43  ;;  %v5674_v43 = vld [vmem:[#allocation4 + $0x160] sm:$0xf0]  ;;  %v6113_v53 = vor.u32 %v6643_v44, %v6112_v42  ;;  %v6205_v42 = vor.u32 %v6654_v26, %v6202_v21  ;;  %v6000_v26 = vld [vmem:[#allocation4 + $0x3a8] sm:$0xf]  ;;  %v6532_v22 = vld [vmem:[#allocation4 + $0x15c] sm:$0xf0] }
 0x313   : > { %4016 = vmatpush.bf16.msra.mxu1 %v5921_v33  ;;  %v6525_v33 = vld [vmem:[#allocation4 + $0x12c] sm:$0xf]  ;;  %v5677_v45 = vor.u32 %v6524_v51, %v5674_v43  ;;  %v3845_v43 = vsel %vm3810_vm2, %v6197_v9, 0  ;;  %v6613_v21 = vld [vmem:[#allocation4 + $0x3e4] sm:$0xf0] }
 0x314   : > { %4094 = vmatpush.bf16.msrb.mxu2 %v5933_v12  ;;  %4146 = vmatpush.bf16.msrb.mxu0 %v5941_v60  ;;  %v5992_v12 = vld [vmem:[#allocation4 + $0x3a0] sm:$0xf]  ;;  %v5685_v55 = vor.u32 %v6525_v33, %v5682_v54  ;;  %v5936_v9 = vld [vmem:[#allocation4 + $0x328] sm:$0xf] }
 0x315   : > { %v6612_v60 = vld [vmem:[#allocation4 + $0x3dc] sm:$0xf0] }
 0x316   : > { %3969 = vmatpush.bf16.msra.mxu3 %v5593_v0  ;;  %v5610_v0 = vld [vmem:[#allocation4 + $0xe0] sm:$0xf0]  ;;  %v5993_v24 = vor.u32 %v6612_v60, %v5992_v12  ;;  %v6120_v33 = vld [vmem:[#allocation4 + $0x4a0] sm:$0xf]  ;;  %v6130_v12 = vld [vmem:[#allocation4 + $0x4e8] sm:$0xf0] }
 0x317   : > { %4017 = vmatpush.bf16.msra.mxu1 %v5857_v7  ;;  %v6509_v7 = vld [vmem:[#allocation4 + $0xac] sm:$0xf]  ;;  %v6644_v54 = vld [vmem:[#allocation4 + $0x4dc] sm:$0xf0]  ;;  %v6638_v60 = vld [vmem:[#allocation4 + $0x4b4] sm:$0xf] }
 0x318   : > { %4095 = vmatpush.bf16.msrb.mxu2 %v5869_v32  ;;  %4147 = vmatpush.bf16.msrb.mxu0 %v5877_v16  ;;  %v6184_v32 = vld [vmem:[#allocation4 + $0x520] sm:$0xf]  ;;  %v5621_v35 = vor.u32 %v6509_v7, %v5618_v27  ;;  %v6621_v7 = vld [vmem:[#allocation4 + $0x42c] sm:$0xf] }
 0x319   : > { %v6660_v16 = vld [vmem:[#allocation4 + $0x55c] sm:$0x10] }
 0x31a   : > { %3970 = vmatpush.bf16.msra.mxu3 %v5529_v30  ;;  %v6596_v30 = vld [vmem:[#allocation4 + $0x35c] sm:$0xf0]  ;;  %v6185_v50 = vor.u32 %v6660_v16, %v6184_v32  ;;  %v6066_v32 = vld [vmem:[#allocation4 + $0x468] sm:$0xf0]  ;;  %v6622_v16 = vld [vmem:[#allocation4 + $0x434] sm:$0xf] }
 0x31b   : > { %4018 = vmatpush.bf16.msra.mxu1 %v5793_v34  ;;  %v5613_v34 = vor.u32 %v6508_v63, %v5610_v0  ;;  %v5929_v44 = vor.u32 %v6596_v30, %v5928_v28  ;;  %v6121_v63 = vor.u32 %v6644_v54, %v6120_v33  ;;  %v6628_v0 = vld [vmem:[#allocation4 + $0x45c] sm:$0xf0]  ;;  %v6010_v28 = vld [vmem:[#allocation4 + $0x3f0] sm:$0xf0]  ;;  %v5872_v54 = vld [vmem:[#allocation4 + $0x2a8] sm:$0xf] }
 0x31c   : > { %4096 = vmatpush.bf16.msrb.mxu2 %v5805_v37  ;;  %4148 = vmatpush.bf16.msrb.mxu0 %v5813_v39  ;;  %v5536_v37 = vld [vmem:[#allocation4 + $0x18] sm:$0xf]  ;;  %v3836_v51 = vsel %vm3810_vm2, %v6185_v50, 0  ;;  %v6001_v50 = vor.u32 %v6613_v21, %v6000_v26  ;;  %v6516_v33 = vld [vmem:[#allocation4 + $0xdc] sm:$0xf0] }
 0x31d   : > { %3971 = vmatmul.bf16.vlgmr.msra.gmra.mxu3 %v7187_v59  ;;  %6218 = vmatmul.msk.bf16.vlgmr.msrb.gmra.mxu1 %vm3806_vm3, %v7193_v23  ;;  %v6499_v39 = vld [vmem:[#allocation4 + $0x54] sm:$0xf0]  ;;  %v5826_v26 = vld [vmem:[#allocation4 + $0x278] sm:$0xf0] }
 0x31e   : > { %4033 = vmatpush.bf16.msrb.mxu3 %v3830_v11  ;;  %6221 = vmatmul.msk.bf16.vlgmr.msra.gmra.mxu2 %vm3806_vm3, %v7193_v23  ;;  %v6492_v11 = vld [vmem:[#allocation4 + $0x24] sm:$0xf] }
 0x31f   : > { %4019 = vmatpush.bf16.msra.mxu1 %v5729_v46  ;;  %6223 = vmatmul.msk.bf16.vlgmr.msra.gmra.mxu0 %vm3806_vm3, %v7193_v23  ;;  %v5537_v46 = vor.u32 %v6499_v39, %v5536_v37  ;;  %v6018_v37 = vld [vmem:[#allocation4 + $0x3f8] sm:$0xf0]  ;;  %v6077_v39 = vor.u32 %v6622_v16, %v6074_v4  ;;  %v6565_v16 = vld [vmem:[#allocation4 + $0x264] sm:$0xf0]  ;;  %v6558_v4 = vld [vmem:[#allocation4 + $0x234] sm:$0xf] }
 0x320   : > { %4097 = vmatpush.bf16.msrb.mxu2 %v5741_v20  ;;  %4149 = vmatpush.bf16.msrb.mxu0 %v5749_v48  ;;  %v6580_v20 = vld [vmem:[#allocation4 + $0x2dc] sm:$0xf0]  ;;  %v5549_v48 = vor.u32 %v6492_v11, %v5546_v52 }
 0x321   : > { %v5865_v56 = vor.u32 %v6580_v20, %v5864_v19  ;;  %v5946_v19 = vld [vmem:[#allocation4 + $0x370] sm:$0xf0]  ;;  %v6591_v20 = vld [vmem:[#allocation4 + $0x33c] sm:$0xf] }
 0x322   : > { %4034 = vmatpush.bf16.msrb.mxu3 %v6113_v53  ;;  %v3851_v53 = vsel %vm3810_vm2, %v6205_v42, 0 }
 0x323   : > { %4020 = vmatpush.bf16.msra.mxu1 %v5665_v61  ;;  %v6138_v61 = vld [vmem:[#allocation4 + $0x4f0] sm:$0xf0] }
 0x324   : > { %4098 = vmatpush.bf16.msrb.mxu2 %v5677_v45  ;;  %4150 = vmatpush.bf16.msrb.mxu0 %v5685_v55  ;;  %v6133_v45 = vor.u32 %v6637_v5, %v6130_v12  ;;  %v6056_v55 = vld [vmem:[#allocation4 + $0x420] sm:$0xf]  ;;  %v6141_v27 = vor.u32 %v6638_v60, %v6138_v61  ;;  %v6581_v5 = vld [vmem:[#allocation4 + $0x2e4] sm:$0xf0]  ;;  %v6574_v12 = vld [vmem:[#allocation4 + $0x2b4] sm:$0xf] }
 0x325   : > { %v6057_v30 = vor.u32 %v6628_v0, %v6056_v55  ;;  %v5882_v60 = vld [vmem:[#allocation4 + $0x2f0] sm:$0xf0]  ;;  %v6575_v61 = vld [vmem:[#allocation4 + $0x2bc] sm:$0xf]  ;;  %v5873_v55 = vor.u32 %v6581_v5, %v5872_v54  ;;  %v6064_v54 = vld [vmem:[#allocation4 + $0x428] sm:$0xf] }
 0x326   : > { %4035 = vmatpush.bf16.msrb.mxu3 %v6049_v8  ;;  %v5801_v8 = vor.u32 %v6564_v38, %v5800_v14  ;;  %v5890_v14 = vld [vmem:[#allocation4 + $0x2f8] sm:$0xf0]  ;;  %v5885_v0 = vor.u32 %v6574_v12, %v5882_v60  ;;  %v6008_v12 = vld [vmem:[#allocation4 + $0x3b0] sm:$0xf] }
 0x327   : > { %4021 = vmatpush.bf16.msra.mxu1 %v5601_v10  ;;  %v6606_v10 = vld [vmem:[#allocation4 + $0x3b4] sm:$0xf]  ;;  %v6614_v60 = vld [vmem:[#allocation4 + $0x3ec] sm:$0xf0] }
 0x328   : > { %4099 = vmatpush.bf16.msrb.mxu2 %v5613_v34  ;;  %4151 = vmatpush.bf16.msrb.mxu0 %v5621_v35  ;;  %v6069_v34 = vor.u32 %v6621_v7, %v6066_v32  ;;  %v6607_v35 = vld [vmem:[#allocation4 + $0x3bc] sm:$0xf]  ;;  %v6013_v52 = vor.u32 %v6606_v10, %v6010_v28  ;;  %v5544_v7 = vld [vmem:[#allocation4 + $0x20] sm:$0xf]  ;;  %v5893_v32 = vor.u32 %v6575_v61, %v5890_v14  ;;  %v7227_v10 = vpop.f32.mrf.mxu0 }
 0x329   : > { %v6021_v42 = vor.u32 %v6607_v35, %v6018_v37  ;;  %v5744_v35 = vld [vmem:[#allocation4 + $0x1a8] sm:$0xf] }
 0x32a   : > { %4067 = vmatpush.bf16.msra.mxu3 %v5993_v24  ;;  %v5736_v24 = vld [vmem:[#allocation4 + $0x1a0] sm:$0xf]  ;;  %v6549_v37 = vld [vmem:[#allocation4 + $0x1e4] sm:$0xf0] }
 0x32b   : > { %4022 = vmatpush.bf16.msra.mxu1 %v5537_v46  ;;  %v5737_v11 = vor.u32 %v6548_v25, %v5736_v24  ;;  %v6590_v46 = vld [vmem:[#allocation4 + $0x334] sm:$0xf]  ;;  %v6559_v25 = vld [vmem:[#allocation4 + $0x23c] sm:$0xf] }
 0x32c   : > { %4100 = vmatpush.bf16.msrb.mxu2 %v5549_v48  ;;  %4152 = vmatpush.bf16.msrb.mxu0 %v5557_v49  ;;  %v5954_v48 = vld [vmem:[#allocation4 + $0x378] sm:$0xf0]  ;;  %v5673_v49 = vor.u32 %v6532_v22, %v5672_v41  ;;  %v5818_v24 = vld [vmem:[#allocation4 + $0x270] sm:$0xf0] }
 0x32d   : > { %6220 = vmatmul.msk.bf16.vlgmr.msrb.gmra.mxu3 %vm3806_vm3, %v7193_v23  ;;  %v5762_v41 = vld [vmem:[#allocation4 + $0x1f8] sm:$0xf0] }
 0x32e   : > { %4068 = vmatpush.bf16.msra.mxu3 %v5929_v44  ;;  %4023 = vmatmul.bf16.vlgmr.msra.gmra.mxu1 %v7187_v59  ;;  %v6597_v44 = vld [vmem:[#allocation4 + $0x364] sm:$0xf0] }
 0x32f   : > { %4085 = vmatpush.bf16.msrb.mxu1 %v3836_v51  ;;  %4101 = vmatmul.bf16.vlgmr.msrb.gmra.mxu2 %v7187_v59  ;;  %v5937_v51 = vor.u32 %v6597_v44, %v5936_v9  ;;  %v6128_v9 = vld [vmem:[#allocation4 + $0x4a8] sm:$0xf]  ;;  %v5745_v44 = vor.u32 %v6549_v37, %v5744_v35 }
 0x330   : > { %4163 = vmatpush.bf16.msra.mxu2 %v3845_v43  ;;  %4215 = vmatpush.bf16.msra.mxu0 %v3851_v53  ;;  %v5949_v43 = vor.u32 %v6590_v46, %v5946_v19  ;;  %v5608_v53 = vld [vmem:[#allocation4 + $0xa0] sm:$0xf]  ;;  %v5680_v19 = vld [vmem:[#allocation4 + $0x128] sm:$0xf]  ;;  %v3870_v5 = vpop.f32.mrf.mxu0 }
 0x331   : > { %4153 = vmatmul.bf16.vlgmr.msrb.gmra.mxu0 %v7187_v59  ;;  %v5609_v38 = vor.u32 %v6516_v33, %v5608_v53  ;;  %v6527_v53 = vld [vmem:[#allocation4 + $0x13c] sm:$0xf]  ;;  %v6501_v37 = vld [vmem:[#allocation4 + $0x64] sm:$0xf0] }
 0x332   : > { %4069 = vmatpush.bf16.msra.mxu3 %v5865_v56  ;;  %v5957_v56 = vor.u32 %v6591_v20, %v5954_v48  ;;  %v6533_v20 = vld [vmem:[#allocation4 + $0x164] sm:$0xf0]  ;;  %v5698_v33 = vld [vmem:[#allocation4 + $0x178] sm:$0xf0] }
 0x333   : > { %4086 = vmatpush.bf16.msrb.mxu1 %v6121_v63  ;;  %v6192_v63 = vld [vmem:[#allocation4 + $0x528] sm:$0xf]  ;;  %v5681_v61 = vor.u32 %v6533_v20, %v5680_v19 }
 0x334   : > { %4164 = vmatpush.bf16.msra.mxu2 %v6133_v45  ;;  %4216 = vmatpush.bf16.msra.mxu0 %v6141_v27  ;;  %v6661_v45 = vld [vmem:[#allocation4 + $0x564] sm:$0x10]  ;;  %v6500_v27 = vld [vmem:[#allocation4 + $0x5c] sm:$0xf0] }
 0x335   : > { %v6193_v21 = vor.u32 %v6661_v45, %v6192_v63  ;;  %v5545_v28 = vor.u32 %v6500_v27, %v5544_v7  ;;  %v6517_v63 = vld [vmem:[#allocation4 + $0xe4] sm:$0xf0]  ;;  %v5701_v45 = vor.u32 %v6527_v53, %v5698_v33  ;;  %v5626_v7 = vld [vmem:[#allocation4 + $0xf0] sm:$0xf0]  ;;  %v6511_v27 = vld [vmem:[#allocation4 + $0xbc] sm:$0xf] }
 0x336   : > { %4070 = vmatpush.bf16.msra.mxu3 %v5801_v8  ;;  %v5808_v8 = vld [vmem:[#allocation4 + $0x228] sm:$0xf]  ;;  %v6646_v53 = vld [vmem:[#allocation4 + $0x4ec] sm:$0xf0] }
 0x337   : > { %4087 = vmatpush.bf16.msrb.mxu1 %v6057_v30  ;;  %v5809_v30 = vor.u32 %v6565_v16, %v5808_v8  ;;  %v3842_v22 = vsel %vm3810_vm2, %v6193_v21, 0  ;;  %v6009_v8 = vor.u32 %v6614_v60, %v6008_v12  ;;  %v6200_v16 = vld [vmem:[#allocation4 + $0x530] sm:$0xf]  ;;  %v6639_v12 = vld [vmem:[#allocation4 + $0x4bc] sm:$0xf] }
 0x338   : > { %4165 = vmatpush.bf16.msra.mxu2 %v6069_v34  ;;  %4217 = vmatpush.bf16.msra.mxu0 %v6077_v39  ;;  %v5821_v34 = vor.u32 %v6558_v4, %v5818_v24  ;;  %v6542_v39 = vld [vmem:[#allocation4 + $0x1b4] sm:$0xf]  ;;  %v6662_v4 = vld [vmem:[#allocation4 + $0x56c] sm:$0x10]  ;;  %v6146_v60 = vld [vmem:[#allocation4 + $0x4f8] sm:$0xf0] }
 0x339   : > { %v5944_v24 = vld [vmem:[#allocation4 + $0x330] sm:$0xf] }
 0x33a   : > { %4071 = vmatpush.bf16.msra.mxu3 %v5737_v11  ;;  %v5829_v11 = vor.u32 %v6559_v25, %v5826_v26  ;;  %v6598_v25 = vld [vmem:[#allocation4 + $0x36c] sm:$0xf0] }
 0x33b   : > { %4119 = vmatpush.bf16.msra.mxu1 %v6001_v50  ;;  %v5754_v50 = vld [vmem:[#allocation4 + $0x1f0] sm:$0xf0]  ;;  %v5816_v33 = vld [vmem:[#allocation4 + $0x230] sm:$0xf] }
 0x33c   : > { %4197 = vmatpush.bf16.msrb.mxu2 %v6013_v52  ;;  %4249 = vmatpush.bf16.msrb.mxu0 %v6021_v42  ;;  %v6543_v52 = vld [vmem:[#allocation4 + $0x1bc] sm:$0xf]  ;;  %v6645_v42 = vld [vmem:[#allocation4 + $0x4e4] sm:$0xf0]  ;;  %v5757_v46 = vor.u32 %v6542_v39, %v5754_v50  ;;  %v6494_v39 = vld [vmem:[#allocation4 + $0x34] sm:$0xf]  ;;  %v6201_v50 = vor.u32 %v6662_v4, %v6200_v16 }
 0x33d   : > { %v5765_v48 = vor.u32 %v6543_v52, %v5762_v41  ;;  %v5945_v52 = vor.u32 %v6598_v25, %v5944_v24  ;;  %v6495_v41 = vld [vmem:[#allocation4 + $0x3c] sm:$0xf] }
 0x33e   : > { %4072 = vmatpush.bf16.msra.mxu3 %v5673_v49  ;;  %6222 = vmatmul.msk.bf16.vlgmr.msrb.gmra.mxu1 %vm3806_vm3, %v7193_v23  ;;  %v6129_v49 = vor.u32 %v6645_v42, %v6128_v9  ;;  %v7237_v9 = vpop.f32.mrf.mxu0  ;;  %v5880_v42 = vld [vmem:[#allocation4 + $0x2b0] sm:$0xf]  ;;  %v6082_v16 = vld [vmem:[#allocation4 + $0x478] sm:$0xf0] }
 0x33f   : > { %4120 = vmatpush.bf16.msra.mxu1 %v5937_v51  ;;  %6225 = vmatmul.msk.bf16.vlgmr.msra.gmra.mxu2 %vm3806_vm3, %v7193_v23  ;;  %v6526_v51 = vld [vmem:[#allocation4 + $0x134] sm:$0xf] }
 0x340   : > { %4198 = vmatpush.bf16.msrb.mxu2 %v5949_v43  ;;  %4250 = vmatpush.bf16.msrb.mxu0 %v5957_v56  ;;  %v5690_v43 = vld [vmem:[#allocation4 + $0x170] sm:$0xf0]  ;;  %v6629_v56 = vld [vmem:[#allocation4 + $0x464] sm:$0xf0] }
 0x341   : > { %6227 = vmatmul.msk.bf16.vlgmr.msra.gmra.mxu0 %vm3806_vm3, %v7193_v23  ;;  %v5693_v14 = vor.u32 %v6526_v51, %v5690_v43  ;;  %v6136_v51 = vld [vmem:[#allocation4 + $0x4b0] sm:$0xf] }
 0x342   : > { %4073 = vmatpush.bf16.msra.mxu3 %v5609_v38  ;;  %v5616_v38 = vld [vmem:[#allocation4 + $0xa8] sm:$0xf] }
 0x343   : > { %4121 = vmatpush.bf16.msra.mxu1 %v5873_v55  ;;  %v6065_v55 = vor.u32 %v6629_v56, %v6064_v54  ;;  %v5617_v26 = vor.u32 %v6517_v63, %v5616_v38  ;;  %v6566_v54 = vld [vmem:[#allocation4 + $0x26c] sm:$0xf0]  ;;  %v7240_v56 = vpop.f32.mrf.mxu2 }
 0x344   : > { %4199 = vmatpush.bf16.msrb.mxu2 %v5885_v0  ;;  %4251 = vmatpush.bf16.msrb.mxu0 %v5893_v32  ;;  %v6510_v0 = vld [vmem:[#allocation4 + $0xb4] sm:$0xf]  ;;  %v5634_v32 = vld [vmem:[#allocation4 + $0xf8] sm:$0xf0]  ;;  %v6072_v38 = vld [vmem:[#allocation4 + $0x430] sm:$0xf] }
 0x345   : > { %v5629_v21 = vor.u32 %v6510_v0, %v5626_v7  ;;  %v5637_v35 = vor.u32 %v6511_v27, %v5634_v32  ;;  %v6630_v63 = vld [vmem:[#allocation4 + $0x46c] sm:$0xf0]  ;;  %v6016_v27 = vld [vmem:[#allocation4 + $0x3b8] sm:$0xf]  ;;  %v6623_v32 = vld [vmem:[#allocation4 + $0x43c] sm:$0xf] }
 0x346   : > { %4074 = vmatpush.bf16.msra.mxu3 %v5545_v28  ;;  %v5552_v28 = vld [vmem:[#allocation4 + $0x28] sm:$0xf]  ;;  %v3948_v0 = vpop.f32.mrf.mxu0  ;;  %v6550_v7 = vld [vmem:[#allocation4 + $0x1ec] sm:$0xf0]  ;;  %v6073_v4 = vor.u32 %v6630_v63, %v6072_v38  ;;  %v6535_v38 = vld [vmem:[#allocation4 + $0x174] sm:$0xf0] }
 0x347   : > { %4122 = vmatpush.bf16.msra.mxu1 %v5809_v30  ;;  %v6655_v30 = vld [vmem:[#allocation4 + $0x53c] sm:$0xf]  ;;  %v5553_v19 = vor.u32 %v6501_v37, %v5552_v28  ;;  %v6534_v28 = vld [vmem:[#allocation4 + $0x16c] sm:$0xf0] }
 0x348   : > { %4200 = vmatpush.bf16.msrb.mxu2 %v5821_v34  ;;  %4252 = vmatpush.bf16.msrb.mxu0 %v5829_v11  ;;  %v6210_v34 = vld [vmem:[#allocation4 + $0x578] sm:$0x10]  ;;  %v5562_v11 = vld [vmem:[#allocation4 + $0x70] sm:$0xf0] }
 0x349   : > { %4075 = vmatmul.bf16.vlgmr.msra.gmra.mxu3 %v7187_v59  ;;  %v5565_v20 = vor.u32 %v6494_v39, %v5562_v11  ;;  %v5624_v11 = vld [vmem:[#allocation4 + $0xb0] sm:$0xf] }
 0x34a   : > { %4137 = vmatpush.bf16.msrb.mxu3 %v3842_v22  ;;  %v5570_v22 = vld [vmem:[#allocation4 + $0x78] sm:$0xf0] }
 0x34b   : > { %4123 = vmatpush.bf16.msra.mxu1 %v5745_v44  ;;  %v6582_v44 = vld [vmem:[#allocation4 + $0x2ec] sm:$0xf0] }
 0x34c   : > { %4201 = vmatpush.bf16.msrb.mxu2 %v5757_v46  ;;  %4253 = vmatpush.bf16.msrb.mxu0 %v5765_v48  ;;  %v6213_v46 = vor.u32 %v6655_v30, %v6210_v34  ;;  %v5573_v48 = vor.u32 %v6495_v41, %v5570_v22  ;;  %v5881_v43 = vor.u32 %v6582_v44, %v5880_v42  ;;  %v5952_v30 = vld [vmem:[#allocation4 + $0x338] sm:$0xf] }
 0x34d   : > { %v6599_v34 = vld [vmem:[#allocation4 + $0x374] sm:$0xf0] }
 0x34e   : > { %4138 = vmatpush.bf16.msrb.mxu3 %v6129_v49  ;;  %v3848_v49 = vsel %vm3810_vm2, %v6201_v50, 0  ;;  %v3857_v5 = vsel %vm3810_vm2, %v6213_v46, 0  ;;  %v5953_v39 = vor.u32 %v6599_v34, %v5952_v30  ;;  %v6518_v50 = vld [vmem:[#allocation4 + $0xec] sm:$0xf0]  ;;  %v6583_v41 = vld [vmem:[#allocation4 + $0x2f4] sm:$0xf0] }
 0x34f   : > { %4124 = vmatpush.bf16.msra.mxu1 %v5681_v61  ;;  %v6137_v61 = vor.u32 %v6646_v53, %v6136_v51  ;;  %v6208_v22 = vld [vmem:[#allocation4 + $0x538] sm:$0xf]  ;;  %v5625_v44 = vor.u32 %v6518_v50, %v5624_v11 }
 0x350   : > { %4202 = vmatpush.bf16.msrb.mxu2 %v5693_v14  ;;  %4254 = vmatpush.bf16.msrb.mxu0 %v5701_v45  ;;  %v5817_v14 = vor.u32 %v6566_v54, %v5816_v33  ;;  %v5752_v45 = vld [vmem:[#allocation4 + $0x1b0] sm:$0xf]  ;;  %v6663_v42 = vld [vmem:[#allocation4 + $0x574] sm:$0x10] }
 0x351   : > { %v5753_v24 = vor.u32 %v6550_v7, %v5752_v45  ;;  %v6209_v51 = vor.u32 %v6663_v42, %v6208_v22  ;;  %v5760_v33 = vld [vmem:[#allocation4 + $0x1b8] sm:$0xf] }
 0x352   : > { %4139 = vmatpush.bf16.msrb.mxu3 %v6065_v55  ;;  %v6149_v55 = vor.u32 %v6639_v12, %v6146_v60  ;;  %v6551_v54 = vld [vmem:[#allocation4 + $0x1f4] sm:$0xf0] }
 0x353   : > { %4125 = vmatpush.bf16.msra.mxu1 %v5617_v26  ;;  %v5688_v26 = vld [vmem:[#allocation4 + $0x130] sm:$0xf]  ;;  %v6144_v12 = vld [vmem:[#allocation4 + $0x4b8] sm:$0xf] }
 0x354   : > { %4203 = vmatpush.bf16.msrb.mxu2 %v5629_v21  ;;  %4255 = vmatpush.bf16.msrb.mxu0 %v5637_v35  ;;  %v3896_v21 = vpop.f32.mrf.mxu2  ;;  %v6085_v35 = vor.u32 %v6623_v32, %v6082_v16  ;;  %v5689_v37 = vor.u32 %v6534_v28, %v5688_v26  ;;  %v6647_v60 = vld [vmem:[#allocation4 + $0x4f4] sm:$0xf0] }
 0x355   : > { %v6145_v63 = vor.u32 %v6647_v60, %v6144_v12  ;;  %v6080_v45 = vld [vmem:[#allocation4 + $0x438] sm:$0xf] }
 0x356   : > { %4171 = vmatpush.bf16.msra.mxu3 %v6009_v8  ;;  %v6615_v8 = vld [vmem:[#allocation4 + $0x3f4] sm:$0xf0] }
 0x357   : > { %4126 = vmatpush.bf16.msra.mxu1 %v5553_v19  ;;  %v6017_v25 = vor.u32 %v6615_v8, %v6016_v27  ;;  %v5560_v19 = vld [vmem:[#allocation4 + $0x30] sm:$0xf]  ;;  %v5632_v7 = vld [vmem:[#allocation4 + $0xb8] sm:$0xf] }
 0x358   : > { %4204 = vmatpush.bf16.msrb.mxu2 %v5565_v20  ;;  %4256 = vmatpush.bf16.msrb.mxu0 %v5573_v48  ;;  %v6502_v20 = vld [vmem:[#allocation4 + $0x6c] sm:$0xf0]  ;;  %v5824_v48 = vld [vmem:[#allocation4 + $0x238] sm:$0xf] }
 0x359   : > { %6224 = vmatmul.msk.bf16.vlgmr.msrb.gmra.mxu3 %vm3806_vm3, %v7193_v23  ;;  %v6519_v27 = vld [vmem:[#allocation4 + $0xf4] sm:$0xf0] }
 0x35a   : > { %4172 = vmatpush.bf16.msra.mxu3 %v5945_v52  ;;  %4127 = vmatmul.bf16.vlgmr.msra.gmra.mxu1 %v7187_v59  ;;  %v5888_v52 = vld [vmem:[#allocation4 + $0x2b8] sm:$0xf]  ;;  %v5633_v32 = vor.u32 %v6519_v27, %v5632_v7 }
 0x35b   : > { %4189 = vmatpush.bf16.msrb.mxu1 %v3848_v49  ;;  %4205 = vmatmul.bf16.vlgmr.msrb.gmra.mxu2 %v7187_v59  ;;  %v5889_v46 = vor.u32 %v6583_v41, %v5888_v52  ;;  %v6567_v49 = vld [vmem:[#allocation4 + $0x274] sm:$0xf0] }
 0x35c   : > { %4267 = vmatpush.bf16.msra.mxu2 %v3857_v5  ;;  %4257 = vmatmul.bf16.vlgmr.msrb.gmra.mxu0 %v7187_v59  ;;  %v5825_v53 = vor.u32 %v6567_v49, %v5824_v48  ;;  %v3854_v5 = vsel %vm3810_vm2, %v6209_v51, 0  ;;  %v5568_v16 = vld [vmem:[#allocation4 + $0x38] sm:$0xf] }
 0x35e   : > { %4173 = vmatpush.bf16.msra.mxu3 %v5881_v43  ;;  %v5561_v43 = vor.u32 %v6502_v20, %v5560_v19 }
 0x35f   : > { %4190 = vmatpush.bf16.msrb.mxu1 %v6137_v61  ;;  %v5761_v61 = vor.u32 %v6551_v54, %v5760_v33 }
 0x360   : > { %4268 = vmatpush.bf16.msra.mxu2 %v6149_v55  ;;  %v6631_v55 = vld [vmem:[#allocation4 + $0x474] sm:$0xf0] }
 0x361   : > { %v6081_v8 = vor.u32 %v6631_v55, %v6080_v45 }
 0x362   : > { %4174 = vmatpush.bf16.msra.mxu3 %v5817_v14  ;;  %v5696_v14 = vld [vmem:[#allocation4 + $0x138] sm:$0xf] }
 0x363   : > { %4191 = vmatpush.bf16.msrb.mxu1 %v6073_v4  ;;  %v5697_v0 = vor.u32 %v6535_v38, %v5696_v14  ;;  %v6503_v4 = vld [vmem:[#allocation4 + $0x74] sm:$0xf0] }
 0x364   : > { %4269 = vmatpush.bf16.msra.mxu2 %v6085_v35 }
 0x366   : > { %4175 = vmatpush.bf16.msra.mxu3 %v5753_v24  ;;  %v5569_v24 = vor.u32 %v6503_v4, %v5568_v16 }
 0x367   : > { %4223 = vmatpush.bf16.msra.mxu1 %v6017_v25  ;;  %v7254_v25 = vpop.permute.xlu0 %459 }
 0x368   : > { %v525_v21 = vadd.f32 %v7095_v6, %v7254_v25  ;;  %v538_v6 = vadd.f32 %v7091_v47, %v7254_v25 }
 0x36a   : > { %4176 = vmatpush.bf16.msra.mxu3 %v5689_v37  ;;  %6226 = vmatmul.msk.bf16.vlgmr.msrb.gmra.mxu1 %vm3806_vm3, %v7193_v23 }
 0x36b   : > { %4224 = vmatpush.bf16.msra.mxu1 %v5953_v39  ;;  %6229 = vmatmul.msk.bf16.vlgmr.msra.gmra.mxu2 %vm3806_vm3, %v7193_v23  ;;  %v564_v39 = vadd.f32 %v7105_v31, %v7254_v25  ;;  %v551_v31 = vadd.f32 %v7097_v15, %v7254_v25 }
 0x36e   : > { %4177 = vmatpush.bf16.msra.mxu3 %v5625_v44 }
 0x36f   : > { %4225 = vmatpush.bf16.msra.mxu1 %v5889_v46 }
 0x372   : > { %4178 = vmatpush.bf16.msra.mxu3 %v5561_v43  ;;  %v590_v43 = vadd.f32 %v7101_v2, %v7254_v25  ;;  %v577_v2 = vadd.f32 %v7093_v58, %v7254_v25 }
 0x373   : > { %4226 = vmatpush.bf16.msra.mxu1 %v5825_v53 }
 0x375   : > { %4179 = vmatmul.bf16.vlgmr.msra.gmra.mxu3 %v7187_v59 }
 0x376   : > { %4241 = vmatpush.bf16.msrb.mxu3 %v3854_v5 }
 0x377   : > { %4227 = vmatpush.bf16.msra.mxu1 %v5761_v61 }
 0x37a   : > { %4242 = vmatpush.bf16.msrb.mxu3 %v6145_v63  ;;  %v3881_v26 = vpop.f32.mrf.mxu1 }
 0x37b   : > { %4228 = vmatpush.bf16.msra.mxu1 %v5697_v0  ;;  %v3882_v28 = vadd.f32 %v3881_v26, %v7227_v10 }
 0x37c   : > { %v4011_v30 = vpop.f32.mrf.mxu0 }
 0x37d   : > { %v4275_v34 = vadd.f32 %v3882_v28, %v525_v21 }
 0x37e   : > { %4243 = vmatpush.bf16.msrb.mxu3 %v6081_v8  ;;  %v616_v8 = vadd.f32 %v7113_v62, %v7254_v25  ;;  %v603_v62 = vadd.f32 %v7107_v40, %v7254_v25 }
 0x37f   : > { %4229 = vmatpush.bf16.msra.mxu1 %v5633_v32  ;;  %v4291_v35 = vmul.f32 0.2, %v4275_v34 }
 0x380   : > { %v3907_v37 = vpop.f32.mrf.mxu3 }
 0x381   : > { %v4307_v10 = vmax.f32 %v4275_v34, %v4291_v35 }
 0x382   : > { %v3883_v50 = vpop.f32.mrf.mxu1 }
 0x383   : > { %4230 = vmatpush.bf16.msra.mxu1 %v5569_v24  ;;  %4323 = vst [vmem:[%s7266_s19] sm:$0xff] %v4307_v10 }
 0x384   : > { %v4013_v22 = vpop.f32.mrf.mxu0 }
 0x385   : > { %6228 = vmatmul.msk.bf16.vlgmr.msrb.gmra.mxu3 %vm3806_vm3, %v7193_v23  ;;  %v3959_v23 = vpop.f32.mrf.mxu2 }
 0x386   : > { %4231 = vmatmul.bf16.vlgmr.msra.gmra.mxu1 %v7187_v59  ;;  %v3908_v59 = vadd.f32 %v3907_v37, %v7240_v56  ;;  %v3960_v11 = vadd.f32 %v3959_v23, %v7237_v9 }
 0x388   : > { %v4276_v52 = vadd.f32 %v3908_v59, %v538_v6  ;;  %v4278_v41 = vadd.f32 %v3960_v11, %v564_v39  ;;  %v3909_v19 = vpop.f32.mrf.mxu3  ;;  %v642_v39 = vadd.f32 %v7111_v29, %v7254_v25  ;;  %v668_v29 = vadd.f32 %v7123_v36, %v7254_v25 }
 0x38a   : > { %v4292_v42 = vmul.f32 0.2, %v4276_v52  ;;  %v4294_v44 = vmul.f32 0.2, %v4278_v41  ;;  %v3920_v56 = vpop.f32.mrf.mxu1 }
 0x38c   : > { %v4308_v46 = vmax.f32 %v4276_v52, %v4292_v42  ;;  %v4310_v47 = vmax.f32 %v4278_v41, %v4294_v44  ;;  %v4050_v48 = vpop.f32.mrf.mxu0 }
 0x38d   : > { %v3961_v20 = vpop.f32.mrf.mxu2 }
 0x38e   : > { %4324 = vst [vmem:[%s7266_s19 + $0x8] sm:$0xff] %v4308_v46 }
 0x38f   : > { %4326 = vst [vmem:[%s7266_s19 + $0x18] sm:$0xff] %v4310_v47 }
 0x390   : > { %v3933_v49 = vpop.f32.mrf.mxu3 }
 0x391   : > { %v3934_v9 = vadd.f32 %v3933_v49, %v3920_v56 }
 0x392   : > { %v3922_v33 = vpop.f32.mrf.mxu1 }
 0x393   : > { %v4277_v54 = vadd.f32 %v3934_v9, %v551_v31 }
 0x394   : > { %v4052_v12 = vpop.f32.mrf.mxu0 }
 0x395   : > { %v3998_v51 = vpop.f32.mrf.mxu2  ;;  %v4293_v60 = vmul.f32 0.2, %v4277_v54 }
 0x396   : > { %v4012_v53 = vadd.f32 %v4011_v30, %v3998_v51 }
 0x397   : > { %v4309_v14 = vmax.f32 %v4277_v54, %v4293_v60 }
 0x398   : > { %v4280_v5 = vadd.f32 %v4012_v53, %v590_v43  ;;  %v3935_v63 = vpop.f32.mrf.mxu3  ;;  %v629_v53 = vadd.f32 %v7103_v13, %v7254_v25 }
 0x399   : > { %4325 = vst [vmem:[%s7266_s19 + $0x10] sm:$0xff] %v4309_v14 }
 0x39a   : > { %v4296_v61 = vmul.f32 0.2, %v4280_v5  ;;  %v3985_v15 = vpop.f32.mrf.mxu1 }
 0x39c   : > { %v4312_v38 = vmax.f32 %v4280_v5, %v4296_v61  ;;  %v4115_v55 = vpop.f32.mrf.mxu0 }
 0x39d   : > { %v4000_v45 = vpop.f32.mrf.mxu2 }
 0x39e   : > { %4328 = vst [vmem:[%s7266_s19 + $0x28] sm:$0xff] %v4312_v38 }
 0x3a0   : > { %v3972_v0 = vpop.f32.mrf.mxu3 }
 0x3a1   : > { %v3986_v7 = vadd.f32 %v3985_v15, %v3972_v0  ;;  %v655_v15 = vadd.f32 %v7117_v3, %v7254_v25  ;;  %v694_v0 = vadd.f32 %v7121_v18, %v7254_v25  ;;  %v720_v18 = vadd.f32 %v7132_v17, %v7254_v25 }
 0x3a2   : > { %v3987_v16 = vpop.f32.mrf.mxu1 }
 0x3a3   : > { %v4279_v4 = vadd.f32 %v3986_v7, %v577_v2 }
 0x3a4   : > { %v4117_v26 = vpop.f32.mrf.mxu0 }
 0x3a5   : > { %v4063_v27 = vpop.f32.mrf.mxu2  ;;  %v4295_v21 = vmul.f32 0.2, %v4279_v4 }
 0x3a6   : > { %v4064_v32 = vadd.f32 %v4063_v27, %v4050_v48 }
 0x3a7   : > { %v4311_v30 = vmax.f32 %v4279_v4, %v4295_v21 }
 0x3a8   : > { %v4282_v24 = vadd.f32 %v4064_v32, %v616_v8  ;;  %v3974_v35 = vpop.f32.mrf.mxu3 }
 0x3a9   : > { %4327 = vst [vmem:[%s7266_s19 + $0x20] sm:$0xff] %v4311_v30 }
 0x3aa   : > { %v4298_v28 = vmul.f32 0.2, %v4282_v24 }
 0x3ab   : > { %v4024_v58 = vpop.f32.mrf.mxu1 }
 0x3ac   : > { %v4314_v34 = vmax.f32 %v4282_v24, %v4298_v28 }
 0x3ad   : > { %v4065_v37 = vpop.f32.mrf.mxu2 }
 0x3ae   : > { %4330 = vst [vmem:[%s7266_s19 + $0x38] sm:$0xff] %v4314_v34  ;;  %v4154_v6 = vpop.f32.mrf.mxu0 }
 0x3b0   : > { %v4037_v10 = vpop.f32.mrf.mxu3 }
 0x3b1   : > { %v4038_v59 = vadd.f32 %v4037_v10, %v4024_v58  ;;  %v681_v10 = vadd.f32 %v7115_v1, %v7254_v25 }
 0x3b3   : > { %v4026_v50 = vpop.f32.mrf.mxu1  ;;  %v4281_v52 = vadd.f32 %v4038_v59, %v603_v62 }
 0x3b5   : > { %v4102_v23 = vpop.f32.mrf.mxu2  ;;  %v4297_v42 = vmul.f32 0.2, %v4281_v52 }
 0x3b6   : > { %v4116_v11 = vadd.f32 %v4115_v55, %v4102_v23  ;;  %v4156_v41 = vpop.f32.mrf.mxu0 }
 0x3b7   : > { %v4313_v46 = vmax.f32 %v4281_v52, %v4297_v42 }
 0x3b8   : > { %v4284_v22 = vadd.f32 %v4116_v11, %v642_v39  ;;  %v4039_v19 = vpop.f32.mrf.mxu3 }
 0x3b9   : > { %4329 = vst [vmem:[%s7266_s19 + $0x30] sm:$0xff] %v4313_v46 }
 0x3ba   : > { %v4300_v44 = vmul.f32 0.2, %v4284_v22 }
 0x3bb   : > { %v4089_v40 = vpop.f32.mrf.mxu1 }
 0x3bc   : > { %v4316_v47 = vmax.f32 %v4284_v22, %v4300_v44  ;;  %v707_v22 = vadd.f32 %v7129_v57, %v7254_v25 }
 0x3bd   : > { %v4104_v20 = vpop.f32.mrf.mxu2 }
 0x3be   : > { %4332 = vst [vmem:[%s7266_s19 + $0x48] sm:$0xff] %v4316_v47  ;;  %v4219_v56 = vpop.f32.mrf.mxu0 }
 0x3c3   : > { %v4091_v31 = vpop.f32.mrf.mxu1 }
 0x3c5   : > { %v4167_v48 = vpop.f32.mrf.mxu2 }
 0x3c6   : > { %v4168_v49 = vadd.f32 %v4167_v48, %v4154_v6  ;;  %v4221_v9 = vpop.f32.mrf.mxu0 }
 0x3c8   : > { %v4286_v51 = vadd.f32 %v4168_v49, %v668_v29 }
 0x3ca   : > { %v4302_v33 = vmul.f32 0.2, %v4286_v51 }
 0x3cc   : > { %v4076_v43 = vpop.f32.mrf.mxu3  ;;  %v4318_v5 = vmax.f32 %v4286_v51, %v4302_v33 }
 0x3cd   : > { %v4090_v54 = vadd.f32 %v4089_v40, %v4076_v43  ;;  %v4169_v60 = vpop.f32.mrf.mxu2 }
 0x3ce   : > { %4334 = vst [vmem:[%s7266_s19 + $0x58] sm:$0xff] %v4318_v5 }
 0x3cf   : > { %v4283_v12 = vadd.f32 %v4090_v54, %v629_v53 }
 0x3d1   : > { %v4299_v61 = vmul.f32 0.2, %v4283_v12 }
 0x3d3   : > { %v4315_v14 = vmax.f32 %v4283_v12, %v4299_v61 }
 0x3d4   : > { %v4078_v38 = vpop.f32.mrf.mxu3 }
 0x3d5   : > { %4331 = vst [vmem:[%s7266_s19 + $0x40] sm:$0xff] %v4315_v14 }
 0x3d7   : > { %v4128_v36 = vpop.f32.mrf.mxu1 }
 0x3d9   : > { %v4258_v63 = vpop.f32.mrf.mxu0 }
 0x3dc   : > { %v4141_v45 = vpop.f32.mrf.mxu3 }
 0x3dd   : > { %v4142_v55 = vadd.f32 %v4141_v45, %v4128_v36 }
 0x3de   : > { %v4206_v13 = vpop.f32.mrf.mxu2 }
 0x3df   : > { %v4220_v2 = vadd.f32 %v4219_v56, %v4206_v13  ;;  %v4130_v7 = vpop.f32.mrf.mxu1  ;;  %v4285_v27 = vadd.f32 %v4142_v55, %v655_v15 }
 0x3e1   : > { %v4260_v8 = vpop.f32.mrf.mxu0  ;;  %v4288_v32 = vadd.f32 %v4220_v2, %v694_v0  ;;  %v4301_v16 = vmul.f32 0.2, %v4285_v27 }
 0x3e3   : > { %v4304_v4 = vmul.f32 0.2, %v4288_v32  ;;  %v4317_v24 = vmax.f32 %v4285_v27, %v4301_v16 }
 0x3e4   : > { %v4143_v21 = vpop.f32.mrf.mxu3 }
 0x3e5   : > { %v4320_v26 = vmax.f32 %v4288_v32, %v4304_v4  ;;  %4333 = vst [vmem:[%s7266_s19 + $0x50] sm:$0xff] %v4317_v24 }
 0x3e6   : > { %v4208_v28 = vpop.f32.mrf.mxu2 }
 0x3e7   : > { %4336 = vst [vmem:[%s7266_s19 + $0x68] sm:$0xff] %v4320_v26  ;;  %v4193_v3 = vpop.f32.mrf.mxu1 }
 0x3ee   : > { %v4271_v30 = vpop.f32.mrf.mxu2 }
 0x3ef   : > { %v4272_v34 = vadd.f32 %v4271_v30, %v4258_v63  ;;  %v4195_v35 = vpop.f32.mrf.mxu1 }
 0x3f1   : > { %v4290_v37 = vadd.f32 %v4272_v34, %v720_v18 }
 0x3f3   : > { %v4306_v58 = vmul.f32 0.2, %v4290_v37 }
 0x3f5   : > { %v4322_v59 = vmax.f32 %v4290_v37, %v4306_v58 }
 0x3f6   : > { %v4273_v39 = vpop.f32.mrf.mxu2 }
 0x3f7   : > { %4338 = vst [vmem:[%s7266_s19 + $0x78] sm:$0xff] %v4322_v59 }
 0x3f8   : > { %v4180_v6 = vpop.f32.mrf.mxu3 }
 0x3f9   : > { %v4194_v62 = vadd.f32 %v4193_v3, %v4180_v6 }
 0x3fb   : > { %v4287_v23 = vadd.f32 %v4194_v62, %v681_v10 }
 0x3fd   : > { %v4303_v11 = vmul.f32 0.2, %v4287_v23 }
 0x3ff   : > { %v4319_v50 = vmax.f32 %v4287_v23, %v4303_v11 }
 0x400   : > { %v4182_v52 = vpop.f32.mrf.mxu3 }
 0x401   : > { %4335 = vst [vmem:[%s7266_s19 + $0x60] sm:$0xff] %v4319_v50 }
 0x403   : > { %v4232_v41 = vpop.f32.mrf.mxu1 }
 0x408   : > { %v4245_v17 = vpop.f32.mrf.mxu3 }
 0x409   : > { %v4246_v42 = vadd.f32 %v4245_v17, %v4232_v41 }
 0x40b   : > { %v4234_v44 = vpop.f32.mrf.mxu1  ;;  %v4289_v46 = vadd.f32 %v4246_v42, %v707_v22 }
 0x40d   : > { %v4305_v47 = vmul.f32 0.2, %v4289_v46 }
 0x40f   : > { %v4321_v1 = vmax.f32 %v4289_v46, %v4305_v47 }
 0x410   : > { %v4247_v19 = vpop.f32.mrf.mxu3 }
 0x411   : > { %4337 = vst [vmem:[%s7266_s19 + $0x70] sm:$0xff] %v4321_v1 }
 0x412 PF: > { %s20_s9 = sadd.s32 1, %s6837_s9   ;;  %s7342_s27 = smov %s6829_s29 }
 0x413   : > { %p17_p10 = scmp.ge.s32.totalorder %s20_s9, 6   ;;  %s7343_s28 = smov %s6833_s30 }
 0x414   : > { %s7344_s29 = smov %s7347_s11  ;;  %s7345_s30 = smov %s7351_s12 }
 0x415   :  { %19 = sbr.rel (!%p17_p10) target bundleno = 4 (0x4), region = 94 }
 0x41a   :  { %4369 = vsyncpa [#allocation3], 1 }
 0x41b   :  { %4371 = vsyncpa [#allocation3 + $0x1], 1 }
 0x41c   :  { %4372 = vsyncpa [#allocation5], 1 }

</bundles_post_ra>
